<compile_context>
chip_gen: v6e
topology: v6e:2x2x1
jax: 0.10.0
libtpu: 0.0.40
codegen_flags: <defaults>
</compile_context>

<pallas_src>
import functools
import math

import jax
import jax.numpy as jnp
import numpy as np
from jax.experimental import pallas as pl
from jax.experimental.pallas import tpu as pltpu


def _encoder_layer_kernel(
    x_ref, mneg_ref,
    wqkv_ref, bqkv_ref, wo_ref, bo_ref,
    a1_ref, g1_ref,
    w1_ref, b1_ref, w2_ref, b2_ref,
    a2_ref, g2_ref,
    out_ref,
    qkv_scr, attn_scr,
    *, block_b, seq, heads, d_k, eps,
):
    _, D = x_ref.shape                      # x block is (block_b*seq, D)
    x = x_ref[...]                          # f32, kept for residual adds / norm statistics
    x_bf = x.astype(jnp.bfloat16)

    # ---- fused QKV projection: ONE lane-dense (block_b*S, D) @ (D, 3D) bf16 MXU matmul ----
    # (1/sqrt(d_k) is folded into the Q columns / bias host-side.)
    qkv_scr[...] = (jnp.dot(x_bf, wqkv_ref[...], preferred_element_type=jnp.float32)
                    + bqkv_ref[...])

    # ---- attention per (batch, head): small (S,S) scores/softmax in f32, matmuls in bf16 ----
    for b in range(block_b):                # static unroll; block_b and heads are small
        r0 = b * seq
        mb = mneg_ref[b]                    # (S, S) f32: 0.0 = attend, -1e9 = masked
        for h in range(heads):
            c0 = h * d_k
            qh = qkv_scr[r0:r0 + seq, c0:c0 + d_k].astype(jnp.bfloat16)
            kh = qkv_scr[r0:r0 + seq, D + c0:D + c0 + d_k].astype(jnp.bfloat16)
            vh = qkv_scr[r0:r0 + seq, 2 * D + c0:2 * D + c0 + d_k].astype(jnp.bfloat16)
            s = jax.lax.dot_general(qh, kh, (((1,), (1,)), ((), ())),
                                    preferred_element_type=jnp.float32)
            # Exact masked_fill(mask == 0, -1e9): the mask test/normalization was hoisted
            # host-side, so this is a single compare+select per head, and fully-masked rows
            # still degrade to a uniform softmax exactly like the reference.
            s = jnp.where(mb == 0.0, s, mb)
            s = s - jnp.max(s, axis=-1, keepdims=True)
            p = jnp.exp(s)
            p = p * pl.reciprocal(jnp.sum(p, axis=-1, keepdims=True), approx=True)
            # Head "concat" = write each head's output at its lane offset in the scratch.
            attn_scr[r0:r0 + seq, c0:c0 + d_k] = jnp.dot(
                p.astype(jnp.bfloat16), vh, preferred_element_type=jnp.float32)

    # ---- single lane-dense output projection (replaces H small (S,d_k)@(d_k,D) dots) ----
    attn = (jnp.dot(attn_scr[...].astype(jnp.bfloat16), wo_ref[...],
                    preferred_element_type=jnp.float32) + bo_ref[...])

    # TODO(synk): training-mode dropout (attention / AddNorm / FFN) omitted — eval-mode dropout
    # is the identity.

    def add_norm(base, delta, alpha, bias):     # torch Norm: unbiased std, eps added to std
        y = base + delta
        c = y - jnp.mean(y, axis=-1, keepdims=True)
        var = jnp.sum(c * c, axis=-1, keepdims=True) / (D - 1)
        inv = pl.reciprocal(jnp.sqrt(var) + eps, approx=True)
        return alpha * (c * inv) + bias

    x1 = add_norm(x, attn, a1_ref[...], g1_ref[...])

    # ---- FeedForward: (block_b*S, D) @ (D, F) -> relu -> @ (F, D); bf16 in, f32 accumulate ----
    h1 = (jnp.dot(x1.astype(jnp.bfloat16), w1_ref[...],
                  preferred_element_type=jnp.float32) + b1_ref[...])
    h1 = jnp.maximum(h1, 0.0)
    ff = (jnp.dot(h1.astype(jnp.bfloat16), w2_ref[...],
                  preferred_element_type=jnp.float32) + b2_ref[...])

    out = add_norm(x1, ff, a2_ref[...], g2_ref[...])
    out_ref[...] = out.astype(out_ref.dtype)


def encoder_layer(x, mask, params, *, heads, eps=1e-6, block_b=None):
    """x: (B, S, D) f32.  mask: (B, S, S), nonzero = attend.  Weights stored as (in, out)."""
    B, S, D = x.shape
    d_k = D // heads
    F = params["w1"].shape[1]

    if block_b is None:
        # Fold batch into the matmul M dimension (bigger MXU row tiles for the FLOP-dominant
        # projections / FFN), targeting ~256 rows (v6e/v7x MXU height) but keeping >= 2 grid
        # steps when possible so both v7x TensorCores get work on the "parallel" axis.
        block_b = max(1, min(B // 2, max(1, 256 // S))) if B >= 2 else 1
        while B % block_b:
            block_b -= 1
    assert B % block_b == 0
    grid_b = B // block_b

    f32, bf16 = jnp.float32, jnp.bfloat16
    inv_sqrt_dk = 1.0 / math.sqrt(d_k)

    # Fused QKV weight/bias with the 1/sqrt(d_k) score scale folded into the Q columns.
    # Weights feed the MXU in bf16 (halves weight DMA + VMEM residency); biases / norm params
    # stay f32 and are added after the f32-accumulated matmuls.
    wqkv = jnp.concatenate([params["wq"] * inv_sqrt_dk, params["wk"], params["wv"]],
                           axis=1).astype(bf16)                                   # (D, 3D)
    bqkv = jnp.concatenate([params["bq"] * inv_sqrt_dk, params["bk"],
                            params["bv"]]).reshape(1, 3 * D).astype(f32)
    wo = params["wo"].astype(bf16)
    bo = params["bo"].reshape(1, D).astype(f32)
    w1 = params["w1"].astype(bf16)
    b1 = params["b1"].reshape(1, F).astype(f32)
    w2 = params["w2"].astype(bf16)
    b2 = params["b2"].reshape(1, D).astype(f32)
    a1 = params["alpha1"].reshape(1, D).astype(f32)
    g1 = params["bias1"].reshape(1, D).astype(f32)
    a2 = params["alpha2"].reshape(1, D).astype(f32)
    g2 = params["bias2"].reshape(1, D).astype(f32)

    # Normalize the mask host-side (hoists the `== 0` test out of the per-head loop and off the
    # user's dtype): 0.0 = attend, -1e9 = masked.
    mneg = jnp.where(mask == 0, jnp.float32(-1e9), jnp.float32(0.0))

    # Present activations as a lane-dense 2-D (B*S, D) slab; batch folds into the M dimension.
    x_flat = x.reshape(B * S, D)

    kernel = functools.partial(_encoder_layer_kernel, block_b=block_b, seq=S,
                               heads=heads, d_k=d_k, eps=float(eps))

    def resident(shape):    # grid-invariant block: DMA'd once, stays resident across grid steps
        n = len(shape)
        return pl.BlockSpec(shape, lambda i: (0,) * n)

    out_flat = pl.pallas_call(
        kernel,
        out_shape=jax.ShapeDtypeStruct((B * S, D), x.dtype),
        grid_spec=pltpu.PrefetchScalarGridSpec(
            num_scalar_prefetch=0,
            grid=(grid_b,),
            in_specs=[
                pl.BlockSpec((block_b * S, D), lambda i: (i, 0)),     # x (batch folded into M)
                pl.BlockSpec((block_b, S, S), lambda i: (i, 0, 0)),   # mask bias (0 / -1e9)
                resident((D, 3 * D)), resident((1, 3 * D)),           # Wqkv, bqkv
                resident((D, D)), resident((1, D)),                   # Wo, bo
                resident((1, D)), resident((1, D)),                   # alpha1, bias1
                resident((D, F)), resident((1, F)),                   # W1, b1
                resident((F, D)), resident((1, D)),                   # W2, b2
                resident((1, D)), resident((1, D)),                   # alpha2, bias2
            ],
            out_specs=pl.BlockSpec((block_b * S, D), lambda i: (i, 0)),  # lane-dense 2D output
            scratch_shapes=[
                pltpu.VMEM((block_b * S, 3 * D), jnp.float32),   # fused QKV activations
                pltpu.VMEM((block_b * S, D), jnp.float32),       # per-head outputs ("concat")
            ],
        ),
        compiler_params=pltpu.CompilerParams(
            dimension_semantics=("parallel",),   # batch-block axis shards across TCs (v7x)
        ),
    )(x_flat, mneg, wqkv, bqkv, wo, bo, a1, g1, w1, b1, w2, b2, a2, g2)

    return out_flat.reshape(B, S, D)


def _encoder_layer_ref(x, mask, p, *, heads, eps=1e-6):
    """Pure-JAX f32 reference mirroring the PyTorch EncoderLayer (eval mode)."""
    B, S, D = x.shape
    d_k = D // heads

    def lin(t, w, b):
        return t @ w + b

    q = lin(x, p["wq"], p["bq"]).reshape(B, S, heads, d_k).transpose(0, 2, 1, 3)
    k = lin(x, p["wk"], p["bk"]).reshape(B, S, heads, d_k).transpose(0, 2, 1, 3)
    v = lin(x, p["wv"], p["bv"]).reshape(B, S, heads, d_k).transpose(0, 2, 1, 3)
    scores = jnp.einsum("bhqd,bhkd->bhqk", q, k) / math.sqrt(d_k)
    scores = jnp.where(mask[:, None, :, :] == 0, -1e9, scores)
    attnw = jax.nn.softmax(scores, axis=-1)
    o = jnp.einsum("bhqk,bhkd->bhqd", attnw, v).transpose(0, 2, 1, 3).reshape(B, S, D)
    attn = lin(o, p["wo"], p["bo"])

    def add_norm(base, delta, alpha, bias):
        y = base + delta
        mu = y.mean(-1, keepdims=True)
        c = y - mu
        std = jnp.sqrt((c * c).sum(-1, keepdims=True) / (D - 1))
        return alpha * (c / (std + eps)) + bias

    x1 = add_norm(x, attn, p["alpha1"], p["bias1"])
    ff = lin(jax.nn.relu(lin(x1, p["w1"], p["b1"])), p["w2"], p["b2"])
    return add_norm(x1, ff, p["alpha2"], p["bias2"])


if __name__ == "__main__":
    B, S, D, H, F = 4, 16, 128, 4, 2048   # d_ff=2048 is the module's default

    key = jax.random.PRNGKey(0)
    ks = jax.random.split(key, 13)

    def linear_init(kw, kb, fan_in, shape_w, shape_b):
        bound = 1.0 / math.sqrt(fan_in)
        w = jax.random.uniform(kw, shape_w, jnp.float32, -bound, bound)
        b = jax.random.uniform(kb, shape_b, jnp.float32, -bound, bound)
        return w, b

    wq, bq = linear_init(ks[0], ks[1], D, (D, D), (D,))
    wk, bk = linear_init(ks[2], ks[3], D, (D, D), (D,))
    wv, bv = linear_init(ks[4], ks[5], D, (D, D), (D,))
    wo, bo = linear_init(ks[6], ks[7], D, (D, D), (D,))
    w1, b1 = linear_init(ks[8], ks[9], D, (D, F), (F,))
    w2, b2 = linear_init(ks[10], ks[11], F, (F, D), (D,))

    params = {
        "wq": wq, "bq": bq, "wk": wk, "bk": bk, "wv": wv, "bv": bv,
        "wo": wo, "bo": bo,
        "w1": w1, "b1": b1, "w2": w2, "b2": b2,
        "alpha1": jnp.ones((D,), jnp.float32), "bias1": jnp.zeros((D,), jnp.float32),
        "alpha2": jnp.ones((D,), jnp.float32), "bias2": jnp.zeros((D,), jnp.float32),
    }

    x = jax.random.normal(ks[12], (B, S, D), jnp.float32)
    # padding masks: batch 1 ignores its last 3 key positions, batch 3 its last 5
    mask = jnp.ones((B, S, S), jnp.float32)
    mask = mask.at[1, :, S - 3:].set(0.0)
    mask = mask.at[3, :, S - 5:].set(0.0)

    out = jax.block_until_ready(encoder_layer(x, mask, params, heads=H))
    ref = jax.block_until_ready(_encoder_layer_ref(x, mask, params, heads=H))

    # bf16 MXU operands (f32 accumulation) vs the pure-f32 reference
    np.testing.assert_allclose(np.asarray(out), np.asarray(ref), rtol=3e-2, atol=3e-2)
    assert out.shape == (B, S, D) and out.dtype == jnp.float32

    print("KERNEL_OK")
</pallas_src>

<mosaic_0001>
module attributes {stable_mosaic.version = 11 : i64} {
  func.func @_encoder_layer_kernel(%arg0: i32, %arg1: memref<32x128xf32, #tpu.memory_space<vmem>>, %arg2: memref<2x16x16xf32, #tpu.memory_space<vmem>>, %arg3: memref<128x384xbf16, #tpu.memory_space<vmem>>, %arg4: memref<1x384xf32, #tpu.memory_space<vmem>>, %arg5: memref<128x128xbf16, #tpu.memory_space<vmem>>, %arg6: memref<1x128xf32, #tpu.memory_space<vmem>>, %arg7: memref<1x128xf32, #tpu.memory_space<vmem>>, %arg8: memref<1x128xf32, #tpu.memory_space<vmem>>, %arg9: memref<128x2048xbf16, #tpu.memory_space<vmem>>, %arg10: memref<1x2048xf32, #tpu.memory_space<vmem>>, %arg11: memref<2048x128xbf16, #tpu.memory_space<vmem>>, %arg12: memref<1x128xf32, #tpu.memory_space<vmem>>, %arg13: memref<1x128xf32, #tpu.memory_space<vmem>>, %arg14: memref<1x128xf32, #tpu.memory_space<vmem>>, %arg15: memref<32x128xf32, #tpu.memory_space<vmem>>, %arg16: memref<32x384xf32, #tpu.memory_space<vmem>>, %arg17: memref<32x128xf32, #tpu.memory_space<vmem>>) attributes {dimension_semantics = [#tpu.dimension_semantics<parallel>], iteration_bounds = array<i64: 2>, scalar_prefetch = 0 : i64, scratch_operands = 2 : i64, tpu.core_type = #tpu.core_type<tc>, window_params = [{transform_indices = @transform_0, window_bounds = array<i64: 32, 128>}, {transform_indices = @transform_1, window_bounds = array<i64: 2, 16, 16>}, {pipeline_mode = #tpu.pipeline_mode<synchronous>, transform_indices = @transform_2, window_bounds = array<i64: 128, 384>}, {pipeline_mode = #tpu.pipeline_mode<synchronous>, transform_indices = @transform_3, window_bounds = array<i64: 1, 384>}, {pipeline_mode = #tpu.pipeline_mode<synchronous>, transform_indices = @transform_4, window_bounds = array<i64: 128, 128>}, {pipeline_mode = #tpu.pipeline_mode<synchronous>, transform_indices = @transform_5, window_bounds = array<i64: 1, 128>}, {pipeline_mode = #tpu.pipeline_mode<synchronous>, transform_indices = @transform_6, window_bounds = array<i64: 1, 128>}, {pipeline_mode = #tpu.pipeline_mode<synchronous>, transform_indices = @transform_7, window_bounds = array<i64: 1, 128>}, {pipeline_mode = #tpu.pipeline_mode<synchronous>, transform_indices = @transform_8, window_bounds = array<i64: 128, 2048>}, {pipeline_mode = #tpu.pipeline_mode<synchronous>, transform_indices = @transform_9, window_bounds = array<i64: 1, 2048>}, {pipeline_mode = #tpu.pipeline_mode<synchronous>, transform_indices = @transform_10, window_bounds = array<i64: 2048, 128>}, {pipeline_mode = #tpu.pipeline_mode<synchronous>, transform_indices = @transform_11, window_bounds = array<i64: 1, 128>}, {pipeline_mode = #tpu.pipeline_mode<synchronous>, transform_indices = @transform_12, window_bounds = array<i64: 1, 128>}, {pipeline_mode = #tpu.pipeline_mode<synchronous>, transform_indices = @transform_13, window_bounds = array<i64: 1, 128>}, {transform_indices = @transform_14, window_bounds = array<i64: 32, 128>}]} {
    %c0 = arith.constant 0 : index
    %c0_0 = arith.constant 0 : index
    %0 = vector.load %arg1[%c0, %c0_0] : memref<32x128xf32, #tpu.memory_space<vmem>>, vector<32x128xf32>
    %1 = arith.truncf %0 : vector<32x128xf32> to vector<32x128xbf16>
    %c0_1 = arith.constant 0 : index
    %c0_2 = arith.constant 0 : index
    %2 = vector.load %arg3[%c0_1, %c0_2] : memref<128x384xbf16, #tpu.memory_space<vmem>>, vector<128x384xbf16>
    %cst = arith.constant dense<0.000000e+00> : vector<32x384xf32>
    %3 = tpu.matmul %1, %2, %cst {dimension_numbers = #tpu.dot_dimension_numbers<[1], [0], [0], [1], [0, 0, 1, 1], [], []>} : vector<32x128xbf16>, vector<128x384xbf16>, vector<32x384xf32> -> vector<32x384xf32>
    %c0_3 = arith.constant 0 : index
    %c0_4 = arith.constant 0 : index
    %4 = vector.load %arg4[%c0_3, %c0_4] : memref<1x384xf32, #tpu.memory_space<vmem>>, vector<1x384xf32>
    %5 = vector.broadcast %4 : vector<1x384xf32> to vector<32x384xf32>
    %6 = arith.addf %3, %5 : vector<32x384xf32>
    %c0_5 = arith.constant 0 : index
    %c0_6 = arith.constant 0 : index
    %7 = vector.load %arg16[%c0_5, %c0_6] : memref<32x384xf32, #tpu.memory_space<vmem>>, vector<32x384xf32>
    tpu.vector_store %arg16[%c0_5, %c0_6], %6 {strides = array<i32>} : memref<32x384xf32, #tpu.memory_space<vmem>>, vector<32x384xf32>,
    %c0_7 = arith.constant 0 : index
    %c0_8 = arith.constant 0 : index
    %c0_9 = arith.constant 0 : index
    %8 = vector.load %arg2[%c0_7, %c0_8, %c0_9] : memref<2x16x16xf32, #tpu.memory_space<vmem>>, vector<1x16x16xf32>
    %9 = vector.shape_cast %8 : vector<1x16x16xf32> to vector<16x16xf32>
    %c0_10 = arith.constant 0 : index
    %c0_11 = arith.constant 0 : index
    %10 = vector.load %arg16[%c0_10, %c0_11] : memref<32x384xf32, #tpu.memory_space<vmem>>, vector<16x32xf32>
    %11 = arith.truncf %10 : vector<16x32xf32> to vector<16x32xbf16>
    %c0_12 = arith.constant 0 : index
    %c128 = arith.constant 128 : index
    %12 = vector.load %arg16[%c0_12, %c128] : memref<32x384xf32, #tpu.memory_space<vmem>>, vector<16x32xf32>
    %13 = arith.truncf %12 : vector<16x32xf32> to vector<16x32xbf16>
    %c0_13 = arith.constant 0 : index
    %c256 = arith.constant 256 : index
    %14 = vector.load %arg16[%c0_13, %c256] : memref<32x384xf32, #tpu.memory_space<vmem>>, vector<16x32xf32>
    %15 = arith.truncf %14 : vector<16x32xf32> to vector<16x32xbf16>
    %cst_14 = arith.constant dense<0.000000e+00> : vector<16x16xf32>
    %16 = tpu.matmul %11, %13, %cst_14 {dimension_numbers = #tpu.dot_dimension_numbers<[1], [1], [0], [0], [0, 0, 1, 0], [], []>} : vector<16x32xbf16>, vector<16x32xbf16>, vector<16x16xf32> -> vector<16x16xf32>
    %cst_15 = arith.constant 0.000000e+00 : f32
    %17 = vector.broadcast %cst_15 : f32 to vector<16x16xf32>
    %18 = arith.cmpf oeq, %9, %17 : vector<16x16xf32>
    %19 = arith.select %18, %16, %9 : vector<16x16xi1>, vector<16x16xf32>
    %cst_16 = arith.constant dense<0xFF800000> : vector<16xf32>
    %20 = vector.multi_reduction <maximumf>, %19, %cst_16 [1] : vector<16x16xf32> to vector<16xf32>
    %21 = vector.shape_cast %20 : vector<16xf32> to vector<16x1xf32>
    %22 = vector.broadcast %21 : vector<16x1xf32> to vector<16x16xf32>
    %23 = arith.subf %19, %22 : vector<16x16xf32>
    %24 = math.exp %23 : vector<16x16xf32>
    %cst_17 = arith.constant dense<0.000000e+00> : vector<16xf32>
    %25 = vector.multi_reduction <add>, %24, %cst_17 [1] : vector<16x16xf32> to vector<16xf32>
    %26 = vector.shape_cast %25 : vector<16xf32> to vector<16x1xf32>
    %27 = tpu.reciprocal %26 {approx = true} : vector<16x1xf32> -> vector<16x1xf32>
    %28 = vector.broadcast %27 : vector<16x1xf32> to vector<16x16xf32>
    %29 = arith.mulf %24, %28 : vector<16x16xf32>
    %30 = arith.truncf %29 : vector<16x16xf32> to vector<16x16xbf16>
    %cst_18 = arith.constant dense<0.000000e+00> : vector<16x32xf32>
    %31 = tpu.matmul %30, %15, %cst_18 {dimension_numbers = #tpu.dot_dimension_numbers<[1], [0], [0], [1], [0, 0, 1, 1], [], []>} : vector<16x16xbf16>, vector<16x32xbf16>, vector<16x32xf32> -> vector<16x32xf32>
    %c0_19 = arith.constant 0 : index
    %c0_20 = arith.constant 0 : index
    %32 = vector.load %arg17[%c0_19, %c0_20] : memref<32x128xf32, #tpu.memory_space<vmem>>, vector<16x32xf32>
    tpu.vector_store %arg17[%c0_19, %c0_20], %31 {strides = array<i32>} : memref<32x128xf32, #tpu.memory_space<vmem>>, vector<16x32xf32>,
    %c0_21 = arith.constant 0 : index
    %c32 = arith.constant 32 : index
    %33 = vector.load %arg16[%c0_21, %c32] : memref<32x384xf32, #tpu.memory_space<vmem>>, vector<16x32xf32>
    %34 = arith.truncf %33 : vector<16x32xf32> to vector<16x32xbf16>
    %c0_22 = arith.constant 0 : index
    %c160 = arith.constant 160 : index
    %35 = vector.load %arg16[%c0_22, %c160] : memref<32x384xf32, #tpu.memory_space<vmem>>, vector<16x32xf32>
    %36 = arith.truncf %35 : vector<16x32xf32> to vector<16x32xbf16>
    %c0_23 = arith.constant 0 : index
    %c288 = arith.constant 288 : index
    %37 = vector.load %arg16[%c0_23, %c288] : memref<32x384xf32, #tpu.memory_space<vmem>>, vector<16x32xf32>
    %38 = arith.truncf %37 : vector<16x32xf32> to vector<16x32xbf16>
    %cst_24 = arith.constant dense<0.000000e+00> : vector<16x16xf32>
    %39 = tpu.matmul %34, %36, %cst_24 {dimension_numbers = #tpu.dot_dimension_numbers<[1], [1], [0], [0], [0, 0, 1, 0], [], []>} : vector<16x32xbf16>, vector<16x32xbf16>, vector<16x16xf32> -> vector<16x16xf32>
    %cst_25 = arith.constant 0.000000e+00 : f32
    %40 = vector.broadcast %cst_25 : f32 to vector<16x16xf32>
    %41 = arith.cmpf oeq, %9, %40 : vector<16x16xf32>
    %42 = arith.select %41, %39, %9 : vector<16x16xi1>, vector<16x16xf32>
    %cst_26 = arith.constant dense<0xFF800000> : vector<16xf32>
    %43 = vector.multi_reduction <maximumf>, %42, %cst_26 [1] : vector<16x16xf32> to vector<16xf32>
    %44 = vector.shape_cast %43 : vector<16xf32> to vector<16x1xf32>
    %45 = vector.broadcast %44 : vector<16x1xf32> to vector<16x16xf32>
    %46 = arith.subf %42, %45 : vector<16x16xf32>
    %47 = math.exp %46 : vector<16x16xf32>
    %cst_27 = arith.constant dense<0.000000e+00> : vector<16xf32>
    %48 = vector.multi_reduction <add>, %47, %cst_27 [1] : vector<16x16xf32> to vector<16xf32>
    %49 = vector.shape_cast %48 : vector<16xf32> to vector<16x1xf32>
    %50 = tpu.reciprocal %49 {approx = true} : vector<16x1xf32> -> vector<16x1xf32>
    %51 = vector.broadcast %50 : vector<16x1xf32> to vector<16x16xf32>
    %52 = arith.mulf %47, %51 : vector<16x16xf32>
    %53 = arith.truncf %52 : vector<16x16xf32> to vector<16x16xbf16>
    %cst_28 = arith.constant dense<0.000000e+00> : vector<16x32xf32>
    %54 = tpu.matmul %53, %38, %cst_28 {dimension_numbers = #tpu.dot_dimension_numbers<[1], [0], [0], [1], [0, 0, 1, 1], [], []>} : vector<16x16xbf16>, vector<16x32xbf16>, vector<16x32xf32> -> vector<16x32xf32>
    %c0_29 = arith.constant 0 : index
    %c32_30 = arith.constant 32 : index
    %55 = vector.load %arg17[%c0_29, %c32_30] : memref<32x128xf32, #tpu.memory_space<vmem>>, vector<16x32xf32>
    tpu.vector_store %arg17[%c0_29, %c32_30], %54 {strides = array<i32>} : memref<32x128xf32, #tpu.memory_space<vmem>>, vector<16x32xf32>,
    %c0_31 = arith.constant 0 : index
    %c64 = arith.constant 64 : index
    %56 = vector.load %arg16[%c0_31, %c64] : memref<32x384xf32, #tpu.memory_space<vmem>>, vector<16x32xf32>
    %57 = arith.truncf %56 : vector<16x32xf32> to vector<16x32xbf16>
    %c0_32 = arith.constant 0 : index
    %c192 = arith.constant 192 : index
    %58 = vector.load %arg16[%c0_32, %c192] : memref<32x384xf32, #tpu.memory_space<vmem>>, vector<16x32xf32>
    %59 = arith.truncf %58 : vector<16x32xf32> to vector<16x32xbf16>
    %c0_33 = arith.constant 0 : index
    %c320 = arith.constant 320 : index
    %60 = vector.load %arg16[%c0_33, %c320] : memref<32x384xf32, #tpu.memory_space<vmem>>, vector<16x32xf32>
    %61 = arith.truncf %60 : vector<16x32xf32> to vector<16x32xbf16>
    %cst_34 = arith.constant dense<0.000000e+00> : vector<16x16xf32>
    %62 = tpu.matmul %57, %59, %cst_34 {dimension_numbers = #tpu.dot_dimension_numbers<[1], [1], [0], [0], [0, 0, 1, 0], [], []>} : vector<16x32xbf16>, vector<16x32xbf16>, vector<16x16xf32> -> vector<16x16xf32>
    %cst_35 = arith.constant 0.000000e+00 : f32
    %63 = vector.broadcast %cst_35 : f32 to vector<16x16xf32>
    %64 = arith.cmpf oeq, %9, %63 : vector<16x16xf32>
    %65 = arith.select %64, %62, %9 : vector<16x16xi1>, vector<16x16xf32>
    %cst_36 = arith.constant dense<0xFF800000> : vector<16xf32>
    %66 = vector.multi_reduction <maximumf>, %65, %cst_36 [1] : vector<16x16xf32> to vector<16xf32>
    %67 = vector.shape_cast %66 : vector<16xf32> to vector<16x1xf32>
    %68 = vector.broadcast %67 : vector<16x1xf32> to vector<16x16xf32>
    %69 = arith.subf %65, %68 : vector<16x16xf32>
    %70 = math.exp %69 : vector<16x16xf32>
    %cst_37 = arith.constant dense<0.000000e+00> : vector<16xf32>
    %71 = vector.multi_reduction <add>, %70, %cst_37 [1] : vector<16x16xf32> to vector<16xf32>
    %72 = vector.shape_cast %71 : vector<16xf32> to vector<16x1xf32>
    %73 = tpu.reciprocal %72 {approx = true} : vector<16x1xf32> -> vector<16x1xf32>
    %74 = vector.broadcast %73 : vector<16x1xf32> to vector<16x16xf32>
    %75 = arith.mulf %70, %74 : vector<16x16xf32>
    %76 = arith.truncf %75 : vector<16x16xf32> to vector<16x16xbf16>
    %cst_38 = arith.constant dense<0.000000e+00> : vector<16x32xf32>
    %77 = tpu.matmul %76, %61, %cst_38 {dimension_numbers = #tpu.dot_dimension_numbers<[1], [0], [0], [1], [0, 0, 1, 1], [], []>} : vector<16x16xbf16>, vector<16x32xbf16>, vector<16x32xf32> -> vector<16x32xf32>
    %c0_39 = arith.constant 0 : index
    %c64_40 = arith.constant 64 : index
    %78 = vector.load %arg17[%c0_39, %c64_40] : memref<32x128xf32, #tpu.memory_space<vmem>>, vector<16x32xf32>
    tpu.vector_store %arg17[%c0_39, %c64_40], %77 {strides = array<i32>} : memref<32x128xf32, #tpu.memory_space<vmem>>, vector<16x32xf32>,
    %c0_41 = arith.constant 0 : index
    %c96 = arith.constant 96 : index
    %79 = vector.load %arg16[%c0_41, %c96] : memref<32x384xf32, #tpu.memory_space<vmem>>, vector<16x32xf32>
    %80 = arith.truncf %79 : vector<16x32xf32> to vector<16x32xbf16>
    %c0_42 = arith.constant 0 : index
    %c224 = arith.constant 224 : index
    %81 = vector.load %arg16[%c0_42, %c224] : memref<32x384xf32, #tpu.memory_space<vmem>>, vector<16x32xf32>
    %82 = arith.truncf %81 : vector<16x32xf32> to vector<16x32xbf16>
    %c0_43 = arith.constant 0 : index
    %c352 = arith.constant 352 : index
    %83 = vector.load %arg16[%c0_43, %c352] : memref<32x384xf32, #tpu.memory_space<vmem>>, vector<16x32xf32>
    %84 = arith.truncf %83 : vector<16x32xf32> to vector<16x32xbf16>
    %cst_44 = arith.constant dense<0.000000e+00> : vector<16x16xf32>
    %85 = tpu.matmul %80, %82, %cst_44 {dimension_numbers = #tpu.dot_dimension_numbers<[1], [1], [0], [0], [0, 0, 1, 0], [], []>} : vector<16x32xbf16>, vector<16x32xbf16>, vector<16x16xf32> -> vector<16x16xf32>
    %cst_45 = arith.constant 0.000000e+00 : f32
    %86 = vector.broadcast %cst_45 : f32 to vector<16x16xf32>
    %87 = arith.cmpf oeq, %9, %86 : vector<16x16xf32>
    %88 = arith.select %87, %85, %9 : vector<16x16xi1>, vector<16x16xf32>
    %cst_46 = arith.constant dense<0xFF800000> : vector<16xf32>
    %89 = vector.multi_reduction <maximumf>, %88, %cst_46 [1] : vector<16x16xf32> to vector<16xf32>
    %90 = vector.shape_cast %89 : vector<16xf32> to vector<16x1xf32>
    %91 = vector.broadcast %90 : vector<16x1xf32> to vector<16x16xf32>
    %92 = arith.subf %88, %91 : vector<16x16xf32>
    %93 = math.exp %92 : vector<16x16xf32>
    %cst_47 = arith.constant dense<0.000000e+00> : vector<16xf32>
    %94 = vector.multi_reduction <add>, %93, %cst_47 [1] : vector<16x16xf32> to vector<16xf32>
    %95 = vector.shape_cast %94 : vector<16xf32> to vector<16x1xf32>
    %96 = tpu.reciprocal %95 {approx = true} : vector<16x1xf32> -> vector<16x1xf32>
    %97 = vector.broadcast %96 : vector<16x1xf32> to vector<16x16xf32>
    %98 = arith.mulf %93, %97 : vector<16x16xf32>
    %99 = arith.truncf %98 : vector<16x16xf32> to vector<16x16xbf16>
    %cst_48 = arith.constant dense<0.000000e+00> : vector<16x32xf32>
    %100 = tpu.matmul %99, %84, %cst_48 {dimension_numbers = #tpu.dot_dimension_numbers<[1], [0], [0], [1], [0, 0, 1, 1], [], []>} : vector<16x16xbf16>, vector<16x32xbf16>, vector<16x32xf32> -> vector<16x32xf32>
    %c0_49 = arith.constant 0 : index
    %c96_50 = arith.constant 96 : index
    %101 = vector.load %arg17[%c0_49, %c96_50] : memref<32x128xf32, #tpu.memory_space<vmem>>, vector<16x32xf32>
    tpu.vector_store %arg17[%c0_49, %c96_50], %100 {strides = array<i32>} : memref<32x128xf32, #tpu.memory_space<vmem>>, vector<16x32xf32>,
    %c1 = arith.constant 1 : index
    %c0_51 = arith.constant 0 : index
    %c0_52 = arith.constant 0 : index
    %102 = vector.load %arg2[%c1, %c0_51, %c0_52] : memref<2x16x16xf32, #tpu.memory_space<vmem>>, vector<1x16x16xf32>
    %103 = vector.shape_cast %102 : vector<1x16x16xf32> to vector<16x16xf32>
    %c16 = arith.constant 16 : index
    %c0_53 = arith.constant 0 : index
    %104 = vector.load %arg16[%c16, %c0_53] : memref<32x384xf32, #tpu.memory_space<vmem>>, vector<16x32xf32>
    %105 = arith.truncf %104 : vector<16x32xf32> to vector<16x32xbf16>
    %c16_54 = arith.constant 16 : index
    %c128_55 = arith.constant 128 : index
    %106 = vector.load %arg16[%c16_54, %c128_55] : memref<32x384xf32, #tpu.memory_space<vmem>>, vector<16x32xf32>
    %107 = arith.truncf %106 : vector<16x32xf32> to vector<16x32xbf16>
    %c16_56 = arith.constant 16 : index
    %c256_57 = arith.constant 256 : index
    %108 = vector.load %arg16[%c16_56, %c256_57] : memref<32x384xf32, #tpu.memory_space<vmem>>, vector<16x32xf32>
    %109 = arith.truncf %108 : vector<16x32xf32> to vector<16x32xbf16>
    %cst_58 = arith.constant dense<0.000000e+00> : vector<16x16xf32>
    %110 = tpu.matmul %105, %107, %cst_58 {dimension_numbers = #tpu.dot_dimension_numbers<[1], [1], [0], [0], [0, 0, 1, 0], [], []>} : vector<16x32xbf16>, vector<16x32xbf16>, vector<16x16xf32> -> vector<16x16xf32>
    %cst_59 = arith.constant 0.000000e+00 : f32
    %111 = vector.broadcast %cst_59 : f32 to vector<16x16xf32>
    %112 = arith.cmpf oeq, %103, %111 : vector<16x16xf32>
    %113 = arith.select %112, %110, %103 : vector<16x16xi1>, vector<16x16xf32>
    %cst_60 = arith.constant dense<0xFF800000> : vector<16xf32>
    %114 = vector.multi_reduction <maximumf>, %113, %cst_60 [1] : vector<16x16xf32> to vector<16xf32>
    %115 = vector.shape_cast %114 : vector<16xf32> to vector<16x1xf32>
    %116 = vector.broadcast %115 : vector<16x1xf32> to vector<16x16xf32>
    %117 = arith.subf %113, %116 : vector<16x16xf32>
    %118 = math.exp %117 : vector<16x16xf32>
    %cst_61 = arith.constant dense<0.000000e+00> : vector<16xf32>
    %119 = vector.multi_reduction <add>, %118, %cst_61 [1] : vector<16x16xf32> to vector<16xf32>
    %120 = vector.shape_cast %119 : vector<16xf32> to vector<16x1xf32>
    %121 = tpu.reciprocal %120 {approx = true} : vector<16x1xf32> -> vector<16x1xf32>
    %122 = vector.broadcast %121 : vector<16x1xf32> to vector<16x16xf32>
    %123 = arith.mulf %118, %122 : vector<16x16xf32>
    %124 = arith.truncf %123 : vector<16x16xf32> to vector<16x16xbf16>
    %cst_62 = arith.constant dense<0.000000e+00> : vector<16x32xf32>
    %125 = tpu.matmul %124, %109, %cst_62 {dimension_numbers = #tpu.dot_dimension_numbers<[1], [0], [0], [1], [0, 0, 1, 1], [], []>} : vector<16x16xbf16>, vector<16x32xbf16>, vector<16x32xf32> -> vector<16x32xf32>
    %c16_63 = arith.constant 16 : index
    %c0_64 = arith.constant 0 : index
    %126 = vector.load %arg17[%c16_63, %c0_64] : memref<32x128xf32, #tpu.memory_space<vmem>>, vector<16x32xf32>
    tpu.vector_store %arg17[%c16_63, %c0_64], %125 {strides = array<i32>} : memref<32x128xf32, #tpu.memory_space<vmem>>, vector<16x32xf32>,
    %c16_65 = arith.constant 16 : index
    %c32_66 = arith.constant 32 : index
    %127 = vector.load %arg16[%c16_65, %c32_66] : memref<32x384xf32, #tpu.memory_space<vmem>>, vector<16x32xf32>
    %128 = arith.truncf %127 : vector<16x32xf32> to vector<16x32xbf16>
    %c16_67 = arith.constant 16 : index
    %c160_68 = arith.constant 160 : index
    %129 = vector.load %arg16[%c16_67, %c160_68] : memref<32x384xf32, #tpu.memory_space<vmem>>, vector<16x32xf32>
    %130 = arith.truncf %129 : vector<16x32xf32> to vector<16x32xbf16>
    %c16_69 = arith.constant 16 : index
    %c288_70 = arith.constant 288 : index
    %131 = vector.load %arg16[%c16_69, %c288_70] : memref<32x384xf32, #tpu.memory_space<vmem>>, vector<16x32xf32>
    %132 = arith.truncf %131 : vector<16x32xf32> to vector<16x32xbf16>
    %cst_71 = arith.constant dense<0.000000e+00> : vector<16x16xf32>
    %133 = tpu.matmul %128, %130, %cst_71 {dimension_numbers = #tpu.dot_dimension_numbers<[1], [1], [0], [0], [0, 0, 1, 0], [], []>} : vector<16x32xbf16>, vector<16x32xbf16>, vector<16x16xf32> -> vector<16x16xf32>
    %cst_72 = arith.constant 0.000000e+00 : f32
    %134 = vector.broadcast %cst_72 : f32 to vector<16x16xf32>
    %135 = arith.cmpf oeq, %103, %134 : vector<16x16xf32>
    %136 = arith.select %135, %133, %103 : vector<16x16xi1>, vector<16x16xf32>
    %cst_73 = arith.constant dense<0xFF800000> : vector<16xf32>
    %137 = vector.multi_reduction <maximumf>, %136, %cst_73 [1] : vector<16x16xf32> to vector<16xf32>
    %138 = vector.shape_cast %137 : vector<16xf32> to vector<16x1xf32>
    %139 = vector.broadcast %138 : vector<16x1xf32> to vector<16x16xf32>
    %140 = arith.subf %136, %139 : vector<16x16xf32>
    %141 = math.exp %140 : vector<16x16xf32>
    %cst_74 = arith.constant dense<0.000000e+00> : vector<16xf32>
    %142 = vector.multi_reduction <add>, %141, %cst_74 [1] : vector<16x16xf32> to vector<16xf32>
    %143 = vector.shape_cast %142 : vector<16xf32> to vector<16x1xf32>
    %144 = tpu.reciprocal %143 {approx = true} : vector<16x1xf32> -> vector<16x1xf32>
    %145 = vector.broadcast %144 : vector<16x1xf32> to vector<16x16xf32>
    %146 = arith.mulf %141, %145 : vector<16x16xf32>
    %147 = arith.truncf %146 : vector<16x16xf32> to vector<16x16xbf16>
    %cst_75 = arith.constant dense<0.000000e+00> : vector<16x32xf32>
    %148 = tpu.matmul %147, %132, %cst_75 {dimension_numbers = #tpu.dot_dimension_numbers<[1], [0], [0], [1], [0, 0, 1, 1], [], []>} : vector<16x16xbf16>, vector<16x32xbf16>, vector<16x32xf32> -> vector<16x32xf32>
    %c16_76 = arith.constant 16 : index
    %c32_77 = arith.constant 32 : index
    %149 = vector.load %arg17[%c16_76, %c32_77] : memref<32x128xf32, #tpu.memory_space<vmem>>, vector<16x32xf32>
    tpu.vector_store %arg17[%c16_76, %c32_77], %148 {strides = array<i32>} : memref<32x128xf32, #tpu.memory_space<vmem>>, vector<16x32xf32>,
    %c16_78 = arith.constant 16 : index
    %c64_79 = arith.constant 64 : index
    %150 = vector.load %arg16[%c16_78, %c64_79] : memref<32x384xf32, #tpu.memory_space<vmem>>, vector<16x32xf32>
    %151 = arith.truncf %150 : vector<16x32xf32> to vector<16x32xbf16>
    %c16_80 = arith.constant 16 : index
    %c192_81 = arith.constant 192 : index
    %152 = vector.load %arg16[%c16_80, %c192_81] : memref<32x384xf32, #tpu.memory_space<vmem>>, vector<16x32xf32>
    %153 = arith.truncf %152 : vector<16x32xf32> to vector<16x32xbf16>
    %c16_82 = arith.constant 16 : index
    %c320_83 = arith.constant 320 : index
    %154 = vector.load %arg16[%c16_82, %c320_83] : memref<32x384xf32, #tpu.memory_space<vmem>>, vector<16x32xf32>
    %155 = arith.truncf %154 : vector<16x32xf32> to vector<16x32xbf16>
    %cst_84 = arith.constant dense<0.000000e+00> : vector<16x16xf32>
    %156 = tpu.matmul %151, %153, %cst_84 {dimension_numbers = #tpu.dot_dimension_numbers<[1], [1], [0], [0], [0, 0, 1, 0], [], []>} : vector<16x32xbf16>, vector<16x32xbf16>, vector<16x16xf32> -> vector<16x16xf32>
    %cst_85 = arith.constant 0.000000e+00 : f32
    %157 = vector.broadcast %cst_85 : f32 to vector<16x16xf32>
    %158 = arith.cmpf oeq, %103, %157 : vector<16x16xf32>
    %159 = arith.select %158, %156, %103 : vector<16x16xi1>, vector<16x16xf32>
    %cst_86 = arith.constant dense<0xFF800000> : vector<16xf32>
    %160 = vector.multi_reduction <maximumf>, %159, %cst_86 [1] : vector<16x16xf32> to vector<16xf32>
    %161 = vector.shape_cast %160 : vector<16xf32> to vector<16x1xf32>
    %162 = vector.broadcast %161 : vector<16x1xf32> to vector<16x16xf32>
    %163 = arith.subf %159, %162 : vector<16x16xf32>
    %164 = math.exp %163 : vector<16x16xf32>
    %cst_87 = arith.constant dense<0.000000e+00> : vector<16xf32>
    %165 = vector.multi_reduction <add>, %164, %cst_87 [1] : vector<16x16xf32> to vector<16xf32>
    %166 = vector.shape_cast %165 : vector<16xf32> to vector<16x1xf32>
    %167 = tpu.reciprocal %166 {approx = true} : vector<16x1xf32> -> vector<16x1xf32>
    %168 = vector.broadcast %167 : vector<16x1xf32> to vector<16x16xf32>
    %169 = arith.mulf %164, %168 : vector<16x16xf32>
    %170 = arith.truncf %169 : vector<16x16xf32> to vector<16x16xbf16>
    %cst_88 = arith.constant dense<0.000000e+00> : vector<16x32xf32>
    %171 = tpu.matmul %170, %155, %cst_88 {dimension_numbers = #tpu.dot_dimension_numbers<[1], [0], [0], [1], [0, 0, 1, 1], [], []>} : vector<16x16xbf16>, vector<16x32xbf16>, vector<16x32xf32> -> vector<16x32xf32>
    %c16_89 = arith.constant 16 : index
    %c64_90 = arith.constant 64 : index
    %172 = vector.load %arg17[%c16_89, %c64_90] : memref<32x128xf32, #tpu.memory_space<vmem>>, vector<16x32xf32>
    tpu.vector_store %arg17[%c16_89, %c64_90], %171 {strides = array<i32>} : memref<32x128xf32, #tpu.memory_space<vmem>>, vector<16x32xf32>,
    %c16_91 = arith.constant 16 : index
    %c96_92 = arith.constant 96 : index
    %173 = vector.load %arg16[%c16_91, %c96_92] : memref<32x384xf32, #tpu.memory_space<vmem>>, vector<16x32xf32>
    %174 = arith.truncf %173 : vector<16x32xf32> to vector<16x32xbf16>
    %c16_93 = arith.constant 16 : index
    %c224_94 = arith.constant 224 : index
    %175 = vector.load %arg16[%c16_93, %c224_94] : memref<32x384xf32, #tpu.memory_space<vmem>>, vector<16x32xf32>
    %176 = arith.truncf %175 : vector<16x32xf32> to vector<16x32xbf16>
    %c16_95 = arith.constant 16 : index
    %c352_96 = arith.constant 352 : index
    %177 = vector.load %arg16[%c16_95, %c352_96] : memref<32x384xf32, #tpu.memory_space<vmem>>, vector<16x32xf32>
    %178 = arith.truncf %177 : vector<16x32xf32> to vector<16x32xbf16>
    %cst_97 = arith.constant dense<0.000000e+00> : vector<16x16xf32>
    %179 = tpu.matmul %174, %176, %cst_97 {dimension_numbers = #tpu.dot_dimension_numbers<[1], [1], [0], [0], [0, 0, 1, 0], [], []>} : vector<16x32xbf16>, vector<16x32xbf16>, vector<16x16xf32> -> vector<16x16xf32>
    %cst_98 = arith.constant 0.000000e+00 : f32
    %180 = vector.broadcast %cst_98 : f32 to vector<16x16xf32>
    %181 = arith.cmpf oeq, %103, %180 : vector<16x16xf32>
    %182 = arith.select %181, %179, %103 : vector<16x16xi1>, vector<16x16xf32>
    %cst_99 = arith.constant dense<0xFF800000> : vector<16xf32>
    %183 = vector.multi_reduction <maximumf>, %182, %cst_99 [1] : vector<16x16xf32> to vector<16xf32>
    %184 = vector.shape_cast %183 : vector<16xf32> to vector<16x1xf32>
    %185 = vector.broadcast %184 : vector<16x1xf32> to vector<16x16xf32>
    %186 = arith.subf %182, %185 : vector<16x16xf32>
    %187 = math.exp %186 : vector<16x16xf32>
    %cst_100 = arith.constant dense<0.000000e+00> : vector<16xf32>
    %188 = vector.multi_reduction <add>, %187, %cst_100 [1] : vector<16x16xf32> to vector<16xf32>
    %189 = vector.shape_cast %188 : vector<16xf32> to vector<16x1xf32>
    %190 = tpu.reciprocal %189 {approx = true} : vector<16x1xf32> -> vector<16x1xf32>
    %191 = vector.broadcast %190 : vector<16x1xf32> to vector<16x16xf32>
    %192 = arith.mulf %187, %191 : vector<16x16xf32>
    %193 = arith.truncf %192 : vector<16x16xf32> to vector<16x16xbf16>
    %cst_101 = arith.constant dense<0.000000e+00> : vector<16x32xf32>
    %194 = tpu.matmul %193, %178, %cst_101 {dimension_numbers = #tpu.dot_dimension_numbers<[1], [0], [0], [1], [0, 0, 1, 1], [], []>} : vector<16x16xbf16>, vector<16x32xbf16>, vector<16x32xf32> -> vector<16x32xf32>
    %c16_102 = arith.constant 16 : index
    %c96_103 = arith.constant 96 : index
    %195 = vector.load %arg17[%c16_102, %c96_103] : memref<32x128xf32, #tpu.memory_space<vmem>>, vector<16x32xf32>
    tpu.vector_store %arg17[%c16_102, %c96_103], %194 {strides = array<i32>} : memref<32x128xf32, #tpu.memory_space<vmem>>, vector<16x32xf32>,
    %c0_104 = arith.constant 0 : index
    %c0_105 = arith.constant 0 : index
    %196 = vector.load %arg17[%c0_104, %c0_105] : memref<32x128xf32, #tpu.memory_space<vmem>>, vector<32x128xf32>
    %197 = arith.truncf %196 : vector<32x128xf32> to vector<32x128xbf16>
    %c0_106 = arith.constant 0 : index
    %c0_107 = arith.constant 0 : index
    %198 = vector.load %arg5[%c0_106, %c0_107] : memref<128x128xbf16, #tpu.memory_space<vmem>>, vector<128x128xbf16>
    %cst_108 = arith.constant dense<0.000000e+00> : vector<32x128xf32>
    %199 = tpu.matmul %197, %198, %cst_108 {dimension_numbers = #tpu.dot_dimension_numbers<[1], [0], [0], [1], [0, 0, 1, 1], [], []>} : vector<32x128xbf16>, vector<128x128xbf16>, vector<32x128xf32> -> vector<32x128xf32>
    %c0_109 = arith.constant 0 : index
    %c0_110 = arith.constant 0 : index
    %200 = vector.load %arg6[%c0_109, %c0_110] : memref<1x128xf32, #tpu.memory_space<vmem>>, vector<1x128xf32>
    %201 = vector.broadcast %200 : vector<1x128xf32> to vector<32x128xf32>
    %202 = arith.addf %199, %201 : vector<32x128xf32>
    %c0_111 = arith.constant 0 : index
    %c0_112 = arith.constant 0 : index
    %203 = vector.load %arg7[%c0_111, %c0_112] : memref<1x128xf32, #tpu.memory_space<vmem>>, vector<1x128xf32>
    %c0_113 = arith.constant 0 : index
    %c0_114 = arith.constant 0 : index
    %204 = vector.load %arg8[%c0_113, %c0_114] : memref<1x128xf32, #tpu.memory_space<vmem>>, vector<1x128xf32>
    %205 = arith.addf %0, %202 : vector<32x128xf32>
    %cst_115 = arith.constant dense<0.000000e+00> : vector<32xf32>
    %206 = vector.multi_reduction <add>, %205, %cst_115 [1] : vector<32x128xf32> to vector<32xf32>
    %207 = vector.shape_cast %206 : vector<32xf32> to vector<32x1xf32>
    %cst_116 = arith.constant 1.280000e+02 : f32
    %208 = vector.broadcast %cst_116 : f32 to vector<32x1xf32>
    %209 = arith.divf %207, %208 : vector<32x1xf32>
    %210 = vector.broadcast %209 : vector<32x1xf32> to vector<32x128xf32>
    %211 = arith.subf %205, %210 : vector<32x128xf32>
    %212 = arith.mulf %211, %211 : vector<32x128xf32>
    %cst_117 = arith.constant dense<0.000000e+00> : vector<32xf32>
    %213 = vector.multi_reduction <add>, %212, %cst_117 [1] : vector<32x128xf32> to vector<32xf32>
    %214 = vector.shape_cast %213 : vector<32xf32> to vector<32x1xf32>
    %cst_118 = arith.constant 1.270000e+02 : f32
    %215 = vector.broadcast %cst_118 : f32 to vector<32x1xf32>
    %216 = arith.divf %214, %215 : vector<32x1xf32>
    %217 = math.sqrt %216 : vector<32x1xf32>
    %cst_119 = arith.constant 9.99999997E-7 : f32
    %218 = vector.broadcast %cst_119 : f32 to vector<32x1xf32>
    %219 = arith.addf %217, %218 : vector<32x1xf32>
    %220 = tpu.reciprocal %219 {approx = true} : vector<32x1xf32> -> vector<32x1xf32>
    %221 = vector.broadcast %220 : vector<32x1xf32> to vector<32x128xf32>
    %222 = arith.mulf %211, %221 : vector<32x128xf32>
    %223 = vector.broadcast %203 : vector<1x128xf32> to vector<32x128xf32>
    %224 = arith.mulf %223, %222 : vector<32x128xf32>
    %225 = vector.broadcast %204 : vector<1x128xf32> to vector<32x128xf32>
    %226 = arith.addf %224, %225 : vector<32x128xf32>
    %227 = arith.truncf %226 : vector<32x128xf32> to vector<32x128xbf16>
    %c0_120 = arith.constant 0 : index
    %c0_121 = arith.constant 0 : index
    %228 = vector.load %arg9[%c0_120, %c0_121] : memref<128x2048xbf16, #tpu.memory_space<vmem>>, vector<128x2048xbf16>
    %cst_122 = arith.constant dense<0.000000e+00> : vector<32x2048xf32>
    %229 = tpu.matmul %227, %228, %cst_122 {dimension_numbers = #tpu.dot_dimension_numbers<[1], [0], [0], [1], [0, 0, 1, 1], [], []>} : vector<32x128xbf16>, vector<128x2048xbf16>, vector<32x2048xf32> -> vector<32x2048xf32>
    %c0_123 = arith.constant 0 : index
    %c0_124 = arith.constant 0 : index
    %230 = vector.load %arg10[%c0_123, %c0_124] : memref<1x2048xf32, #tpu.memory_space<vmem>>, vector<1x2048xf32>
    %231 = vector.broadcast %230 : vector<1x2048xf32> to vector<32x2048xf32>
    %232 = arith.addf %229, %231 : vector<32x2048xf32>
    %cst_125 = arith.constant 0.000000e+00 : f32
    %233 = vector.broadcast %cst_125 : f32 to vector<32x2048xf32>
    %234 = arith.maximumf %232, %233 : vector<32x2048xf32>
    %235 = arith.truncf %234 : vector<32x2048xf32> to vector<32x2048xbf16>
    %c0_126 = arith.constant 0 : index
    %c0_127 = arith.constant 0 : index
    %236 = vector.load %arg11[%c0_126, %c0_127] : memref<2048x128xbf16, #tpu.memory_space<vmem>>, vector<2048x128xbf16>
    %cst_128 = arith.constant dense<0.000000e+00> : vector<32x128xf32>
    %237 = tpu.matmul %235, %236, %cst_128 {dimension_numbers = #tpu.dot_dimension_numbers<[1], [0], [0], [1], [0, 0, 1, 1], [], []>} : vector<32x2048xbf16>, vector<2048x128xbf16>, vector<32x128xf32> -> vector<32x128xf32>
    %c0_129 = arith.constant 0 : index
    %c0_130 = arith.constant 0 : index
    %238 = vector.load %arg12[%c0_129, %c0_130] : memref<1x128xf32, #tpu.memory_space<vmem>>, vector<1x128xf32>
    %239 = vector.broadcast %238 : vector<1x128xf32> to vector<32x128xf32>
    %240 = arith.addf %237, %239 : vector<32x128xf32>
    %c0_131 = arith.constant 0 : index
    %c0_132 = arith.constant 0 : index
    %241 = vector.load %arg13[%c0_131, %c0_132] : memref<1x128xf32, #tpu.memory_space<vmem>>, vector<1x128xf32>
    %c0_133 = arith.constant 0 : index
    %c0_134 = arith.constant 0 : index
    %242 = vector.load %arg14[%c0_133, %c0_134] : memref<1x128xf32, #tpu.memory_space<vmem>>, vector<1x128xf32>
    %243 = arith.addf %226, %240 : vector<32x128xf32>
    %cst_135 = arith.constant dense<0.000000e+00> : vector<32xf32>
    %244 = vector.multi_reduction <add>, %243, %cst_135 [1] : vector<32x128xf32> to vector<32xf32>
    %245 = vector.shape_cast %244 : vector<32xf32> to vector<32x1xf32>
    %cst_136 = arith.constant 1.280000e+02 : f32
    %246 = vector.broadcast %cst_136 : f32 to vector<32x1xf32>
    %247 = arith.divf %245, %246 : vector<32x1xf32>
    %248 = vector.broadcast %247 : vector<32x1xf32> to vector<32x128xf32>
    %249 = arith.subf %243, %248 : vector<32x128xf32>
    %250 = arith.mulf %249, %249 : vector<32x128xf32>
    %cst_137 = arith.constant dense<0.000000e+00> : vector<32xf32>
    %251 = vector.multi_reduction <add>, %250, %cst_137 [1] : vector<32x128xf32> to vector<32xf32>
    %252 = vector.shape_cast %251 : vector<32xf32> to vector<32x1xf32>
    %cst_138 = arith.constant 1.270000e+02 : f32
    %253 = vector.broadcast %cst_138 : f32 to vector<32x1xf32>
    %254 = arith.divf %252, %253 : vector<32x1xf32>
    %255 = math.sqrt %254 : vector<32x1xf32>
    %cst_139 = arith.constant 9.99999997E-7 : f32
    %256 = vector.broadcast %cst_139 : f32 to vector<32x1xf32>
    %257 = arith.addf %255, %256 : vector<32x1xf32>
    %258 = tpu.reciprocal %257 {approx = true} : vector<32x1xf32> -> vector<32x1xf32>
    %259 = vector.broadcast %258 : vector<32x1xf32> to vector<32x128xf32>
    %260 = arith.mulf %249, %259 : vector<32x128xf32>
    %261 = vector.broadcast %241 : vector<1x128xf32> to vector<32x128xf32>
    %262 = arith.mulf %261, %260 : vector<32x128xf32>
    %263 = vector.broadcast %242 : vector<1x128xf32> to vector<32x128xf32>
    %264 = arith.addf %262, %263 : vector<32x128xf32>
    %c0_140 = arith.constant 0 : index
    %c0_141 = arith.constant 0 : index
    %265 = vector.load %arg15[%c0_140, %c0_141] : memref<32x128xf32, #tpu.memory_space<vmem>>, vector<32x128xf32>
    tpu.vector_store %arg15[%c0_140, %c0_141], %264 {strides = array<i32>} : memref<32x128xf32, #tpu.memory_space<vmem>>, vector<32x128xf32>,
    return
  }
  func.func @transform_0(%arg0: i32) -> (i32, i32) {
    %c0_i32 = arith.constant 0 : i32
    %c0_i32_0 = arith.constant 0 : i32
    return %arg0, %c0_i32 : i32, i32
  }
  func.func @transform_1(%arg0: i32) -> (i32, i32, i32) {
    %c0_i32 = arith.constant 0 : i32
    %c0_i32_0 = arith.constant 0 : i32
    %c0_i32_1 = arith.constant 0 : i32
    return %arg0, %c0_i32, %c0_i32_0 : i32, i32, i32
  }
  func.func @transform_2(%arg0: i32) -> (i32, i32) {
    %c0_i32 = arith.constant 0 : i32
    %c0_i32_0 = arith.constant 0 : i32
    %c0_i32_1 = arith.constant 0 : i32
    return %c0_i32, %c0_i32_0 : i32, i32
  }
  func.func @transform_3(%arg0: i32) -> (i32, i32) {
    %c0_i32 = arith.constant 0 : i32
    %c0_i32_0 = arith.constant 0 : i32
    %c0_i32_1 = arith.constant 0 : i32
    return %c0_i32, %c0_i32_0 : i32, i32
  }
  func.func @transform_4(%arg0: i32) -> (i32, i32) {
    %c0_i32 = arith.constant 0 : i32
    %c0_i32_0 = arith.constant 0 : i32
    %c0_i32_1 = arith.constant 0 : i32
    return %c0_i32, %c0_i32_0 : i32, i32
  }
  func.func @transform_5(%arg0: i32) -> (i32, i32) {
    %c0_i32 = arith.constant 0 : i32
    %c0_i32_0 = arith.constant 0 : i32
    %c0_i32_1 = arith.constant 0 : i32
    return %c0_i32, %c0_i32_0 : i32, i32
  }
  func.func @transform_6(%arg0: i32) -> (i32, i32) {
    %c0_i32 = arith.constant 0 : i32
    %c0_i32_0 = arith.constant 0 : i32
    %c0_i32_1 = arith.constant 0 : i32
    return %c0_i32, %c0_i32_0 : i32, i32
  }
  func.func @transform_7(%arg0: i32) -> (i32, i32) {
    %c0_i32 = arith.constant 0 : i32
    %c0_i32_0 = arith.constant 0 : i32
    %c0_i32_1 = arith.constant 0 : i32
    return %c0_i32, %c0_i32_0 : i32, i32
  }
  func.func @transform_8(%arg0: i32) -> (i32, i32) {
    %c0_i32 = arith.constant 0 : i32
    %c0_i32_0 = arith.constant 0 : i32
    %c0_i32_1 = arith.constant 0 : i32
    return %c0_i32, %c0_i32_0 : i32, i32
  }
  func.func @transform_9(%arg0: i32) -> (i32, i32) {
    %c0_i32 = arith.constant 0 : i32
    %c0_i32_0 = arith.constant 0 : i32
    %c0_i32_1 = arith.constant 0 : i32
    return %c0_i32, %c0_i32_0 : i32, i32
  }
  func.func @transform_10(%arg0: i32) -> (i32, i32) {
    %c0_i32 = arith.constant 0 : i32
    %c0_i32_0 = arith.constant 0 : i32
    %c0_i32_1 = arith.constant 0 : i32
    return %c0_i32, %c0_i32_0 : i32, i32
  }
  func.func @transform_11(%arg0: i32) -> (i32, i32) {
    %c0_i32 = arith.constant 0 : i32
    %c0_i32_0 = arith.constant 0 : i32
    %c0_i32_1 = arith.constant 0 : i32
    return %c0_i32, %c0_i32_0 : i32, i32
  }
  func.func @transform_12(%arg0: i32) -> (i32, i32) {
    %c0_i32 = arith.constant 0 : i32
    %c0_i32_0 = arith.constant 0 : i32
    %c0_i32_1 = arith.constant 0 : i32
    return %c0_i32, %c0_i32_0 : i32, i32
  }
  func.func @transform_13(%arg0: i32) -> (i32, i32) {
    %c0_i32 = arith.constant 0 : i32
    %c0_i32_0 = arith.constant 0 : i32
    %c0_i32_1 = arith.constant 0 : i32
    return %c0_i32, %c0_i32_0 : i32, i32
  }
  func.func @transform_14(%arg0: i32) -> (i32, i32) {
    %c0_i32 = arith.constant 0 : i32
    %c0_i32_0 = arith.constant 0 : i32
    return %arg0, %c0_i32 : i32, i32
  }
}

</mosaic_0001>

<bundles_post_ra>
// kernel: tpu_custom_call.1
= control target key start
LH: loop header
LB: loop body
LE: loop exit
PB: predicated region body
PF: predicated region fallthrough
CT: control target
= control target key end

     0   :  { %s7914_s0 = inlined_call_operand.hbm [shape: f32[64,128], index: 0, kind: input, shape index: {}]   ;;  %s7915_s1 = inlined_call_operand.hbm [shape: f32[4,16,16], index: 1, kind: input, shape index: {}]   ;;  %s7916_s2 = inlined_call_operand.hbm [shape: bf16[128,384], index: 2, kind: input, shape index: {}]   ;;  %s7917_s3 = inlined_call_operand.hbm [shape: f32[1,384], index: 3, kind: input, shape index: {}]   ;;  %s7918_s4 = inlined_call_operand.hbm [shape: bf16[128,128], index: 4, kind: input, shape index: {}]   ;;  %s7919_s5 = inlined_call_operand.hbm [shape: f32[1,128], index: 5, kind: input, shape index: {}]   ;;  %s7920_s6 = inlined_call_operand.hbm [shape: f32[1,128], index: 6, kind: input, shape index: {}]   ;;  %s7921_s7 = inlined_call_operand.hbm [shape: f32[1,128], index: 7, kind: input, shape index: {}]   ;;  %s7922_s8 = inlined_call_operand.hbm [shape: bf16[128,2048], index: 8, kind: input, shape index: {}]   ;;  %s7923_s9 = inlined_call_operand.vmem [shape: f32[1,2048], index: 9, kind: input, shape index: {}]   ;;  %s7924_s10 = inlined_call_operand.hbm [shape: bf16[2048,128], index: 10, kind: input, shape index: {}]   ;;  %s7925_s11 = inlined_call_operand.vmem [shape: f32[1,128], index: 11, kind: input, shape index: {}]   ;;  %s7926_s12 = inlined_call_operand.vmem [shape: f32[1,128], index: 12, kind: input, shape index: {}]   ;;  %s7927_s13 = inlined_call_operand.vmem [shape: f32[1,128], index: 13, kind: input, shape index: {}]   ;;  %s7928_s14 = inlined_call_operand.hbm [shape: f32[64,128], index: 14, kind: output, shape index: {}]  }
   0x1   :  { %7935 = sst [smem:[#allocation31_spill]] %s7914_s0 }
   0x2   :  { %7936 = sst [smem:[#allocation32_spill]] %s7916_s2 }
   0x3   :  { %7937 = sst [smem:[#allocation33_spill]] %s7917_s3 }
   0x4   :  { %7938 = sst [smem:[#allocation34_spill]] %s7918_s4 }
   0x5   :  { %7939 = sst [smem:[#allocation35_spill]] %s7919_s5 }
   0x6   :  { %7940 = sst [smem:[#allocation36_spill]] %s7920_s6 }
   0x7   :  { %7941 = sst [smem:[#allocation37_spill]] %s7921_s7 }
   0x8   :  { %7942 = sst [smem:[#allocation38_spill]] %s7922_s8 }
   0x9   :  { %7943 = sst [smem:[#allocation39_spill]] %s7926_s12 }
   0xa   :  { %7944 = sst [smem:[#allocation40_spill]] %s7927_s13 }
   0xb   :  { %7945 = sst [smem:[#allocation41_spill]] %s7928_s14 }
   0xc   :  { %19 = vsyncpa [#allocation5], 0 }
   0xd   :  { %21 = vsyncpa [#allocation5 + $0x1], 0 }
   0xe   :  { %22 = vsyncpa [#allocation8], 0 }
   0xf   :  { %24 = vsyncpa [#allocation8 + $0x1], 0 }
  0x10   :  { %25 = vsyncpa [#allocation11], 0 }
  0x11   :  { %26 = vsyncpa [#allocation14], 0 }
  0x12   :  { %27 = vsyncpa [#allocation17], 0 }
  0x13   :  { %28 = vsyncpa [#allocation20], 0 }
  0x14   :  { %29 = vsyncpa [#allocation6], 0 }
  0x15   :  { %31 = vsyncpa [#allocation6 + $0x1], 0  ;;  %s7018_s29 = smov 0   ;;  %s7020_s30 = smov 0  }
  0x16   :  { %s7022_s15 = smov 0   ;;  %s7024_s16 = smov 0  }
  0x17 LB: > { %s6917_s17 = smov [#allocation9]   ;;  %s7039_s19 = sadd.s32 4294967295, %s6915_s16   ;;  %s6915_s16 = sphi %s7024_s16, %s7985_s16   ;;  %s6911_s15 = sphi %s7022_s15, %s7984_s15   ;;  %s6907_s30 = sphi %s7020_s30, %s7983_s30   ;;  %s6903_s29 = sphi %s7018_s29, %s7982_s29  }
  0x18   : > { %s384_s18 = sshll.u32 %s6917_s17, 4  ;;  %p5386_p0 = scmp.ge.s32.totalorder %s6915_s16, 1  ;;  %s385_s18 = int_to_ptr.vmem [resolvable:$true] %s384_s18 }
  0x19   : > { %p7930_p1 = scmp.eq.s32.totalorder %s7039_s19, 0  ;;  %p372_p2 = scmp.lt.s32.totalorder %s6915_s16, 3 }
  0x1a   : > { %s6918_s21 = smov [#allocation10]   ;;  %s6919_s24 = smov [#allocation13]  }
  0x1b   : > { %p7044_p3 = pnand %p5386_p0, %p372_p2  ;;  %s398_s22 = sshll.u32 %s6918_s21, 4  ;;  %s399_s22 = int_to_ptr.vmem [resolvable:$true] %s398_s22 }
  0x1c   : > { %s422_s25 = sshll.u32 %s6919_s24, 4  ;;  %s6574_s27 = scalar_lea.vmem %s385_s18, 3072  ;;  %s7057_s25 = int_to_ptr.vmem [resolvable:$true] %s422_s25 }
  0x1d   : > { %s7946_s20 = scalar_select %p7044_p3, 1, 0 }
  0x1e   : > { %p6186_p5 = pneg %p7044_p3  ;;  %p6575_p8 = scmp.ne.s32.totalorder %s385_s18, %s6574_s27 }
  0x1f   : > { %p6582_p11 = scmp.lt.s32.totalorder %s385_s18, %s385_s18  ;;  %p6583_p12 = scmp.lt.s32.totalorder %s6574_s27, %s6574_s27 }
  0x20   : > { %p7053_p6 = pnand %p6186_p5, %p7930_p1 }
  0x21   : > { %p6584_p13 = por %p6583_p12, %p6582_p11 }
  0x22   : > { %p7061_p7 = pneg %p7053_p6 }
  0x24   : > { %p6577_p9 = pnand %p6575_p8, %p7061_p7 }
  0x26   : > { %p6578_p10 = pneg %p6577_p9 }
  0x28   : > { %p6585_p0 = pnand %p6584_p13, %p6578_p10 }
  0x2a   : > { %6588 = shalt.err (!%p6585_p0)
}
  0x2b   : > { %s6920_s28 = smov 192   ;;  %s6921_s17 = smov 12  }
  0x2c   : > { %s7949_s2 = sld [smem:[#allocation32_spill]]  ;;  %s6600_s14 = scalar_lea.vmem %s399_s22, 48 }
  0x2d   : > { %p6601_p2 = scmp.ne.s32.totalorder %s399_s22, %s6600_s14  ;;  %s6607_s13 = scalar_lea.vmem %s399_s22, 64 }
  0x2e   : > { %p6608_p9 = scmp.lt.s32.totalorder %s399_s22, %s399_s22  ;;  %p6609_p4 = scmp.lt.s32.totalorder %s6607_s13, %s6600_s14 }
  0x2f   : > { %p6603_p5 = pnand %p6601_p2, %p7061_p7 }
  0x30   : > { %p6610_p11 = por %p6609_p4, %p6608_p9 }
  0x31   : > { %p6604_p8 = pneg %p6603_p5 }
  0x32   : > { %6189 = dma.hbm_to_vmem [thread:$0]  (!%p7053_p6), %s7949_s2, 3072, %s385_s18, [#allocation8], %s6920_s28, %s6920_s28, %s6921_s17  }
  0x33   : > { %p6611_p10 = pnand %p6610_p11, %p6604_p8 }
  0x35   : > { %6614 = shalt.err (!%p6611_p10)
}
  0x36   : > { %s7950_s3 = sld [smem:[#allocation33_spill]]  ;;  %s6626_s18 = scalar_lea.vmem %s7057_s25, 16 }
  0x37   : > { %p6627_p12 = scmp.ne.s32.totalorder %s7057_s25, %s6626_s18  ;;  %s6633_s13 = scalar_lea.vmem %s7057_s25, 32 }
  0x38   : > { %p6634_p4 = scmp.lt.s32.totalorder %s7057_s25, %s7057_s25  ;;  %p6635_p2 = scmp.lt.s32.totalorder %s6633_s13, %s6626_s18 }
  0x39   : > { %p6629_p13 = pnand %p6627_p12, %p7061_p7 }
  0x3a   : > { %p6636_p5 = por %p6635_p2, %p6634_p4 }
  0x3b   : > { %p6630_p0 = pneg %p6629_p13 }
  0x3c   : > { %6192 = dma.hbm_to_vmem [thread:$0]  (!%p7053_p6), %s7950_s3, 48, %s399_s22, [#allocation11]  }
  0x3d   : > { %p6637_p8 = pnand %p6636_p5, %p6630_p0 }
  0x3f   : > { %6640 = shalt.err (!%p6637_p8)
}
  0x40   : > { %s7951_s5 = sld [smem:[#allocation35_spill]]  ;;  %s6922_s22 = smov [#allocation16]  }
  0x41   : > { %s444_s28 = sshll.u32 %s6922_s22, 4  ;;  %s6923_s17 = smov [#allocation12]   ;;  %s445_s28 = int_to_ptr.vmem [resolvable:$true] %s444_s28 }
  0x42   : > { %s408_s21 = sshll.u32 %s6923_s17, 4  ;;  %s6652_s24 = scalar_lea.vmem %s445_s28, 16  ;;  %s409_s21 = int_to_ptr.vmem [resolvable:$true] %s408_s21 }
  0x43   : > { %p6653_p9 = scmp.ne.s32.totalorder %s445_s28, %s6652_s24  ;;  %s6659_s27 = scalar_lea.vmem %s445_s28, 32 }
  0x44   : > { %p6660_p12 = scmp.lt.s32.totalorder %s445_s28, %s445_s28  ;;  %p6661_p13 = scmp.lt.s32.totalorder %s6659_s27, %s6652_s24 }
  0x45   : > { %p6655_p11 = pnand %p6653_p9, %p7061_p7 }
  0x46   : > { %6198 = dma.hbm_to_vmem [thread:$0]  (!%p7053_p6), %s7951_s5, 16, %s7057_s25, [#allocation14]  }
  0x47   : > { %p6656_p10 = pneg %p6655_p11  ;;  %p6662_p0 = por %p6661_p13, %p6660_p12 }
  0x49   : > { %p6663_p4 = pnand %p6662_p0, %p6656_p10 }
  0x4b   : > { %6666 = shalt.err (!%p6663_p4)
}
  0x4c   : > { %s7952_s7 = sld [smem:[#allocation37_spill]]  ;;  %s6678_s13 = scalar_lea.vmem %s409_s21, 1024 }
  0x4d   : > { %p6679_p2 = scmp.ne.s32.totalorder %s409_s21, %s6678_s13  ;;  %p6686_p9 = scmp.lt.s32.totalorder %s409_s21, %s409_s21 }
  0x4e   : > { %p6687_p11 = scmp.lt.s32.totalorder %s6678_s13, %s6678_s13 }
  0x4f   : > { %p6681_p5 = pnand %p6679_p2, %p7061_p7 }
  0x50   : > { %p6688_p1 = por %p6687_p11, %p6686_p9 }
  0x51   : > { %p6682_p8 = pneg %p6681_p5 }
  0x52   : > { %6204 = dma.hbm_to_vmem [thread:$0]  (!%p7053_p6), %s7952_s7, 16, %s445_s28, [#allocation17]  }
  0x53   : > { %p6689_p3 = pnand %p6688_p1, %p6682_p8 }
  0x55   : > { %6692 = shalt.err (!%p6689_p3)
}
  0x56   : > { %s6924_s12 = smov 64   ;;  %s6925_s14 = smov 4  }
  0x57   : > { %s7953_s4 = sld [smem:[#allocation34_spill]]  ;;  %s6926_s17 = smov [#allocation15]  }
  0x58   : > { %s433_s24 = sshll.u32 %s6926_s17, 4  ;;  %s6927_s27 = smov [#allocation18]   ;;  %s434_s24 = int_to_ptr.vmem [resolvable:$true] %s433_s24 }
  0x59   : > { %s454_s18 = sshll.u32 %s6927_s27, 4  ;;  %s6704_s25 = scalar_lea.vmem %s434_s24, 16  ;;  %s455_s18 = int_to_ptr.vmem [resolvable:$true] %s454_s18 }
  0x5a   : > { %p6705_p1 = scmp.ne.s32.totalorder %s434_s24, %s6704_s25  ;;  %s6711_s13 = scalar_lea.vmem %s434_s24, 32 }
  0x5b   : > { %p6712_p12 = scmp.lt.s32.totalorder %s434_s24, %s434_s24  ;;  %p6713_p13 = scmp.lt.s32.totalorder %s6711_s13, %s6704_s25 }
  0x5c   : > { %p6707_p3 = pnand %p6705_p1, %p7061_p7 }
  0x5d   : > { %6195 = dma.hbm_to_vmem [thread:$0]  (!%p7053_p6), %s7953_s4, 1024, %s409_s21, [#allocation11], %s6924_s12, %s6924_s12, %s6925_s14  }
  0x5e   : > { %p6708_p10 = pneg %p6707_p3  ;;  %p6714_p0 = por %p6713_p13, %p6712_p12 }
  0x60   : > { %p6715_p4 = pnand %p6714_p0, %p6708_p10 }
  0x62   : > { %6718 = shalt.err (!%p6715_p4)
}
  0x63   : > { %s7954_s6 = sld [smem:[#allocation36_spill]]  ;;  %s6730_s28 = scalar_lea.vmem %s455_s18, 16384 }
  0x64   : > { %p6731_p2 = scmp.ne.s32.totalorder %s455_s18, %s6730_s28  ;;  %p6738_p9 = scmp.lt.s32.totalorder %s455_s18, %s455_s18 }
  0x65   : > { %p6739_p11 = scmp.lt.s32.totalorder %s6730_s28, %s6730_s28 }
  0x66   : > { %p6733_p5 = pnand %p6731_p2, %p7061_p7 }
  0x67   : > { %p6740_p1 = por %p6739_p11, %p6738_p9 }
  0x68   : > { %p6734_p8 = pneg %p6733_p5 }
  0x69   : > { %6201 = dma.hbm_to_vmem [thread:$0]  (!%p7053_p6), %s7954_s6, 16, %s434_s24, [#allocation14]  }
  0x6a   : > { %p6741_p3 = pnand %p6740_p1, %p6734_p8 }
  0x6c   : > { %6744 = shalt.err (!%p6741_p3)
}
  0x6d   : > { %s6928_s17 = smov 1024   ;;  %s7955_s8 = sld [smem:[#allocation38_spill]] }
  0x6e   : > { %s6929_s24 = smov [#allocation19]  }
  0x6f   : > { %s470_s13 = sshll.u32 %s6929_s24, 4  ;;  %s471_s13 = int_to_ptr.vmem [resolvable:$true] %s470_s13 }
  0x70   : > { %s6756_s22 = scalar_lea.vmem %s471_s13, 16384  ;;  %p6764_p0 = scmp.lt.s32.totalorder %s471_s13, %s471_s13 }
  0x71   : > { %p6757_p10 = scmp.ne.s32.totalorder %s471_s13, %s6756_s22  ;;  %p6765_p4 = scmp.lt.s32.totalorder %s6756_s22, %s6756_s22 }
  0x73   : > { %6207 = dma.hbm_to_vmem [thread:$0]  (!%p7053_p6), %s7955_s8, 16384, %s455_s18, [#allocation17], %s6928_s17, %s6928_s17, %s6924_s12  }
  0x74   : > { %p6759_p12 = pnand %p6757_p10, %p7061_p7  ;;  %p6766_p2 = por %p6765_p4, %p6764_p0 }
  0x76   : > { %p6760_p13 = pneg %p6759_p12 }
  0x78   : > { %p6767_p5 = pnand %p6766_p2, %p6760_p13 }
  0x7a   : > { %6770 = shalt.err (!%p6767_p5)
}
  0x7b   : > { %6210 = dma.hbm_to_vmem [thread:$0]  (!%p7053_p6), %s7924_s10, 16384, %s471_s13, [#allocation20], %s6924_s12, %s6924_s12, %s6925_s14  }
  0x7c   : > { %s5385_s23 = sadd.s32 4294967294, %s6915_s16   ;;  %s7136_s26 = sadd.s32 1, %s6915_s16  }
  0x7d   : > { %s44_s28 = sadd.s32 1, %s6911_s15  ;;  %s41_s17 = ssub.s32 %s6915_s16, %s7136_s26 }
  0x7e   : > { %p51_p7 = scmp.ne.s32.totalorder %s6911_s15, %s6907_s30  ;;  %p42_p8 = scmp.eq.s32.totalorder %s41_s17, 0 }
  0x7f   : > { %p52_p9 = scmp.eq.s32.totalorder %s6915_s16, 0  ;;  %p57_p11 = scmp.ne.s32.totalorder %s6907_s30, %s6903_s29 }
  0x80   : > { %p359_p1 = scmp.eq.s32.totalorder %s7039_s19, 1  ;;  %p7956_p10 = scmp.eq.s32.totalorder %s7039_s19, 0 }
  0x81   : > { %s7148_s27 = scalar_select %p42_p8, %s6911_s15, %s44_s28  }
  0x82   : > { %p53_p3 = por %p52_p9, %p51_p7  ;;  %p7152_p12 = por %p7956_p10, %p57_p11 }
  0x83   : > { %p7156_p6 = por %p359_p1, %p51_p7  ;;  %p365_p13 = scmp.eq.s32.totalorder %s5385_s23, 1 }
  0x84   : > { %p6230_p0 = scmp.lt.s32.totalorder %s6915_s16, 2  ;;  %s493_s25 = sand.u32 1, %s6911_s15  }
  0x85   : > { %s7958_s14 = scalar_select %p7156_p6, 1, 0 }
  0x86   : > { %p7162_p4 = por %p365_p13, %p57_p11  ;;  %s7166_s13 = sshll.u32 %s493_s25, 5 }
  0x87   : > { %s7932_s22 = sshll.u32 %s6915_s16, 9  ;;  %s7960_s0 = sld [smem:[#allocation31_spill]] }
  0x88   : > { %s7959_s24 = scalar_select %p7162_p4, 1, 0 }
  0x89   : > { %s497_s23 = scalar_lea.vmem [#allocation4], %s7166_s13  ;;  %p7177_p2 = pnand %p6230_p0, %p53_p3 }
  0x8a   : > { %s504_s17 = sshll.u32 %s497_s23, 4  ;;  %s7183_s3 = scalar_lea.sflag [#allocation5], %s493_s25  ;;  %s7181_s17 = int_to_ptr.vmem [resolvable:$true] %s504_s17 }
  0x8b   : > { %p6773_p7 = pneg %p7177_p2 }
  0x8d   : > { %s7174_s28 = scalar_lea.hbm %s7960_s0, %s7932_s22  ;;  %s6776_s23 = scalar_lea.hbm %s7960_s0, 1024 }
  0x8e   : > { %s6771_s4 = scalar_lea.hbm %s7174_s28, 512  ;;  %p6777_p11 = scmp.lt.s32.totalorder %s7174_s28, %s7960_s0 }
  0x8f   : > { %p6772_p5 = scmp.ne.s32.totalorder %s7174_s28, %s6771_s4  ;;  %p6778_p1 = scmp.lt.s32.totalorder %s6776_s23, %s6771_s4 }
  0x91   : > { %p6774_p8 = pnand %p6773_p7, %p6772_p5  ;;  %p6779_p3 = por %p6778_p1, %p6777_p11 }
  0x93   : > { %p6775_p9 = pneg %p6774_p8 }
  0x95   : > { %p6780_p10 = pnand %p6779_p3, %p6775_p9 }
  0x97   : > { %6783 = shalt.err (!%p6780_p10)
}
  0x98   : > { %s6784_s25 = scalar_lea.vmem %s7181_s17, 512  ;;  %s6930_s21 = smov [#allocation4]  }
  0x99   : > { %p6785_p13 = scmp.ne.s32.totalorder %s7181_s17, %s6784_s25  ;;  %s6789_s18 = sshll.u32 %s6930_s21, 4  ;;  %s6790_s18 = int_to_ptr.vmem [resolvable:$false] %s6789_s18 }
  0x9a   : > { %s6791_s6 = scalar_lea.vmem %s6790_s18, 1024  ;;  %p6792_p8 = scmp.lt.s32.totalorder %s7181_s17, %s6790_s18 }
  0x9b   : > { %p6787_p0 = pnand %p6785_p13, %p6773_p7  ;;  %p6793_p4 = scmp.lt.s32.totalorder %s6791_s6, %s6784_s25 }
  0x9d   : > { %p6788_p5 = pneg %p6787_p0  ;;  %p6794_p6 = por %p6793_p4, %p6792_p8 }
  0x9f   : > { %p6795_p11 = pnand %p6794_p6, %p6788_p5 }
  0xa1   : > { %6798 = shalt.err (!%p6795_p11)
}
  0xa2   : > { %s6931_s4 = smov 128   ;;  %s6932_s5 = smov 8  }
  0xa3   : > { %6214 = dma.hbm_to_vmem [thread:$0]  (!%p7177_p2), %s7174_s28, 512, %s7181_s17, %s7183_s3, %s6931_s4, %s6931_s4, %s6932_s5  }
  0xa4   : > { %s7962_s22 = sshll.u32 %s6915_s16, 9  ;;  %s518_s21 = scalar_lea.vmem [#allocation7], %s7166_s13 }
  0xa5   : > { %s7218_s25 = scalar_lea.hbm %s7915_s1, %s7962_s22  ;;  %s526_s18 = sshll.u32 %s518_s21, 4  ;;  %s7222_s18 = int_to_ptr.vmem [resolvable:$true] %s526_s18 }
  0xa6   : > { %s514_s0 = sand.u32 1, %s6915_s16   ;;  %s6799_s8 = scalar_lea.hbm %s7218_s25, 512 }
  0xa7   : > { %s515_s7 = scalar_lea.sflag [#allocation8], %s514_s0  ;;  %p6800_p6 = scmp.ne.s32.totalorder %s7218_s25, %s6799_s8 }
  0xa8   : > { %s6804_s17 = scalar_lea.hbm %s7915_s1, 1024  ;;  %p6805_p1 = scmp.lt.s32.totalorder %s7218_s25, %s7915_s1 }
  0xa9   : > { %p6802_p4 = pnand %p6800_p6, %p6773_p7  ;;  %p6806_p3 = scmp.lt.s32.totalorder %s6804_s17, %s6799_s8 }
  0xab   : > { %p6803_p9 = pneg %p6802_p4  ;;  %p6807_p10 = por %p6806_p3, %p6805_p1 }
  0xad   : > { %p6808_p13 = pnand %p6807_p10, %p6803_p9 }
  0xaf   : > { %6811 = shalt.err (!%p6808_p13)
}
  0xb0   : > { %s6812_s0 = scalar_lea.vmem %s7222_s18, 512  ;;  %s6933_s13 = smov [#allocation7]  }
  0xb1   : > { %p6813_p0 = scmp.ne.s32.totalorder %s7222_s18, %s6812_s0  ;;  %s6817_s23 = sshll.u32 %s6933_s13, 4  ;;  %s6818_s23 = int_to_ptr.vmem [resolvable:$false] %s6817_s23 }
  0xb2   : > { %s6819_s21 = scalar_lea.vmem %s6818_s23, 1024  ;;  %p6820_p11 = scmp.lt.s32.totalorder %s7222_s18, %s6818_s23 }
  0xb3   : > { %p6815_p5 = pnand %p6813_p0, %p6773_p7  ;;  %p6821_p6 = scmp.lt.s32.totalorder %s6819_s21, %s6812_s0 }
  0xb5   : > { %p6816_p8 = pneg %p6815_p5  ;;  %p6822_p4 = por %p6821_p6, %p6820_p11 }
  0xb7   : > { %p6823_p1 = pnand %p6822_p4, %p6816_p8 }
  0xb9   : > { %6826 = shalt.err (!%p6823_p1)
}
  0xba   : > { %6217 = dma.hbm_to_vmem [thread:$0]  (!%p7177_p2), %s7218_s25, 512, %s7222_s18, %s515_s7, %s6931_s4, %s6931_s4, %s6932_s5  }
  0xbb   : > { %p7963_p7 = scmp.ne.s32.totalorder %s7946_s20, 0 }
  0xbd   : > { %538 = sbr.rel (%p7963_p7) target bundleno = 2921 (0xb69), region = 76 }
  0xc2   : > { %s7252_s8 = sand.u32 1, %s6907_s30  }
  0xc3   : > { %s7255_s3 = sshll.u32 %s7252_s8, 5  ;;  %s541_s28 = scalar_lea.sflag [#allocation5], %s7252_s8 }
  0xc4   : > { %s7259_s2 = scalar_lea.vmem [#allocation4], %s7255_s3 }
  0xc5   : > { %6870 = dma.done.wait (%p7152_p12), %s541_s28, 512  }
  0xc6   : > { %6872 = vsyncadd (%p7152_p12), %s541_s28, 4294966784  ;;  %s549_s7 = sand.u32 1, %s7039_s19   ;;  %s7267_s4 = scalar_lea.vmem [#allocation7], %s7255_s3 }
  0xc7   : > { %s550_s20 = scalar_lea.sflag [#allocation8], %s549_s7 }
  0xc8   : > { %6874 = dma.done.wait (%p7152_p12), %s550_s20, 512  }
  0xc9   : > { %6876 = vsyncadd (%p7152_p12), %s550_s20, 4294966784  ;;  %p7964_p2 = scmp.eq.s32.totalorder %s7039_s19, 0 }
  0xcb   : > { %6878 = dma.done.wait (%p7964_p2), [#allocation8], 3072   ;;  %p7965_p9 = pmov %p7964_p2 }
  0xcc   : > { %p7966_p3 = pmov %p7964_p2 }
  0xcd   : > { %6880 = vsyncadd (%p7965_p9), [#allocation8], 4294964224 }
  0xce   : > { %6882 = dma.done.wait (%p7966_p3), [#allocation11], 1072   ;;  %p7967_p10 = pmov %p7964_p2 }
  0xcf   : > { %p7968_p13 = pmov %p7964_p2 }
  0xd0   : > { %6884 = vsyncadd (%p7967_p10), [#allocation11], 4294966224 }
  0xd1   : > { %6886 = dma.done.wait (%p7968_p13), [#allocation14], 32   ;;  %p7969_p0 = pmov %p7964_p2 }
  0xd3   : > { %6888 = vsyncadd (%p7969_p0), [#allocation14], 4294967264  ;;  %p7970_p12 = pmov %p7969_p0 }
  0xd4   : > { %p7971_p5 = pmov %p7969_p0 }
  0xd5   : > { %6890 = dma.done.wait (%p7970_p12), [#allocation17], 16400  }
  0xd6   : > { %6892 = vsyncadd (%p7971_p5), [#allocation17], 4294950896  ;;  %p7972_p8 = pmov %p7969_p0 }
  0xd7   : > { %p7973_p11 = pmov %p7969_p0 }
  0xd8   : > { %6894 = dma.done.wait (%p7972_p8), [#allocation20], 16384  }
  0xd9   : > { %6896 = vsyncadd (%p7973_p11), [#allocation20], 4294950912  ;;  %v6934_v0 = vmov 0   ;;  %v6295_v1 = vld [vmem:[#allocation9 + $0xac] ss:$12 sps:$4 sm:$0xff]   ;;  %v639_v8 = vld [vmem:[%s7259_s2] sm:$0xff]  ;;  %v679_v32 = vlaneseq }
  0xda   : > { %854 = vmatprep.mubr.bf16.mxu0 %v6934_v0  ;;  %v6297_v2 = vld [vmem:[#allocation9 + $0xa8] ss:$12 sps:$4 sm:$0xff]   ;;  %822 = vmatprep.subr.bf16.mxu0 %v6295_v1  ;;  %v6300_v4 = vld [vmem:[#allocation9 + $0x90] ss:$12 sps:$4 sm:$0xff]   ;;  %v6303_v6 = vld [vmem:[#allocation9 + $0x78] ss:$12 sps:$4 sm:$0xff]  }
  0xdb   : > { %v6298_v3 = vld [vmem:[#allocation9 + $0x94] ss:$12 sps:$4 sm:$0xff]   ;;  %823 = vmatpush1.bf16.msra.mxu0 %v6297_v2  ;;  %v6301_v5 = vld [vmem:[#allocation9 + $0x7c] ss:$12 sps:$4 sm:$0xff]   ;;  %v6304_v7 = vld [vmem:[#allocation9 + $0x64] ss:$12 sps:$4 sm:$0xff]  }
  0xdc   : > { %824 = vmatprep.subr.bf16.mxu0 %v6298_v3  ;;  %v6306_v9 = vld [vmem:[#allocation9 + $0x60] ss:$12 sps:$4 sm:$0xff]   ;;  %v6309_v13 = vld [vmem:[#allocation9 + $0x48] ss:$12 sps:$4 sm:$0xff]   ;;  %v6312_v15 = vld [vmem:[#allocation9 + $0x30] ss:$12 sps:$4 sm:$0xff]  }
  0xdd   : > { %v640_v10 = vld [vmem:[%s7259_s2 + $0x8] sm:$0xff]  ;;  %v6310_v14 = vld [vmem:[#allocation9 + $0x34] ss:$12 sps:$4 sm:$0xff]   ;;  %v6315_v17 = vld [vmem:[#allocation9 + $0x18] ss:$12 sps:$4 sm:$0xff]   ;;  %v6935_v23 = vmov 0.0  }
  0xde   : > { %v6307_v11 = vld [vmem:[#allocation9 + $0x4c] ss:$12 sps:$4 sm:$0xff]   ;;  %v643_v12 = vpack.c.bf16 %v640_v10, %v639_v8  ;;  %v6313_v16 = vld [vmem:[#allocation9 + $0x1c] ss:$12 sps:$4 sm:$0xff]   ;;  %v6316_v18 = vld [vmem:[#allocation9 + $0x4] ss:$12 sps:$4 sm:$0xff]  }
  0xdf   : > { %825 = vmatpush1.bf16.msra.mxu0 %v6300_v4  ;;  %v6318_v19 = vld [vmem:[#allocation9] ss:$12 sps:$4 sm:$0xff]   ;;  %v641_v20 = vld [vmem:[%s7259_s2 + $0x10] sm:$0xff]  ;;  %v642_v21 = vld [vmem:[%s7259_s2 + $0x18] sm:$0xff]  ;;  %vm6936_vm0 = vmmov 0   ;;  %v7305_v33 = vshrl.u32 %v679_v32, 7 }
  0xe0   : > { %826 = vmatprep.subr.bf16.mxu0 %v6301_v5  ;;  %6028 = vmatprep.mubr.bf16.mxu1 %v643_v12  ;;  %v644_v22 = vpack.c.bf16 %v642_v21, %v641_v20  ;;  %v6319_v24 = vld [vmem:[#allocation9 + $0xb0] ss:$12 sps:$4 sm:$0xff]   ;;  %v6320_v25 = vld [vmem:[#allocation9 + $0x98] ss:$12 sps:$4 sm:$0xff]   ;;  %v6321_v26 = vld [vmem:[#allocation9 + $0x80] ss:$12 sps:$4 sm:$0xff]  }
  0xe1   : > { %6012 = vmatprep.subr.bf16.mxu1 %v6319_v24  ;;  %v6322_v27 = vld [vmem:[#allocation9 + $0x68] ss:$12 sps:$4 sm:$0xff]   ;;  %v6323_v28 = vld [vmem:[#allocation9 + $0x50] ss:$12 sps:$4 sm:$0xff]   ;;  %v6324_v29 = vld [vmem:[#allocation9 + $0x38] ss:$12 sps:$4 sm:$0xff]  }
  0xe2   : > { %6013 = vmatpush3.bf16.msra.mxu1 %v6319_v24  ;;  %v6325_v30 = vld [vmem:[#allocation9 + $0x20] ss:$12 sps:$4 sm:$0xff]   ;;  %v6326_v31 = vld [vmem:[#allocation9 + $0x8] ss:$12 sps:$4 sm:$0xff]   ;;  %v7308_v34 = vsub.s32 1, %v7305_v33  ;;  %v7311_v38 = vsub.s32 0, %v7305_v33 }
  0xe3   : > { %827 = vmatpush1.bf16.msra.mxu0 %v6303_v6  ;;  %6014 = vmatprep.subr.bf16.mxu1 %v6320_v25  ;;  %v677_v36 = vld [vmem:[#allocation10] sm:$0x7]  ;;  %vm947_vm1 = vcmask 261120   ;;  %s6937_s12 = smov 64   ;;  %s6938_s5 = smov 96   ;;  %v7333_v60 = vsub.s32 2, %v7305_v33 }
  0xe4   : > { %828 = vmatprep.subr.bf16.mxu0 %v6304_v7  ;;  %v686_v39 = vrot.slane %v677_v36, %v7308_v34  ;;  %v682_v42 = vrot.slane %v677_v36, %v7311_v38  ;;  %s6939_s25 = smov 32   ;;  %vm999_vm3 = vcmask 130048   ;;  %vm1212_vm7 = vcmask 523520   ;;  %s7976_s28 = sld [smem:[#allocation39_spill]] }
  0xe5   : > { %v690_v63 = vrot.slane %v677_v36, %v7333_v60  ;;  %vm1358_vm8 = vcmask 785920   ;;  %vm1504_vm9 = vcmask 1048320   ;;  %s7977_s20 = sld [smem:[#allocation40_spill]]  ;;  %s5200_s22 = scalar_lea.sflag [#allocation6], %s7252_s8 }
  0xe6   : > { %6015 = vmatpush3.bf16.msra.mxu1 %v6320_v25  ;;  %p7979_p4 = scmp.ne.s32.totalorder %s7958_s14, 0 }
  0xe7   : > { %829 = vmatpush1.bf16.msra.mxu0 %v6306_v9  ;;  %6016 = vmatprep.subr.bf16.mxu1 %v6321_v26 }
  0xe8   : > { %830 = vmatprep.subr.bf16.mxu0 %v6307_v11 }
  0xea   : > { %6017 = vmatpush3.bf16.msra.mxu1 %v6321_v26 }
  0xeb   : > { %831 = vmatpush1.bf16.msra.mxu0 %v6309_v13  ;;  %6018 = vmatprep.subr.bf16.mxu1 %v6322_v27 }
  0xec   : > { %832 = vmatprep.subr.bf16.mxu0 %v6310_v14 }
  0xee   : > { %6019 = vmatpush3.bf16.msra.mxu1 %v6322_v27 }
  0xef   : > { %833 = vmatpush1.bf16.msra.mxu0 %v6312_v15  ;;  %6020 = vmatprep.subr.bf16.mxu1 %v6323_v28 }
  0xf0   : > { %834 = vmatprep.subr.bf16.mxu0 %v6313_v16 }
  0xf2   : > { %6021 = vmatpush3.bf16.msra.mxu1 %v6323_v28 }
  0xf3   : > { %835 = vmatpush1.bf16.msra.mxu0 %v6315_v17  ;;  %6022 = vmatprep.subr.bf16.mxu1 %v6324_v29 }
  0xf4   : > { %836 = vmatprep.subr.bf16.mxu0 %v6316_v18 }
  0xf6   : > { %6023 = vmatpush3.bf16.msra.mxu1 %v6324_v29  ;;  %v936_v29 = vld [vmem:[%s7267_s4] sm:$0xff] }
  0xf7   : > { %837 = vmatpush1.bf16.msra.mxu0 %v6318_v19  ;;  %6024 = vmatprep.subr.bf16.mxu1 %v6325_v30  ;;  %vm995_vm2 = vcmp.eq.f32.partialorder %v936_v29, 0.0 }
  0xf8   : > { %6032 = vmatprep.subr.bf16.mxu0 %v6935_v23 }
  0xfa   : > { %855 = vmatmul.mubr.bf16.vlgmr.msra.gmra.mxu0 %v643_v12  ;;  %6025 = vmatpush3.bf16.msra.mxu1 %v6325_v30  ;;  %v937_v30 = vld [vmem:[%s7267_s4 + $0x8] sm:$0xff] }
  0xfb   : > { %864 = vmatprep.mubr.bf16.mxu0 %v6934_v0  ;;  %6026 = vmatprep.subr.bf16.mxu1 %v6326_v31  ;;  %vm996_vm4 = vcmp.eq.f32.partialorder %v937_v30, 0.0 }
  0xfe   : > { %6027 = vmatpush3.bf16.msra.mxu1 %v6326_v31 }
  0xff   : > { %6044 = vmatprep.subr.bf16.mxu1 %v6935_v23 }
 0x101   : > { %6029 = vmatmul.mubr.bf16.vlgmr.msra.gmra.mxu1 %v644_v22 }
 0x102   : > { %865 = vmatmul.mubr.bf16.gmra.mxu0 %v644_v22  ;;  %6046 = vmatprep.mubr.msk.bf16.mxu1 %vm6936_vm0, %v6935_v23 }
 0x103   : > { %6034 = vmatprep.mubr.msk.bf16.mxu0 %vm6936_vm0, %v6935_v23 }
 0x1ba   : > { %v856_v35 = vpop.f32.mrf.mxu0 }
 0x1bb   : > { %v857_v49 = vadd.f32 %v856_v35, %v682_v42 }
 0x1bc   : > { %v858_v37 = vpop.f32.mrf.mxu0 }
 0x1bd   : > { %v859_v43 = vadd.f32 %v858_v37, %v686_v39 }
 0x1be   : > { %v860_v40 = vpop.f32.mrf.mxu0 }
 0x1bf   : > { %v861_v46 = vadd.f32 %v860_v40, %v682_v42 }
 0x1c0   : > { %v862_v41 = vpop.f32.mrf.mxu0 }
 0x1c1   : > { %v863_v44 = vadd.f32 %v862_v41, %v686_v39  ;;  %v940_v52 = vpack.c.bf16 %v861_v46, %v857_v49  ;;  %v6030_v1 = vpop.f32.mrf.mxu1 }
 0x1c2   : > { %v866_v45 = vpop.f32.mrf.mxu0  ;;  %v918_v3 = vadd.f32 %v6030_v1, %v690_v63 }
 0x1c3   : > { %v943_v47 = vpack.c.bf16 %v863_v44, %v859_v43  ;;  %v867_v53 = vadd.f32 %v866_v45, %v682_v42  ;;  %v909_v4 = vpop.f32.mrf.mxu1 }
 0x1c4   : > { %v868_v48 = vpop.f32.mrf.mxu0  ;;  %v910_v8 = vadd.f32 %v909_v4, %v690_v63  ;;  %v5448_v4 = vld [vmem:[%s7267_s4 + $0x18] sm:$0xff] }
 0x1c5   : > { %1228 = vrot.lane.b32.xlu1 %v943_v47, %s6937_s12  ;;  %1082 = vrot.lane.b32.xlu0 %v943_v47, %s6938_s5  ;;  %v952_v50 = vsel %vm947_vm1, %v943_v47, 0  ;;  %v869_v55 = vadd.f32 %v868_v48, %v686_v39  ;;  %v6031_v7 = vpop.f32.mrf.mxu1  ;;  %vm1567_vm5 = vcmp.eq.f32.partialorder %v5448_v4, 0.0 }
 0x1c6   : > { %6033 = vmatpush3.bf16.xpose.msra.mxu0 %v952_v50  ;;  %v870_v51 = vpop.f32.mrf.mxu0  ;;  %v921_v9 = vadd.f32 %v6031_v7, %v690_v63 }
 0x1c7   : > { %6038 = vmatprep.subr.bf16.mxu0 %v6935_v23  ;;  %v871_v56 = vadd.f32 %v870_v51, %v682_v42  ;;  %v912_v10 = vpop.f32.mrf.mxu1 }
 0x1c8   : > { %v872_v54 = vpop.f32.mrf.mxu0  ;;  %v7343_v11 = vpack.c.bf16 %v921_v9, %v918_v3  ;;  %v913_v12 = vadd.f32 %v912_v10, %v690_v63 }
 0x1c9   : > { %1225 = vrot.lane.b32.xlu1 %v940_v52, %s6937_s12  ;;  %1079 = vrot.lane.b32.xlu0 %v940_v52, %s6938_s5  ;;  %v873_v57 = vadd.f32 %v872_v54, %v686_v39  ;;  %v1512_v58 = vpack.c.bf16 %v871_v56, %v867_v53 }
 0x1ca   : > { %v7345_v14 = vpack.c.bf16 %v913_v12, %v910_v8 }
 0x1cb   : > { %v1515_v59 = vpack.c.bf16 %v873_v57, %v869_v55 }
 0x1cd   : > { %1371 = vrot.lane.b32.xlu1 %v940_v52, %s6939_s25  ;;  %1374 = vrot.lane.b32.xlu0 %v943_v47, %s6939_s25  ;;  %v1523_v18 = vsel %vm947_vm1, %v1515_v59, 0 }
 0x1ce   : > { %6035 = vmatmul.mubr.msk.bf16.vlgmr.msra.gmra.mxu0 %vm947_vm1, %v940_v52 }
 0x1cf   : > { %6040 = vmatprep.mubr.msk.bf16.mxu0 %vm6936_vm0, %v6935_v23  ;;  %6039 = vmatpush3.bf16.msra.mxu0 %v7345_v14 }
 0x1d0   : > { %6050 = vmatprep.subr.bf16.mxu0 %v6935_v23 }
 0x1d1   : > { %1652 = vrot.lane.b32.xlu0 %v1515_v59, %s6938_s5  ;;  %1649 = vrot.lane.b32.xlu1 %v1512_v58, %s6938_s5 }
 0x1d5   : > { %1797 = vrot.lane.b32.xlu0 %v1515_v59, %s6937_s12  ;;  %1794 = vrot.lane.b32.xlu1 %v1512_v58, %s6937_s12 }
 0x1d9   : > { %1942 = vrot.lane.b32.xlu0 %v1515_v59, %s6939_s25  ;;  %1939 = vrot.lane.b32.xlu1 %v1512_v58, %s6939_s25 }
 0x237   : > { %v1083_v61 = vpop.permute.xlu0 %1082  ;;  %v1229_v2 = vpop.permute.xlu1 %1228 }
 0x238   : > { %v1088_v62 = vsel %vm947_vm1, %v1083_v61, 0  ;;  %v1234_v6 = vsel %vm947_vm1, %v1229_v2, 0 }
 0x239   : > { %6045 = vmatpush3.bf16.xpose.msra.mxu1 %v1088_v62 }
 0x23a   : > { %6056 = vmatprep.subr.bf16.mxu1 %v6935_v23 }
 0x23b   : > { %v1080_v5 = vpop.permute.xlu0 %1079  ;;  %v1226_v15 = vpop.permute.xlu1 %1225 }
 0x23f   : > { %v1375_v13 = vpop.permute.xlu0 %1374  ;;  %v1372_v17 = vpop.permute.xlu1 %1371 }
 0x240   : > { %6047 = vmatmul.mubr.msk.bf16.vlgmr.msra.gmra.mxu1 %vm947_vm1, %v1080_v5  ;;  %v1380_v16 = vsel %vm947_vm1, %v1375_v13, 0 }
 0x241   : > { %6057 = vmatpush3.bf16.xpose.msra.mxu1 %v1234_v6  ;;  %6058 = vmatprep.mubr.msk.bf16.mxu1 %vm6936_vm0, %v6935_v23 }
 0x242   : > { %6068 = vmatprep.subr.bf16.mxu1 %v6935_v23 }
 0x243   : > { %v1653_v19 = vpop.permute.xlu0 %1652  ;;  %v1650_v22 = vpop.permute.xlu1 %1649 }
 0x244   : > { %v1658_v20 = vsel %vm947_vm1, %v1653_v19, 0 }
 0x247   : > { %v1798_v21 = vpop.permute.xlu0 %1797  ;;  %v1795_v26 = vpop.permute.xlu1 %1794 }
 0x248   : > { %6059 = vmatmul.mubr.msk.bf16.vlgmr.msra.gmra.mxu1 %vm947_vm1, %v1226_v15  ;;  %v1803_v24 = vsel %vm947_vm1, %v1798_v21, 0 }
 0x249   : > { %6069 = vmatpush3.bf16.xpose.msra.mxu1 %v1380_v16  ;;  %6070 = vmatprep.mubr.msk.bf16.mxu1 %vm6936_vm0, %v6935_v23 }
 0x24a   : > { %6080 = vmatprep.subr.bf16.mxu1 %v6935_v23 }
 0x24b   : > { %v1943_v25 = vpop.permute.xlu0 %1942  ;;  %v1940_v28 = vpop.permute.xlu1 %1939 }
 0x24c   : > { %v1948_v27 = vsel %vm947_vm1, %v1943_v25, 0 }
 0x250   : > { %6071 = vmatmul.mubr.msk.bf16.vlgmr.msra.gmra.mxu1 %vm947_vm1, %v1372_v17 }
 0x251   : > { %6081 = vmatpush3.bf16.xpose.msra.mxu1 %v1523_v18  ;;  %6082 = vmatprep.mubr.msk.bf16.mxu1 %vm6936_vm0, %v6935_v23 }
 0x252   : > { %6092 = vmatprep.subr.bf16.mxu1 %v6935_v23 }
 0x258   : > { %6083 = vmatmul.mubr.msk.bf16.vlgmr.msra.gmra.mxu1 %vm947_vm1, %v1512_v58 }
 0x259   : > { %6093 = vmatpush3.bf16.xpose.msra.mxu1 %v1658_v20  ;;  %6094 = vmatprep.mubr.msk.bf16.mxu1 %vm6936_vm0, %v6935_v23 }
 0x25a   : > { %6104 = vmatprep.subr.bf16.mxu1 %v6935_v23 }
 0x260   : > { %6095 = vmatmul.mubr.msk.bf16.vlgmr.msra.gmra.mxu1 %vm947_vm1, %v1650_v22 }
 0x261   : > { %6105 = vmatpush3.bf16.xpose.msra.mxu1 %v1803_v24  ;;  %6106 = vmatprep.mubr.msk.bf16.mxu1 %vm6936_vm0, %v6935_v23 }
 0x262   : > { %6116 = vmatprep.subr.bf16.mxu1 %v6935_v23 }
 0x268   : > { %6107 = vmatmul.mubr.msk.bf16.vlgmr.msra.gmra.mxu1 %vm947_vm1, %v1795_v26 }
 0x269   : > { %6117 = vmatpush3.bf16.xpose.msra.mxu1 %v1948_v27  ;;  %6118 = vmatprep.mubr.msk.bf16.mxu1 %vm6936_vm0, %v6935_v23 }
 0x270   : > { %6119 = vmatmul.mubr.msk.bf16.vlgmr.msra.gmra.mxu1 %vm947_vm1, %v1940_v28 }
 0x28e   : > { %v988_v31 = vpop.f32.mrf.mxu0 }
 0x28f   : > { %v7377_v32 = vsel %vm995_vm2, %v988_v31, %v936_v29 }
 0x290   : > { %v6036_v35 = vpop.f32.mrf.mxu0  ;;  %v1000_v36 = vsel %vm999_vm3, %v7377_v32, -inf }
 0x291   : > { %1001 = vmax.xlane.f32.xlu0 %v1000_v36 }
 0x292   : > { %v991_v37 = vpop.f32.mrf.mxu0 }
 0x293   : > { %v998_v39 = vsel %vm996_vm4, %v991_v37, %v937_v30 }
 0x294   : > { %v6037_v40 = vpop.f32.mrf.mxu0  ;;  %v1003_v41 = vsel %vm999_vm3, %v998_v39, -inf }
 0x295   : > { %1004 = vmax.xlane.f32.xlu1 %v1003_v41 }
 0x300   : > { %v1124_v42 = vpop.f32.mrf.mxu1 }
 0x301   : > { %v7384_v43 = vsel %vm995_vm2, %v1124_v42, %v936_v29 }
 0x302   : > { %v6048_v44 = vpop.f32.mrf.mxu1  ;;  %v1133_v45 = vsel %vm999_vm3, %v7384_v43, -inf }
 0x303   : > { %1134 = vmax.xlane.f32.xlu0 %v1133_v45  ;;  %v5447_v44 = vld [vmem:[%s7267_s4 + $0x10] sm:$0xff]  ;;  %s634_s4 = scalar_lea.vmem [#allocation21], %s7255_s3  ;;  %s7978_s3 = sld [smem:[#allocation41_spill]] }
 0x304   : > { %v1127_v46 = vpop.f32.mrf.mxu1  ;;  %vm1566_vm6 = vcmp.eq.f32.partialorder %v5447_v44, 0.0 }
 0x305   : > { %v7389_v47 = vsel %vm996_vm4, %v1127_v46, %v937_v30 }
 0x306   : > { %v6049_v48 = vpop.f32.mrf.mxu1  ;;  %v1136_v49 = vsel %vm999_vm3, %v7389_v47, -inf }
 0x307   : > { %1137 = vmax.xlane.f32.xlu0 %v1136_v49 }
 0x308   : > { %v1270_v50 = vpop.f32.mrf.mxu1 }
 0x309   : > { %v7394_v51 = vsel %vm995_vm2, %v1270_v50, %v936_v29 }
 0x30a   : > { %v6060_v52 = vpop.f32.mrf.mxu1  ;;  %v1279_v53 = vsel %vm999_vm3, %v7394_v51, -inf }
 0x30b   : > { %1280 = vmax.xlane.f32.xlu1 %v1279_v53 }
 0x30c   : > { %v1273_v54 = vpop.f32.mrf.mxu1 }
 0x30d   : > { %v7399_v55 = vsel %vm996_vm4, %v1273_v54, %v937_v30 }
 0x30e   : > { %v6061_v56 = vpop.f32.mrf.mxu1  ;;  %v1282_v57 = vsel %vm999_vm3, %v7399_v55, -inf }
 0x30f   : > { %1283 = vmax.xlane.f32.xlu0 %v1282_v57 }
 0x310   : > { %v1416_v58 = vpop.f32.mrf.mxu1 }
 0x311   : > { %v7404_v59 = vsel %vm995_vm2, %v1416_v58, %v936_v29 }
 0x312   : > { %v6072_v61 = vpop.f32.mrf.mxu1  ;;  %v1425_v62 = vsel %vm999_vm3, %v7404_v59, -inf }
 0x313   : > { %1426 = vmax.xlane.f32.xlu1 %v1425_v62 }
 0x314   : > { %v1419_v63 = vpop.f32.mrf.mxu1 }
 0x315   : > { %v7409_v1 = vsel %vm996_vm4, %v1419_v63, %v937_v30 }
 0x316   : > { %v6073_v2 = vpop.f32.mrf.mxu1  ;;  %v1428_v3 = vsel %vm999_vm3, %v7409_v1, -inf }
 0x317   : > { %1429 = vmax.xlane.f32.xlu0 %v1428_v3 }
 0x318   : > { %v1559_v5 = vpop.f32.mrf.mxu1 }
 0x319   : > { %v1568_v46 = vsel %vm1566_vm6, %v1559_v5, %v5447_v44 }
 0x31a   : > { %v6084_v6 = vpop.f32.mrf.mxu1  ;;  %v1002_v41 = vpop.xlane.xlu0 %1001  ;;  %v1570_v49 = vsel %vm999_vm3, %v1568_v46, -inf }
 0x31b   : > { %v1006_v42 = vsub.f32 %v7377_v32, %v1002_v41 }
 0x31c   : > { %v1562_v7 = vpop.f32.mrf.mxu1 }
 0x31d   : > { %v7415_v8 = vsel %vm1567_vm5, %v1562_v7, %v5448_v4  ;;  %v1008_v45 = vmul.f32 1.442695, %v1006_v42 }
 0x31e   : > { %v1005_v9 = vpop.xlane.xlu1 %1004  ;;  %v6085_v10 = vpop.f32.mrf.mxu1  ;;  %v1573_v12 = vsel %vm999_vm3, %v7415_v8, -inf }
 0x31f   : > { %v1007_v13 = vsub.f32 %v998_v39, %v1005_v9  ;;  %1574 = vmax.xlane.f32.xlu0 %v1573_v12 }
 0x320   : > { %v1694_v15 = vpop.f32.mrf.mxu1 }
 0x321   : > { %v1010_v16 = vmul.f32 1.442695, %v1007_v13  ;;  %v7442_v48 = vsel %vm1566_vm6, %v1694_v15, %v5447_v44 }
 0x322   : > { %v6096_v17 = vpop.f32.mrf.mxu1  ;;  %v1703_v50 = vsel %vm999_vm3, %v7442_v48, -inf }
 0x323   : > { %6463 = vpow2.f32 %v1010_v16 }
 0x324   : > { %v1697_v18 = vpop.f32.mrf.mxu1  ;;  %1157 = vrot.lane.b32.xlu1 %v7345_v14, %s6938_s5  ;;  %6465 = vpow2.f32 %v1008_v45 }
 0x325   : > { %v7422_v19 = vsel %vm1567_vm5, %v1697_v18, %v5448_v4 }
 0x326   : > { %v6097_v20 = vpop.f32.mrf.mxu1  ;;  %v1706_v21 = vsel %vm999_vm3, %v7422_v19, -inf }
 0x327   : > { %1707 = vmax.xlane.f32.xlu0 %v1706_v21 }
 0x328   : > { %v1839_v22 = vpop.f32.mrf.mxu1 }
 0x329   : > { %v7447_v52 = vsel %vm1566_vm6, %v1839_v22, %v5447_v44 }
 0x32a   : > { %v6108_v24 = vpop.f32.mrf.mxu1  ;;  %v1848_v53 = vsel %vm999_vm3, %v7447_v52, -inf }
 0x32c   : > { %v1842_v25 = vpop.f32.mrf.mxu1 }
 0x32d   : > { %v7427_v26 = vsel %vm1567_vm5, %v1842_v25, %v5448_v4 }
 0x32e   : > { %v6109_v27 = vpop.f32.mrf.mxu1  ;;  %v1851_v28 = vsel %vm999_vm3, %v7427_v26, -inf }
 0x32f   : > { %1852 = vmax.xlane.f32.xlu0 %v1851_v28 }
 0x330   : > { %v7431_v29 = vpop.eup %6463  ;;  %v1984_v30 = vpop.f32.mrf.mxu1 }
 0x331   : > { %v1015_v35 = vsel %vm999_vm3, %v7431_v29, 0.0  ;;  %v7451_v32 = vpop.eup %6465  ;;  %v7453_v54 = vsel %vm1566_vm6, %v1984_v30, %v5447_v44 }
 0x332   : > { %v6120_v31 = vpop.f32.mrf.mxu1  ;;  %v1012_v56 = vsel %vm999_vm3, %v7451_v32, 0.0  ;;  %v1993_v57 = vsel %vm999_vm3, %v7453_v54, -inf }
 0x333   : > { %1016 = vadd.xlane.f32.xlu0 %v1015_v35 }
 0x334   : > { %v1987_v36 = vpop.f32.mrf.mxu1 }
 0x335   : > { %v7436_v37 = vsel %vm1567_vm5, %v1987_v36, %v5448_v4 }
 0x336   : > { %v1996_v39 = vsel %vm999_vm3, %v7436_v37, -inf  ;;  %v6121_v40 = vpop.f32.mrf.mxu1 }
 0x337   : > { %1997 = vmax.xlane.f32.xlu0 %v1996_v39 }
 0x348   : > { %1571 = vmax.xlane.f32.xlu1 %v1570_v49 }
 0x34c   : > { %1704 = vmax.xlane.f32.xlu1 %v1703_v50 }
 0x350   : > { %1849 = vmax.xlane.f32.xlu1 %v1848_v53 }
 0x354   : > { %1013 = vadd.xlane.f32.xlu1 %v1012_v56 }
 0x358   : > { %1994 = vmax.xlane.f32.xlu1 %v1993_v57 }
 0x38c   : > { %v1135_v58 = vpop.xlane.xlu0 %1134 }
 0x38d   : > { %v1139_v61 = vsub.f32 %v7384_v43, %v1135_v58 }
 0x38f   : > { %v1141_v62 = vmul.f32 1.442695, %v1139_v61 }
 0x390   : > { %v1138_v63 = vpop.xlane.xlu0 %1137 }
 0x391   : > { %6467 = vpow2.f32 %v1141_v62  ;;  %v1140_v2 = vsub.f32 %v7389_v47, %v1138_v63 }
 0x393   : > { %v1143_v3 = vmul.f32 1.442695, %v1140_v2 }
 0x394   : > { %v1281_v43 = vpop.xlane.xlu1 %1280 }
 0x395   : > { %6469 = vpow2.f32 %v1143_v3  ;;  %v1285_v47 = vsub.f32 %v7394_v51, %v1281_v43 }
 0x397   : > { %v1287_v13 = vmul.f32 1.442695, %v1285_v47 }
 0x398   : > { %v1284_v9 = vpop.xlane.xlu0 %1283 }
 0x399   : > { %v1286_v12 = vsub.f32 %v7399_v55, %v1284_v9  ;;  %6471 = vpow2.f32 %v1287_v13 }
 0x39b   : > { %v1289_v17 = vmul.f32 1.442695, %v1286_v12 }
 0x39c   : > { %v1427_v10 = vpop.xlane.xlu1 %1426 }
 0x39d   : > { %v1431_v15 = vsub.f32 %v7404_v59, %v1427_v10  ;;  %6473 = vpow2.f32 %v1289_v17 }
 0x39e   : > { %v7461_v4 = vpop.eup %6467 }
 0x39f   : > { %v1145_v5 = vsel %vm999_vm3, %v7461_v4, 0.0  ;;  %v1433_v18 = vmul.f32 1.442695, %v1431_v15 }
 0x3a0   : > { %1146 = vadd.xlane.f32.xlu1 %v1145_v5  ;;  %v1430_v16 = vpop.xlane.xlu0 %1429  ;;  %v7478_v24 = vpop.permute.xlu1 %1157 }
 0x3a1   : > { %v1432_v20 = vsub.f32 %v7409_v1, %v1430_v16  ;;  %6475 = vpow2.f32 %v1433_v18 }
 0x3a2   : > { %v7465_v6 = vpop.eup %6469 }
 0x3a3   : > { %v1148_v7 = vsel %vm999_vm3, %v7465_v6, 0.0  ;;  %v1435_v22 = vmul.f32 1.442695, %v1432_v20 }
 0x3a4   : > { %1149 = vadd.xlane.f32.xlu0 %v1148_v7 }
 0x3a5   : > { %6477 = vpow2.f32 %v1435_v22 }
 0x3a6   : > { %v7480_v25 = vpop.eup %6471 }
 0x3a7   : > { %v1291_v35 = vsel %vm999_vm3, %v7480_v25, 0.0 }
 0x3a8   : > { %v1575_v21 = vpop.xlane.xlu0 %1574 }
 0x3aa   : > { %v7482_v30 = vpop.eup %6473 }
 0x3ab   : > { %v1294_v41 = vsel %vm999_vm3, %v7482_v30, 0.0 }
 0x3b0   : > { %v1708_v55 = vpop.xlane.xlu0 %1707 }
 0x3b1   : > { %1449 = vrot.lane.b32.xlu1 %v7345_v14, %s6939_s25  ;;  %v1710_v1 = vsub.f32 %v7422_v19, %v1708_v55 }
 0x3b3   : > { %v1713_v42 = vmul.f32 1.442695, %v1710_v1 }
 0x3b8   : > { %v1853_v59 = vpop.xlane.xlu0 %1852 }
 0x3b9   : > { %v1855_v44 = vsub.f32 %v7427_v26, %v1853_v59 }
 0x3ba   : > { %1303 = vrot.lane.b32.xlu0 %v7345_v14, %s6937_s12  ;;  %v1577_v14 = vsub.f32 %v7415_v8, %v1575_v21  ;;  %v7487_v8 = vpop.eup %6475 }
 0x3bb   : > { %v1437_v19 = vsel %vm999_vm3, %v7487_v8, 0.0  ;;  %v1858_v50 = vmul.f32 1.442695, %v1855_v44 }
 0x3bc   : > { %v1580_v51 = vmul.f32 1.442695, %v1577_v14  ;;  %v1017_v40 = vpop.xlane.xlu0 %1016 }
 0x3be   : > { %6479 = vpow2.f32 %v1580_v51 }
 0x3c0   : > { %v1998_v56 = vpop.xlane.xlu0 %1997 }
 0x3c1   : > { %v2000_v57 = vsub.f32 %v7436_v37, %v1998_v56 }
 0x3c3   : > { %v2003_v2 = vmul.f32 1.442695, %v2000_v57 }
 0x3d1   : > { %v1572_v27 = vpop.xlane.xlu1 %1571 }
 0x3d2   : > { %v1576_v28 = vsub.f32 %v1568_v46, %v1572_v27  ;;  %v7495_v46 = vpop.eup %6477 }
 0x3d3   : > { %v7499_v53 = vpop.eup %6479 }
 0x3d4   : > { %v1578_v31 = vmul.f32 1.442695, %v1576_v28  ;;  %v1585_v58 = vsel %vm999_vm3, %v7499_v53, 0.0 }
 0x3d5   : > { %1292 = vadd.xlane.f32.xlu1 %v1291_v35  ;;  %v1705_v36 = vpop.xlane.xlu1 %1704 }
 0x3d6   : > { %6481 = vpow2.f32 %v1578_v31  ;;  %v1709_v39 = vsub.f32 %v7442_v48, %v1705_v36  ;;  %v1440_v48 = vsel %vm999_vm3, %v7495_v46, 0.0 }
 0x3d8   : > { %v1711_v45 = vmul.f32 1.442695, %v1709_v39 }
 0x3d9   : > { %1295 = vadd.xlane.f32.xlu0 %v1294_v41  ;;  %1438 = vadd.xlane.f32.xlu1 %v1437_v19  ;;  %v1850_v49 = vpop.xlane.xlu1 %1849 }
 0x3da   : > { %6483 = vpow2.f32 %v1711_v45  ;;  %v1854_v20 = vsub.f32 %v7447_v52, %v1850_v49 }
 0x3db   : > { %6485 = vpow2.f32 %v1713_v42 }
 0x3dc   : > { %6487 = vrcp.f32 %v1017_v40  ;;  %v1856_v21 = vmul.f32 1.442695, %v1854_v20 }
 0x3dd   : > { %1441 = vadd.xlane.f32.xlu0 %v1440_v48  ;;  %v1014_v26 = vpop.xlane.xlu1 %1013 }
 0x3de   : > { %6489 = vrcp.f32 %v1014_v26 }
 0x3df   : > { %6491 = vpow2.f32 %v1858_v50 }
 0x3e1   : > { %1586 = vadd.xlane.f32.xlu0 %v1585_v58  ;;  %v1995_v61 = vpop.xlane.xlu1 %1994 }
 0x3e2   : > { %v1999_v62 = vsub.f32 %v7453_v54, %v1995_v61 }
 0x3e3   : > { %v7505_v63 = vpop.eup %6481 }
 0x3e4   : > { %v2001_v3 = vmul.f32 1.442695, %v1999_v62  ;;  %v1582_v5 = vsel %vm999_vm3, %v7505_v63, 0.0 }
 0x3e5   : > { %1583 = vadd.xlane.f32.xlu1 %v1582_v5 }
 0x3e6   : > { %6493 = vpow2.f32 %v2001_v3 }
 0x3e7   : > { %v7509_v7 = vpop.eup %6483  ;;  %6495 = vpow2.f32 %v2003_v2 }
 0x3e8   : > { %v1715_v37 = vsel %vm999_vm3, %v7509_v7, 0.0  ;;  %v7513_v43 = vpop.eup %6485  ;;  %6497 = vpow2.f32 %v1856_v21 }
 0x3e9   : > { %1716 = vadd.xlane.f32.xlu0 %v1715_v37  ;;  %v6488_v47 = vpop.eup %6487  ;;  %v1718_v9 = vsel %vm999_vm3, %v7513_v43, 0.0 }
 0x3ea   : > { %v1021_v13 = vmul.f32 %v6488_v47, %v7431_v29 }
 0x3eb   : > { %v6490_v54 = vpop.eup %6489 }
 0x3ec   : > { %v7517_v10 = vpop.eup %6491  ;;  %v1020_v12 = vmul.f32 %v6490_v54, %v7451_v32 }
 0x3ed   : > { %1719 = vadd.xlane.f32.xlu0 %v1718_v9  ;;  %v1863_v16 = vsel %vm999_vm3, %v7517_v10, 0.0 }
 0x3ee   : > { %v1022_v15 = vpack.c.bf16 %v1021_v13, %v1020_v12 }
 0x3f0   : > { %6041 = vmatmul.mubr.msk.bf16.vlgmr.msra.gmra.mxu0 %vm999_vm3, %v1022_v15 }
 0x3f1   : > { %1864 = vadd.xlane.f32.xlu0 %v1863_v16  ;;  %6051 = vmatpush3.bf16.msra.mxu0 %v7478_v24 }
 0x3f2   : > { %6052 = vmatprep.mubr.msk.bf16.mxu0 %vm6936_vm0, %v6935_v23  ;;  %6062 = vmatprep.subr.bf16.mxu0 %v6935_v23 }
 0x3f3   : > { %v7527_v17 = vpop.eup %6493 }
 0x3f4   : > { %v2005_v32 = vsel %vm999_vm3, %v7527_v17, 0.0  ;;  %v7532_v29 = vpop.eup %6495 }
 0x3f5   : > { %2006 = vadd.xlane.f32.xlu0 %v2005_v32  ;;  %v2008_v18 = vsel %vm999_vm3, %v7532_v29, 0.0  ;;  %v7541_v22 = vpop.eup %6497 }
 0x3f6   : > { %1727 = vrot.lane.b32.xlu1 %v7343_v11, %s6938_s5  ;;  %v1860_v14 = vsel %vm999_vm3, %v7541_v22, 0.0 }
 0x3f9   : > { %2009 = vadd.xlane.f32.xlu0 %v2008_v18 }
 0x40f   : > { %1872 = vrot.lane.b32.xlu0 %v7343_v11, %s6937_s12 }
 0x41a   : > { %1861 = vadd.xlane.f32.xlu1 %v1860_v14 }
 0x429   : > { %v1147_v51 = vpop.xlane.xlu1 %1146 }
 0x42a   : > { %6499 = vrcp.f32 %v1147_v51 }
 0x42b   : > { %2017 = vrot.lane.b32.xlu1 %v7343_v11, %s6939_s25 }
 0x42d   : > { %v1150_v24 = vpop.xlane.xlu0 %1149  ;;  %v1450_v31 = vpop.permute.xlu1 %1449 }
 0x42e   : > { %6501 = vrcp.f32 %v1150_v24 }
 0x431   : > { %v1304_v1 = vpop.permute.xlu0 %1303 }
 0x437   : > { %v6500_v55 = vpop.eup %6499 }
 0x438   : > { %v1153_v59 = vmul.f32 %v6500_v55, %v7461_v4 }
 0x43b   : > { %v6502_v52 = vpop.eup %6501 }
 0x43c   : > { %v1154_v27 = vmul.f32 %v6502_v52, %v7465_v6 }
 0x43e   : > { %v1155_v28 = vpack.c.bf16 %v1154_v27, %v1153_v59 }
 0x440   : > { %6053 = vmatmul.mubr.msk.bf16.vlgmr.msra.gmra.mxu0 %vm999_vm3, %v1155_v28 }
 0x441   : > { %6063 = vmatpush3.bf16.msra.mxu0 %v1304_v1  ;;  %6064 = vmatprep.mubr.msk.bf16.mxu0 %vm6936_vm0, %v6935_v23 }
 0x442   : > { %6074 = vmatprep.subr.bf16.mxu0 %v6935_v23 }
 0x45e   : > { %v1293_v35 = vpop.xlane.xlu1 %1292 }
 0x45f   : > { %6503 = vrcp.f32 %v1293_v35 }
 0x462   : > { %v1296_v36 = vpop.xlane.xlu0 %1295  ;;  %v1439_v39 = vpop.xlane.xlu1 %1438 }
 0x463   : > { %6505 = vrcp.f32 %v1296_v36 }
 0x466   : > { %v1442_v40 = vpop.xlane.xlu0 %1441 }
 0x467   : > { %6507 = vrcp.f32 %v1442_v40  ;;  %v6327_v40 = vld [vmem:[#allocation12 + $0x38] sm:$0xff]  }
 0x468   : > { %6509 = vrcp.f32 %v1439_v39  ;;  %6128 = vmatprep.subr.bf16.mxu1 %v6327_v40 }
 0x469   : > { %6129 = vmatpush3.bf16.msra.mxu1 %v6327_v40 }
 0x46a   : > { %v1587_v6 = vpop.xlane.xlu0 %1586 }
 0x46c   : > { %v6504_v4 = vpop.eup %6503 }
 0x46d   : > { %v1299_v44 = vmul.f32 %v6504_v4, %v7480_v25  ;;  %v6328_v4 = vld [vmem:[#allocation12 + $0x30] sm:$0xff]  }
 0x46e   : > { %v1584_v41 = vpop.xlane.xlu1 %1583  ;;  %6130 = vmatprep.subr.bf16.mxu1 %v6328_v4 }
 0x46f   : > { %6511 = vrcp.f32 %v1584_v41  ;;  %6131 = vmatpush3.bf16.msra.mxu1 %v6328_v4 }
 0x470   : > { %v6506_v42 = vpop.eup %6505  ;;  %6513 = vrcp.f32 %v1587_v6 }
 0x471   : > { %v1300_v45 = vmul.f32 %v6506_v42, %v7482_v30  ;;  %v6329_v42 = vld [vmem:[#allocation12 + $0x28] sm:$0xff]  }
 0x472   : > { %v1717_v19 = vpop.xlane.xlu0 %1716  ;;  %v1728_v5 = vpop.permute.xlu1 %1727  ;;  %6132 = vmatprep.subr.bf16.mxu1 %v6329_v42 }
 0x473   : > { %v1301_v49 = vpack.c.bf16 %v1300_v45, %v1299_v44  ;;  %6133 = vmatpush3.bf16.msra.mxu1 %v6329_v42 }
 0x474   : > { %v6508_v50 = vpop.eup %6507 }
 0x475   : > { %6065 = vmatmul.mubr.msk.bf16.vlgmr.msra.gmra.mxu0 %vm999_vm3, %v1301_v49  ;;  %v6510_v48 = vpop.eup %6509  ;;  %v1446_v26 = vmul.f32 %v6508_v50, %v7495_v46 }
 0x476   : > { %6075 = vmatpush3.bf16.msra.mxu0 %v1450_v31  ;;  %v1720_v56 = vpop.xlane.xlu0 %1719  ;;  %6076 = vmatprep.mubr.msk.bf16.mxu0 %vm6936_vm0, %v6935_v23  ;;  %v1445_v25 = vmul.f32 %v6510_v48, %v7487_v8  ;;  %v6330_v48 = vld [vmem:[#allocation12 + $0x20] sm:$0xff]  }
 0x477   : > { %6515 = vrcp.f32 %v1720_v56  ;;  %6086 = vmatprep.subr.bf16.mxu0 %v6935_v23  ;;  %6134 = vmatprep.subr.bf16.mxu1 %v6330_v48  ;;  %v6331_v56 = vld [vmem:[#allocation12 + $0x18] sm:$0xff]  }
 0x478   : > { %6517 = vrcp.f32 %v1717_v19  ;;  %v1447_v57 = vpack.c.bf16 %v1446_v26, %v1445_v25  ;;  %6135 = vmatpush3.bf16.msra.mxu1 %v6330_v48  ;;  %v6332_v26 = vld [vmem:[#allocation12 + $0x10] sm:$0xff]  }
 0x479   : > { %6136 = vmatprep.subr.bf16.mxu1 %v6331_v56 }
 0x47a   : > { %v1865_v30 = vpop.xlane.xlu0 %1864 }
 0x47b   : > { %6519 = vrcp.f32 %v1865_v30 }
 0x47c   : > { %v6512_v58 = vpop.eup %6511  ;;  %6137 = vmatpush3.bf16.msra.mxu1 %v6331_v56 }
 0x47d   : > { %6077 = vmatmul.mubr.msk.bf16.vlgmr.msra.gmra.mxu0 %vm999_vm3, %v1447_v57  ;;  %v6514_v61 = vpop.eup %6513  ;;  %v1590_v62 = vmul.f32 %v6512_v58, %v7505_v63  ;;  %6138 = vmatprep.subr.bf16.mxu1 %v6332_v26  ;;  %v6333_v57 = vld [vmem:[#allocation12 + $0x8] sm:$0xff]   ;;  %v6334_v58 = vld [vmem:[#allocation12] sm:$0xff]  }
 0x47e   : > { %6087 = vmatpush3.bf16.msra.mxu0 %v7343_v11  ;;  %6088 = vmatprep.mubr.msk.bf16.mxu0 %vm6936_vm0, %v6935_v23  ;;  %v2007_v2 = vpop.xlane.xlu0 %2006  ;;  %v1591_v46 = vmul.f32 %v6514_v61, %v7499_v53 }
 0x47f   : > { %6098 = vmatprep.subr.bf16.mxu0 %v6935_v23 }
 0x480   : > { %v1592_v3 = vpack.c.bf16 %v1591_v46, %v1590_v62  ;;  %6139 = vmatpush3.bf16.msra.mxu1 %v6332_v26 }
 0x481   : > { %6140 = vmatprep.subr.bf16.mxu1 %v6333_v57 }
 0x482   : > { %v2010_v11 = vpop.xlane.xlu0 %2009 }
 0x484   : > { %v6516_v8 = vpop.eup %6515  ;;  %6141 = vmatpush3.bf16.msra.mxu1 %v6333_v57  ;;  %v2414_v57 = vld [vmem:[#allocation18 + $0x380] sm:$0xff] }
 0x485   : > { %6089 = vmatmul.mubr.msk.bf16.vlgmr.msra.gmra.mxu0 %vm999_vm3, %v1592_v3  ;;  %v6518_v37 = vpop.eup %6517  ;;  %v1724_v47 = vmul.f32 %v6516_v8, %v7513_v43  ;;  %6142 = vmatprep.subr.bf16.mxu1 %v6334_v58 }
 0x486   : > { %6099 = vmatpush3.bf16.msra.mxu0 %v1728_v5  ;;  %6100 = vmatprep.mubr.msk.bf16.mxu0 %vm6936_vm0, %v6935_v23  ;;  %v1723_v63 = vmul.f32 %v6518_v37, %v7509_v7  ;;  %v1873_v9 = vpop.permute.xlu0 %1872 }
 0x487   : > { %6110 = vmatprep.subr.bf16.mxu0 %v6935_v23 }
 0x488   : > { %v1725_v54 = vpack.c.bf16 %v1724_v47, %v1723_v63  ;;  %v6520_v12 = vpop.eup %6519  ;;  %6143 = vmatpush3.bf16.msra.mxu1 %v6334_v58  ;;  %v2422_v58 = vld [vmem:[#allocation18 + $0x3c0] sm:$0xff] }
 0x489   : > { %v1869_v15 = vmul.f32 %v6520_v12, %v7517_v10 }
 0x48d   : > { %6101 = vmatmul.mubr.msk.bf16.vlgmr.msra.gmra.mxu0 %vm999_vm3, %v1725_v54 }
 0x48e   : > { %6111 = vmatpush3.bf16.msra.mxu0 %v1873_v9  ;;  %6112 = vmatprep.mubr.msk.bf16.mxu0 %vm6936_vm0, %v6935_v23 }
 0x48f   : > { %6122 = vmatprep.subr.bf16.mxu0 %v6935_v23 }
 0x4a3   : > { %v1862_v53 = vpop.xlane.xlu1 %1861 }
 0x4a4   : > { %6521 = vrcp.f32 %v1862_v53 }
 0x4a5   : > { %6523 = vrcp.f32 %v2010_v11 }
 0x4a6   : > { %6525 = vrcp.f32 %v2007_v2 }
 0x4a7   : > { %v2018_v21 = vpop.permute.xlu1 %2017 }
 0x4b0   : > { %v1060_v43 = vpop.f32.mrf.mxu0 }
 0x4b1   : > { %v6522_v13 = vpop.eup %6521  ;;  %1067 = vst.msk [vmem:[#allocation3] sm:$0xff] %vm947_vm1, %v1060_v43 }
 0x4b2   : > { %v1868_v7 = vmul.f32 %v6522_v13, %v7541_v22  ;;  %v6042_v16 = vpop.f32.mrf.mxu0  ;;  %v6524_v18 = vpop.eup %6523 }
 0x4b3   : > { %v6526_v14 = vpop.eup %6525  ;;  %v2014_v24 = vmul.f32 %v6524_v18, %v7532_v29 }
 0x4b4   : > { %v1870_v32 = vpack.c.bf16 %v1869_v15, %v1868_v7  ;;  %v1063_v20 = vpop.f32.mrf.mxu0  ;;  %v2013_v22 = vmul.f32 %v6526_v14, %v7527_v17 }
 0x4b5   : > { %1068 = vst.msk [vmem:[#allocation3 + $0x8] sm:$0xff] %vm947_vm1, %v1063_v20 }
 0x4b6   : > { %6113 = vmatmul.mubr.msk.bf16.vlgmr.msra.gmra.mxu0 %vm999_vm3, %v1870_v32  ;;  %v6043_v51 = vpop.f32.mrf.mxu0  ;;  %v2015_v10 = vpack.c.bf16 %v2014_v24, %v2013_v22 }
 0x4b7   : > { %6123 = vmatpush3.bf16.msra.mxu0 %v2018_v21  ;;  %6124 = vmatprep.mubr.msk.bf16.mxu0 %vm6936_vm0, %v6935_v23  ;;  %v5457_v51 = vld [vmem:[#allocation13] ss:$0 sm:$0xff] }
 0x4be   : > { %6125 = vmatmul.mubr.msk.bf16.vlgmr.msra.gmra.mxu0 %vm999_vm3, %v2015_v10 }
 0x4bf   : > { %3186 = vmatprep.mubr.bf16.mxu0 %v6934_v0 }
 0x500   : > { %v1197_v55 = vpop.f32.mrf.mxu0 }
 0x501   : > { %1206 = vrot.lane.b32.xlu1 %v1197_v55, %s6939_s25 }
 0x502   : > { %v6054_v52 = vpop.f32.mrf.mxu0 }
 0x503   : > { %v6559_v52 = vld [vmem:[%s7259_s2] sm:$0xff] }
 0x504   : > { %v1200_v59 = vpop.f32.mrf.mxu0 }
 0x505   : > { %1208 = vrot.lane.b32.xlu1 %v1200_v59, %s6939_s25 }
 0x506   : > { %v6055_v27 = vpop.f32.mrf.mxu0 }
 0x535   : > { %v1343_v28 = vpop.f32.mrf.mxu0 }
 0x536   : > { %1352 = vrot.lane.b32.xlu1 %v1343_v28, %s6937_s12 }
 0x537   : > { %v6066_v23 = vpop.f32.mrf.mxu0 }
 0x539   : > { %v1346_v29 = vpop.f32.mrf.mxu0 }
 0x53a   : > { %1354 = vrot.lane.b32.xlu1 %v1346_v29, %s6937_s12  ;;  %v6560_v29 = vld [vmem:[%s7259_s2 + $0x8] sm:$0xff] }
 0x53b   : > { %v6067_v17 = vpop.f32.mrf.mxu0 }
 0x53d   : > { %v1489_v1 = vpop.f32.mrf.mxu0 }
 0x53e   : > { %1498 = vrot.lane.b32.xlu0 %v1489_v1, %s6938_s5  ;;  %v6561_v1 = vld [vmem:[%s7259_s2 + $0x10] sm:$0xff] }
 0x53f   : > { %v6078_v31 = vpop.f32.mrf.mxu0 }
 0x541   : > { %v1492_v35 = vpop.f32.mrf.mxu0 }
 0x542   : > { %1500 = vrot.lane.b32.xlu1 %v1492_v35, %s6938_s5  ;;  %v6562_v35 = vld [vmem:[%s7259_s2 + $0x18] sm:$0xff] }
 0x543   : > { %v6079_v36 = vpop.f32.mrf.mxu0 }
 0x545   : > { %v1630_v39 = vpop.f32.mrf.mxu0 }
 0x546   : > { %1637 = vst.msk [vmem:[#allocation3 + $0x10] sm:$0xff] %vm947_vm1, %v1630_v39 }
 0x547   : > { %v6090_v6 = vpop.f32.mrf.mxu0 }
 0x549   : > { %v1633_v41 = vpop.f32.mrf.mxu0 }
 0x54a   : > { %1638 = vst.msk [vmem:[#allocation3 + $0x18] sm:$0xff] %vm947_vm1, %v1633_v41 }
 0x54b   : > { %v6091_v44 = vpop.f32.mrf.mxu0 }
 0x54d   : > { %v1767_v45 = vpop.f32.mrf.mxu0 }
 0x54e   : > { %1776 = vrot.lane.b32.xlu0 %v1767_v45, %s6939_s25 }
 0x54f   : > { %v6102_v19 = vpop.f32.mrf.mxu0 }
 0x551   : > { %v1770_v49 = vpop.f32.mrf.mxu0 }
 0x552   : > { %1778 = vrot.lane.b32.xlu1 %v1770_v49, %s6939_s25 }
 0x553   : > { %v6103_v50 = vpop.f32.mrf.mxu0 }
 0x573   : > { %v1207_v25 = vpop.permute.xlu1 %1206 }
 0x574   : > { %1213 = vst.msk [vmem:[#allocation3] sm:$0xff] %vm1212_vm7, %v1207_v25 }
 0x576   : > { %v1912_v30 = vpop.f32.mrf.mxu0 }
 0x577   : > { %v1209_v61 = vpop.permute.xlu1 %1208  ;;  %1921 = vrot.lane.b32.xlu0 %v1912_v30, %s6937_s12 }
 0x578   : > { %1214 = vst.msk [vmem:[#allocation3 + $0x8] sm:$0xff] %vm1212_vm7, %v1209_v61  ;;  %v6114_v62 = vpop.f32.mrf.mxu0  ;;  %v2415_v61 = vld [vmem:[#allocation18 + $0x388] sm:$0xff] }
 0x579   : > { %v5581_v62 = vcombine.high %v2414_v57, %v2422_v58 }
 0x57a   : > { %v1915_v2 = vpop.f32.mrf.mxu0 }
 0x57b   : > { %1923 = vrot.lane.b32.xlu1 %v1915_v2, %s6937_s12  ;;  %v2423_v2 = vld [vmem:[#allocation18 + $0x3c8] sm:$0xff]  ;;  %3154 = vmatprep.subr.bf16.mxu0 %v5581_v62  ;;  %s5735_s12 = sshll.u32 %s7039_s19, 9  ;;  %s6940_s19 = smov [#allocation21]  }
 0x57c   : > { %v6115_v46 = vpop.f32.mrf.mxu0  ;;  %v2303_v62 = vld [vmem:[#allocation18 + $0x8] sm:$0xff]  ;;  %s7869_s17 = scalar_lea.hbm %s7978_s3, %s5735_s12  ;;  %s6831_s0 = sshll.u32 %s6940_s19, 4  ;;  %s6832_s0 = int_to_ptr.vmem [resolvable:$false] %s6831_s0 }
 0x57d   : > { %v5580_v46 = vcombine.low %v2414_v57, %v2422_v58  ;;  %v2302_v58 = vld [vmem:[#allocation18] sm:$0xff]  ;;  %s6833_s13 = scalar_lea.vmem %s6832_s0, 1024 }
 0x57e   : > { %v2057_v3 = vpop.f32.mrf.mxu0 }
 0x57f   : > { %2066 = vrot.lane.b32.xlu0 %v2057_v3, %s6938_s5  ;;  %v5582_v3 = vcombine.low %v2415_v61, %v2423_v2  ;;  %3155 = vmatpush1.bf16.msra.mxu0 %v5580_v46  ;;  %v2311_v46 = vld [vmem:[#allocation18 + $0x48] sm:$0xff] }
 0x580   : > { %v6126_v8 = vpop.f32.mrf.mxu0 }
 0x581   : > { %v5583_v8 = vcombine.high %v2415_v61, %v2423_v2  ;;  %v2310_v61 = vld [vmem:[#allocation18 + $0x40] sm:$0xff] }
 0x582   : > { %v2060_v5 = vpop.f32.mrf.mxu0  ;;  %v5469_v2 = vcombine.high %v2302_v58, %v2310_v61 }
 0x583   : > { %2068 = vrot.lane.b32.xlu1 %v2060_v5, %s6938_s5  ;;  %3207 = vmatprep.subr.bf16.mxu1 %v5583_v8  ;;  %v2398_v5 = vld [vmem:[#allocation18 + $0x300] sm:$0xff]  ;;  %v5470_v8 = vcombine.low %v2303_v62, %v2311_v46  ;;  %s5213_s5 = sshll.u32 %s634_s4, 4  ;;  %s7871_s5 = int_to_ptr.vmem [resolvable:$true] %s5213_s5 }
 0x584   : > { %v6127_v37 = vpop.f32.mrf.mxu0  ;;  %s6827_s6 = scalar_lea.vmem %s7871_s5, 512  ;;  %p6834_p2 = scmp.lt.s32.totalorder %s7871_s5, %s6832_s0 }
 0x585   : > { %v2406_v37 = vld [vmem:[#allocation18 + $0x340] sm:$0xff]  ;;  %p6828_p6 = scmp.ne.s32.totalorder %s7871_s5, %s6827_s6  ;;  %p6835_p9 = scmp.lt.s32.totalorder %s6833_s13, %s6827_s6 }
 0x587   : > { %p6829_p1 = pnand %p6828_p6, %p7979_p4  ;;  %p6836_p3 = por %p6835_p9, %p6834_p2 }
 0x589   : > { %p6830_p7 = pneg %p6829_p1 }
 0x58b   : > { %p6837_p10 = pnand %p6836_p3, %p6830_p7 }
 0x5a8   : > { %v1353_v11 = vpop.permute.xlu1 %1352 }
 0x5a9   : > { %1359 = vst.msk [vmem:[#allocation3] sm:$0xff] %vm1358_vm8, %v1353_v11  ;;  %v2399_v11 = vld [vmem:[#allocation18 + $0x308] sm:$0xff] }
 0x5ac   : > { %v1355_v47 = vpop.permute.xlu1 %1354 }
 0x5ad   : > { %1360 = vst.msk [vmem:[#allocation3 + $0x8] sm:$0xff] %vm1358_vm8, %v1355_v47  ;;  %v5565_v47 = vcombine.high %v2398_v5, %v2406_v37 }
 0x5af   : > { %3156 = vmatprep.subr.bf16.mxu0 %v5565_v47  ;;  %v7640_v47 = vld [vmem:[#allocation18 + $0x398] sm:$0xff] }
 0x5b0   : > { %v1499_v63 = vpop.permute.xlu0 %1498 }
 0x5b1   : > { %1505 = vst.msk [vmem:[#allocation3] sm:$0xff] %vm1504_vm9, %v1499_v63  ;;  %v2407_v63 = vld [vmem:[#allocation18 + $0x348] sm:$0xff] }
 0x5b4   : > { %v1501_v54 = vpop.permute.xlu1 %1500 }
 0x5b5   : > { %1506 = vst.msk [vmem:[#allocation3 + $0x8] sm:$0xff] %vm1504_vm9, %v1501_v54  ;;  %v5564_v54 = vcombine.low %v2398_v5, %v2406_v37  ;;  %v5471_v5 = vcombine.high %v2303_v62, %v2311_v46  ;;  %v7636_v37 = vld [vmem:[#allocation18 + $0x390] sm:$0xff] }
 0x5b7   : > { %3157 = vmatpush1.bf16.msra.mxu0 %v5564_v54 }
 0x5b8   : > { %v2074_v9 = vld [vmem:[#allocation3] sm:$0xff] }
 0x5bc   : > { %v2075_v53 = vld [vmem:[#allocation3 + $0x8] sm:$0xff] }
 0x5bd   : > { %v2078_v12 = vpack.c.bf16 %v2075_v53, %v2074_v9  ;;  %v5566_v9 = vcombine.low %v2399_v11, %v2407_v63  ;;  %v5567_v53 = vcombine.high %v2399_v11, %v2407_v63  ;;  %v7638_v11 = vld [vmem:[#allocation18 + $0x3d0] sm:$0xff] }
 0x5be   : > { %v5584_v63 = vcombine.low %v7636_v37, %v7638_v11  ;;  %v5585_v54 = vcombine.high %v7636_v37, %v7638_v11  ;;  %v2369_v37 = vld [vmem:[#allocation18 + $0x218] sm:$0xff] }
 0x5bf   : > { %6144 = vmatprep.mubr.bf16.mxu1 %v2078_v12  ;;  %v2382_v12 = vld [vmem:[#allocation18 + $0x280] sm:$0xff]  ;;  %v2377_v11 = vld [vmem:[#allocation18 + $0x258] sm:$0xff] }
 0x5c0   : > { %v1777_v13 = vpop.permute.xlu0 %1776 }
 0x5c1   : > { %1782 = vst.msk [vmem:[#allocation3 + $0x10] sm:$0xff] %vm1212_vm7, %v1777_v13  ;;  %v2390_v13 = vld [vmem:[#allocation18 + $0x2c0] sm:$0xff] }
 0x5c4   : > { %v1779_v43 = vpop.permute.xlu1 %1778 }
 0x5c5   : > { %1783 = vst.msk [vmem:[#allocation3 + $0x18] sm:$0xff] %vm1212_vm7, %v1779_v43  ;;  %v2383_v43 = vld [vmem:[#allocation18 + $0x288] sm:$0xff] }
 0x5e9   : > { %v1922_v7 = vpop.permute.xlu0 %1921 }
 0x5ea   : > { %1927 = vst.msk [vmem:[#allocation3 + $0x10] sm:$0xff] %vm1358_vm8, %v1922_v7  ;;  %v5549_v7 = vcombine.high %v2382_v12, %v2390_v13 }
 0x5ec   : > { %3158 = vmatprep.subr.bf16.mxu0 %v5549_v7 }
 0x5ed   : > { %v1924_v15 = vpop.permute.xlu1 %1923 }
 0x5ee   : > { %1928 = vst.msk [vmem:[#allocation3 + $0x18] sm:$0xff] %vm1358_vm8, %v1924_v15  ;;  %v2391_v15 = vld [vmem:[#allocation18 + $0x2c8] sm:$0xff] }
 0x5f1   : > { %v2067_v16 = vpop.permute.xlu0 %2066 }
 0x5f2   : > { %2072 = vst.msk [vmem:[#allocation3 + $0x10] sm:$0xff] %vm1504_vm9, %v2067_v16  ;;  %v5548_v16 = vcombine.low %v2382_v12, %v2390_v13 }
 0x5f4   : > { %3159 = vmatpush1.bf16.msra.mxu0 %v5548_v16 }
 0x5f5   : > { %v2069_v32 = vpop.permute.xlu1 %2068 }
 0x5f6   : > { %2073 = vst.msk [vmem:[#allocation3 + $0x18] sm:$0xff] %vm1504_vm9, %v2069_v32  ;;  %v5550_v32 = vcombine.low %v2383_v43, %v2391_v15 }
 0x5f9   : > { %v2076_v18 = vld [vmem:[#allocation3 + $0x10] sm:$0xff] }
 0x5fd   : > { %v2077_v20 = vld [vmem:[#allocation3 + $0x18] sm:$0xff] }
 0x5fe   : > { %v2079_v21 = vpack.c.bf16 %v2077_v20, %v2076_v18  ;;  %v5551_v18 = vcombine.high %v2383_v43, %v2391_v15  ;;  %v2366_v20 = vld [vmem:[#allocation18 + $0x200] sm:$0xff] }
 0x600   : > { %6145 = vmatmul.mubr.bf16.vlgmr.msra.gmra.mxu1 %v2079_v21  ;;  %v2374_v21 = vld [vmem:[#allocation18 + $0x240] sm:$0xff] }
 0x601   : > { %3239 = vmatprep.mubr.bf16.mxu1 %v6934_v0  ;;  %3208 = vmatpush1.bf16.msra.mxu1 %v5582_v3  ;;  %v5468_v3 = vcombine.low %v2302_v58, %v2310_v61  ;;  %v5467_v58 = vld [vmem:[#allocation16] ss:$0 sm:$0xff] }
 0x602   : > { %3209 = vmatprep.subr.bf16.mxu1 %v5567_v53 }
 0x605   : > { %3210 = vmatpush1.bf16.msra.mxu1 %v5566_v9  ;;  %v7646_v9 = vld [vmem:[#allocation18 + $0x3d8] sm:$0xff] }
 0x606   : > { %3211 = vmatprep.subr.bf16.mxu1 %v5551_v18  ;;  %v5586_v53 = vcombine.low %v7640_v47, %v7646_v9  ;;  %v5587_v12 = vcombine.high %v7640_v47, %v7646_v9 }
 0x609   : > { %3212 = vmatpush1.bf16.msra.mxu1 %v5550_v32 }
 0x6c0   : > { %v6146_v14 = vpop.f32.mrf.mxu1 }
 0x6c1   : > { %v2194_v55 = vadd.f32 %v6146_v14, %v5457_v51  ;;  %v2367_v14 = vld [vmem:[#allocation18 + $0x208] sm:$0xff] }
 0x6c2   : > { %v2185_v24 = vpop.f32.mrf.mxu1 }
 0x6c3   : > { %v2186_v22 = vadd.f32 %v5457_v51, %v2185_v24  ;;  %v2204_v31 = vadd.f32 %v6561_v1, %v2194_v55  ;;  %v2375_v24 = vld [vmem:[#allocation18 + $0x248] sm:$0xff] }
 0x6c4   : > { %v6147_v10 = vpop.f32.mrf.mxu1  ;;  %v5535_v55 = vcombine.high %v2367_v14, %v2375_v24 }
 0x6c5   : > { %v2202_v59 = vadd.f32 %v6559_v52, %v2186_v22  ;;  %v2197_v23 = vadd.f32 %v6147_v10, %v5457_v51  ;;  %v5532_v22 = vcombine.low %v2366_v20, %v2374_v21  ;;  %v5534_v10 = vcombine.low %v2367_v14, %v2375_v24  ;;  %v2350_v52 = vld [vmem:[#allocation18 + $0x180] sm:$0xff] }
 0x6c6   : > { %v2188_v27 = vpop.f32.mrf.mxu1  ;;  %3213 = vmatprep.subr.bf16.mxu1 %v5535_v55 }
 0x6c7   : > { %v2189_v28 = vadd.f32 %v5457_v51, %v2188_v27  ;;  %2206 = vadd.xlane.f32.xlu0 %v2202_v59  ;;  %v2205_v36 = vadd.f32 %v6562_v35, %v2197_v23  ;;  %v5533_v51 = vcombine.high %v2366_v20, %v2374_v21  ;;  %v2351_v27 = vld [vmem:[#allocation18 + $0x188] sm:$0xff]  ;;  %3214 = vmatpush1.bf16.msra.mxu1 %v5534_v10  ;;  %v2342_v35 = vld [vmem:[#allocation18 + $0x140] sm:$0xff] }
 0x6c8   : > { %v2359_v23 = vld [vmem:[#allocation18 + $0x1c8] sm:$0xff] }
 0x6c9   : > { %v2203_v17 = vadd.f32 %v6560_v29, %v2189_v28  ;;  %3160 = vmatprep.subr.bf16.mxu0 %v5533_v51  ;;  %v5519_v1 = vcombine.high %v2351_v27, %v2359_v23 }
 0x6ca   : > { %3161 = vmatpush1.bf16.msra.mxu0 %v5532_v22 }
 0x6cb   : > { %2208 = vadd.xlane.f32.xlu1 %v2203_v17  ;;  %2210 = vadd.xlane.f32.xlu0 %v2204_v31 }
 0x6cc   : > { %3215 = vmatprep.subr.bf16.mxu1 %v5519_v1 }
 0x6cf   : > { %2212 = vadd.xlane.f32.xlu0 %v2205_v36 }
 0x750   : > { %v2207_v39 = vpop.xlane.xlu0 %2206 }
 0x751   : > { %v2215_v40 = vmul.f32 0.0078125, %v2207_v39 }
 0x753   : > { %v7620_v4 = vsub.f32 %v2202_v59, %v2215_v40  ;;  %v2358_v59 = vld [vmem:[#allocation18 + $0x1c0] sm:$0xff]  ;;  %v2343_v40 = vld [vmem:[#allocation18 + $0x148] sm:$0xff] }
 0x754   : > { %v2209_v6 = vpop.xlane.xlu1 %2208  ;;  %v2211_v41 = vpop.xlane.xlu0 %2210  ;;  %v5517_v28 = vcombine.high %v2350_v52, %v2358_v59  ;;  %v5516_v29 = vcombine.low %v2350_v52, %v2358_v59 }
 0x755   : > { %v2216_v42 = vmul.f32 0.0078125, %v2209_v6  ;;  %v2217_v44 = vmul.f32 0.0078125, %v2211_v41  ;;  %v2223_v45 = vmul.f32 %v7620_v4, %v7620_v4 }
 0x756   : > { %3162 = vmatprep.subr.bf16.mxu0 %v5517_v28 }
 0x757   : > { %v7624_v19 = vsub.f32 %v2203_v17, %v2216_v42  ;;  %v7626_v49 = vsub.f32 %v2204_v31, %v2217_v44  ;;  %2227 = vadd.xlane.f32.xlu1 %v2223_v45  ;;  %v5518_v17 = vcombine.low %v2351_v27, %v2359_v23  ;;  %3163 = vmatpush1.bf16.msra.mxu0 %v5516_v29  ;;  %v2334_v31 = vld [vmem:[#allocation18 + $0x100] sm:$0xff] }
 0x758   : > { %v2213_v50 = vpop.xlane.xlu0 %2212  ;;  %v5501_v39 = vcombine.high %v2334_v31, %v2342_v35  ;;  %v5500_v6 = vcombine.low %v2334_v31, %v2342_v35  ;;  %v2318_v44 = vld [vmem:[#allocation18 + $0x80] sm:$0xff] }
 0x759   : > { %v2218_v48 = vmul.f32 0.0078125, %v2213_v50  ;;  %v2224_v56 = vmul.f32 %v7624_v19, %v7624_v19  ;;  %v2225_v26 = vmul.f32 %v7626_v49, %v7626_v49  ;;  %3216 = vmatpush1.bf16.msra.mxu1 %v5518_v17  ;;  %v2326_v45 = vld [vmem:[#allocation18 + $0xc0] sm:$0xff]  ;;  %v2319_v50 = vld [vmem:[#allocation18 + $0x88] sm:$0xff] }
 0x75a   : > { %3164 = vmatprep.subr.bf16.mxu0 %v5501_v39 }
 0x75b   : > { %v7632_v25 = vsub.f32 %v2205_v36, %v2218_v48  ;;  %2229 = vadd.xlane.f32.xlu0 %v2224_v56  ;;  %2231 = vadd.xlane.f32.xlu1 %v2225_v26  ;;  %v2335_v36 = vld [vmem:[#allocation18 + $0x108] sm:$0xff]  ;;  %v5485_v48 = vcombine.high %v2318_v44, %v2326_v45  ;;  %v5484_v26 = vcombine.low %v2318_v44, %v2326_v45 }
 0x75c   : > { %v5502_v41 = vcombine.low %v2335_v36, %v2343_v40  ;;  %v5503_v42 = vcombine.high %v2335_v36, %v2343_v40  ;;  %3165 = vmatpush1.bf16.msra.mxu0 %v5500_v6  ;;  %v2327_v56 = vld [vmem:[#allocation18 + $0xc8] sm:$0xff] }
 0x75d   : > { %v2226_v30 = vmul.f32 %v7632_v25, %v7632_v25  ;;  %v5487_v57 = vcombine.high %v2319_v50, %v2327_v56  ;;  %3166 = vmatprep.subr.bf16.mxu0 %v5485_v48  ;;  %v5466_v48 = vld [vmem:[#allocation15] ss:$0 sm:$0xff] }
 0x75e   : > { %3217 = vmatprep.subr.bf16.mxu1 %v5503_v42 }
 0x75f   : > { %2233 = vadd.xlane.f32.xlu0 %v2226_v30  ;;  %3218 = vmatpush1.bf16.msra.mxu1 %v5502_v41  ;;  %v5486_v30 = vcombine.low %v2319_v50, %v2327_v56 }
 0x760   : > { %3219 = vmatprep.subr.bf16.mxu1 %v5487_v57  ;;  %3167 = vmatpush1.bf16.msra.mxu0 %v5484_v26 }
 0x761   : > { %3168 = vmatprep.subr.bf16.mxu0 %v5469_v2  ;;  %v2400_v2 = vld [vmem:[#allocation18 + $0x310] sm:$0xff] }
 0x763   : > { %3220 = vmatpush1.bf16.msra.mxu1 %v5486_v30 }
 0x764   : > { %3221 = vmatprep.subr.bf16.mxu1 %v5471_v5  ;;  %3169 = vmatpush1.bf16.msra.mxu0 %v5468_v3  ;;  %v2408_v3 = vld [vmem:[#allocation18 + $0x350] sm:$0xff]  ;;  %v2409_v5 = vld [vmem:[#allocation18 + $0x358] sm:$0xff] }
 0x765   : > { %3260 = vmatprep.subr.bf16.mxu0 %v5585_v54 }
 0x767   : > { %3222 = vmatpush1.bf16.msra.mxu1 %v5470_v8  ;;  %v2401_v8 = vld [vmem:[#allocation18 + $0x318] sm:$0xff] }
 0x768   : > { %3313 = vmatprep.subr.bf16.mxu1 %v5587_v12 }
 0x7e0   : > { %v2228_v13 = vpop.xlane.xlu1 %2227 }
 0x7e1   : > { %v2236_v43 = vmul.f32 0.007874016, %v2228_v13  ;;  %v5569_v13 = vcombine.high %v2400_v2, %v2408_v3 }
 0x7e3   : > { %6527 = vrsqrt.f32 %v2236_v43  ;;  %vm2242_vm10 = vcmp.eq.f32.partialorder %v2236_v43, inf  ;;  %v2245_v51 = vand.u32 2147483648, %v2236_v43  ;;  %vm2244_vm11 = vcmp.eq.f32.partialorder %v2236_v43, 0.0 }
 0x7e4   : > { %v2232_v7 = vpop.xlane.xlu1 %2231  ;;  %v2230_v15 = vpop.xlane.xlu0 %2229 }
 0x7e5   : > { %v2238_v16 = vmul.f32 0.007874016, %v2232_v7  ;;  %v2237_v32 = vmul.f32 0.007874016, %v2230_v15  ;;  %v2384_v7 = vld [vmem:[#allocation18 + $0x290] sm:$0xff] }
 0x7e7   : > { %6529 = vrsqrt.f32 %v2238_v16  ;;  %vm2256_vm12 = vcmp.eq.f32.partialorder %v2238_v16, inf  ;;  %vm2258_vm13 = vcmp.eq.f32.partialorder %v2238_v16, 0.0  ;;  %v2259_v27 = vand.u32 2147483648, %v2238_v16 }
 0x7e8   : > { %6531 = vrsqrt.f32 %v2237_v32  ;;  %v2234_v18 = vpop.xlane.xlu0 %2233  ;;  %vm2249_vm14 = vcmp.eq.f32.partialorder %v2237_v32, inf  ;;  %v2252_v29 = vand.u32 2147483648, %v2237_v32  ;;  %vm2251_vm15 = vcmp.eq.f32.partialorder %v2237_v32, 0.0 }
 0x7e9   : > { %v2239_v20 = vmul.f32 0.007874016, %v2234_v18  ;;  %v5568_v18 = vcombine.low %v2400_v2, %v2408_v3  ;;  %v2313_v2 = vld [vmem:[#allocation18 + $0x58] sm:$0xff] }
 0x7eb   : > { %6533 = vrsqrt.f32 %v2239_v20  ;;  %vm2263_vm0 = vcmp.eq.f32.partialorder %v2239_v20, inf  ;;  %v2266_v6 = vand.u32 2147483648, %v2239_v20  ;;  %vm2265_vm1 = vcmp.eq.f32.partialorder %v2239_v20, 0.0 }
 0x7f0   : > { %v6528_v21 = vpop.eup %6527 }
 0x7f1   : > { %v2241_v14 = vmul.f32 %v6528_v21, %v2236_v43 }
 0x7f3   : > { %v2243_v24 = vsel %vm2242_vm10, %v2236_v43, %v2241_v14  ;;  %v5571_v43 = vcombine.high %v2401_v8, %v2409_v5 }
 0x7f4   : > { %v6530_v22 = vpop.eup %6529  ;;  %v2246_v10 = vsel %vm2244_vm11, %v2245_v51, %v2243_v24  ;;  %v2368_v24 = vld [vmem:[#allocation18 + $0x210] sm:$0xff] }
 0x7f5   : > { %v6532_v55 = vpop.eup %6531  ;;  %v2268_v52 = vadd.f32 1e-06, %v2246_v10  ;;  %v2255_v59 = vmul.f32 %v6530_v22, %v2238_v16  ;;  %v2376_v22 = vld [vmem:[#allocation18 + $0x250] sm:$0xff] }
 0x7f6   : > { %v2248_v28 = vmul.f32 %v6532_v55, %v2237_v32  ;;  %v5537_v10 = vcombine.high %v2368_v24, %v2376_v22  ;;  %v5539_v55 = vcombine.high %v2369_v37, %v2377_v11 }
 0x7f7   : > { %6535 = vrcp.f32 %v2268_v52  ;;  %v2257_v23 = vsel %vm2256_vm12, %v2238_v16, %v2255_v59  ;;  %v2392_v16 = vld [vmem:[#allocation18 + $0x2d0] sm:$0xff] }
 0x7f8   : > { %v6534_v17 = vpop.eup %6533  ;;  %v2260_v1 = vsel %vm2258_vm13, %v2259_v27, %v2257_v23  ;;  %v2250_v31 = vsel %vm2249_vm14, %v2237_v32, %v2248_v28  ;;  %v2385_v32 = vld [vmem:[#allocation18 + $0x298] sm:$0xff]  ;;  %v5553_v21 = vcombine.high %v2384_v7, %v2392_v16  ;;  %v5552_v47 = vcombine.low %v2384_v7, %v2392_v16  ;;  %v2352_v52 = vld [vmem:[#allocation18 + $0x190] sm:$0xff]  ;;  %v2427_v7 = vld [vmem:[#allocation18 + $0x3e8] sm:$0xff] }
 0x7f9   : > { %v2253_v35 = vsel %vm2251_vm15, %v2252_v29, %v2250_v31  ;;  %v2262_v36 = vmul.f32 %v6534_v17, %v2239_v20  ;;  %v2270_v39 = vadd.f32 1e-06, %v2260_v1  ;;  %v2360_v59 = vld [vmem:[#allocation18 + $0x1d0] sm:$0xff]  ;;  %v2353_v27 = vld [vmem:[#allocation18 + $0x198] sm:$0xff]  ;;  %v5536_v23 = vcombine.low %v2368_v24, %v2376_v22 }
 0x7fa   : > { %v2269_v40 = vadd.f32 1e-06, %v2253_v35  ;;  %v2361_v28 = vld [vmem:[#allocation18 + $0x1d8] sm:$0xff]  ;;  %v5538_v29 = vcombine.low %v2369_v37, %v2377_v11  ;;  %v5521_v17 = vcombine.high %v2352_v52, %v2360_v59  ;;  %v2336_v31 = vld [vmem:[#allocation18 + $0x110] sm:$0xff]  ;;  %v2386_v11 = vld [vmem:[#allocation18 + $0x2a0] sm:$0xff] }
 0x7fb   : > { %v2264_v41 = vsel %vm2263_vm0, %v2239_v20, %v2262_v36  ;;  %v5570_v20 = vcombine.low %v2401_v8, %v2409_v5  ;;  %v5523_v1 = vcombine.high %v2353_v27, %v2361_v28  ;;  %v2344_v35 = vld [vmem:[#allocation18 + $0x150] sm:$0xff]  ;;  %v2337_v36 = vld [vmem:[#allocation18 + $0x118] sm:$0xff] }
 0x7fc   : > { %6537 = vrcp.f32 %v2269_v40  ;;  %v2267_v42 = vsel %vm2265_vm1, %v2266_v6, %v2264_v41  ;;  %v5520_v40 = vcombine.low %v2352_v52, %v2360_v59  ;;  %v5522_v6 = vcombine.low %v2353_v27, %v2361_v28  ;;  %v2370_v28 = vld [vmem:[#allocation18 + $0x220] sm:$0xff] }
 0x7fd   : > { %v2271_v44 = vadd.f32 1e-06, %v2267_v42  ;;  %6539 = vrcp.f32 %v2270_v39  ;;  %v2345_v39 = vld [vmem:[#allocation18 + $0x158] sm:$0xff]  ;;  %v5505_v41 = vcombine.high %v2336_v31, %v2344_v35 }
 0x7fe   : > { %v5507_v42 = vcombine.high %v2337_v36, %v2345_v39 }
 0x7ff   : > { %6541 = vrcp.f32 %v2271_v44  ;;  %v2320_v44 = vld [vmem:[#allocation18 + $0x90] sm:$0xff] }
 0x804   : > { %v6536_v45 = vpop.eup %6535 }
 0x805   : > { %v2276_v50 = vmul.f32 %v6536_v45, %v7620_v4  ;;  %v2328_v45 = vld [vmem:[#allocation18 + $0xd0] sm:$0xff] }
 0x807   : > { %v2286_v30 = vmul.f32 %v5466_v48, %v2276_v50  ;;  %v2321_v50 = vld [vmem:[#allocation18 + $0x98] sm:$0xff] }
 0x809   : > { %v6538_v56 = vpop.eup %6537  ;;  %v7656_v12 = vadd.f32 %v5467_v58, %v2286_v30  ;;  %v5489_v30 = vcombine.high %v2320_v44, %v2328_v45 }
 0x80a   : > { %v2277_v26 = vmul.f32 %v6538_v56, %v7624_v19  ;;  %v6540_v57 = vpop.eup %6539  ;;  %v5504_v56 = vcombine.low %v2336_v31, %v2344_v35 }
 0x80b   : > { %v2278_v54 = vmul.f32 %v6540_v57, %v7626_v49 }
 0x80c   : > { %v6542_v61 = vpop.eup %6541  ;;  %v2287_v62 = vmul.f32 %v5466_v48, %v2277_v26  ;;  %v5506_v26 = vcombine.low %v2337_v36, %v2345_v39  ;;  %v2354_v39 = vld [vmem:[#allocation18 + $0x1a0] sm:$0xff] }
 0x80d   : > { %v2279_v46 = vmul.f32 %v6542_v61, %v7632_v25  ;;  %v2393_v25 = vld [vmem:[#allocation18 + $0x2d8] sm:$0xff]  ;;  %v2288_v49 = vmul.f32 %v5466_v48, %v2278_v54  ;;  %v2312_v61 = vld [vmem:[#allocation18 + $0x50] sm:$0xff]  ;;  %v2418_v54 = vld [vmem:[#allocation18 + $0x3a0] sm:$0xff] }
 0x80e   : > { %v7658_v4 = vadd.f32 %v5467_v58, %v2287_v62  ;;  %v5555_v14 = vcombine.high %v2385_v32, %v2393_v25  ;;  %v5554_v9 = vcombine.low %v2385_v32, %v2393_v25  ;;  %v2305_v62 = vld [vmem:[#allocation18 + $0x18] sm:$0xff] }
 0x80f   : > { %v2289_v15 = vmul.f32 %v5466_v48, %v2279_v46  ;;  %v2329_v48 = vld [vmem:[#allocation18 + $0xd8] sm:$0xff]  ;;  %v5488_v46 = vcombine.low %v2320_v44, %v2328_v45  ;;  %v5475_v5 = vcombine.high %v2305_v62, %v2313_v2  ;;  %v5474_v16 = vcombine.low %v2305_v62, %v2313_v2  ;;  %v2322_v2 = vld [vmem:[#allocation18 + $0xa0] sm:$0xff] }
 0x810   : > { %v7662_v19 = vpack.c.bf16 %v7658_v4, %v7656_v12  ;;  %v5491_v57 = vcombine.high %v2321_v50, %v2329_v48  ;;  %v5490_v3 = vcombine.low %v2321_v50, %v2329_v48  ;;  %v2338_v48 = vld [vmem:[#allocation18 + $0x120] sm:$0xff] }
 0x811   : > { %v7672_v51 = vadd.f32 %v5467_v58, %v2289_v15 }
 0x812   : > { %3187 = vmatmul.mubr.bf16.vlgmr.msra.gmra.mxu0 %v7662_v19  ;;  %3240 = vmatmul.mubr.bf16.vlgmr.msra.gmra.mxu1 %v7662_v19 }
 0x813   : > { %3261 = vmatpush1.bf16.msra.mxu0 %v5584_v63  ;;  %3314 = vmatpush1.bf16.msra.mxu1 %v5586_v53  ;;  %7974 = vst [vmem:[#allocation30_spill] sm:$0xff] %v7672_v51  ;;  %v7676_v63 = vadd.f32 %v5467_v58, %v2288_v49  ;;  %v2304_v58 = vld [vmem:[#allocation18 + $0x10] sm:$0xff]  ;;  %v2402_v49 = vld [vmem:[#allocation18 + $0x320] sm:$0xff] }
 0x814   : > { %3262 = vmatprep.subr.bf16.mxu0 %v5569_v13  ;;  %3315 = vmatprep.subr.bf16.mxu1 %v5571_v43  ;;  %v5473_v8 = vcombine.high %v2304_v58, %v2312_v61  ;;  %v2426_v13 = vld [vmem:[#allocation18 + $0x3e0] sm:$0xff]  ;;  %v2419_v43 = vld [vmem:[#allocation18 + $0x3a8] sm:$0xff]  ;;  %v5472_v15 = vcombine.low %v2304_v58, %v2312_v61 }
 0x815   : > { %3196 = vmatprep.mubr.bf16.mxu0 %v6934_v0  ;;  %3249 = vmatprep.mubr.bf16.mxu1 %v6934_v0  ;;  %v7680_v53 = vpack.c.bf16 %v7672_v51, %v7676_v63  ;;  %v5589_v32 = vcombine.high %v2418_v54, %v2426_v13  ;;  %v5591_v25 = vcombine.high %v2419_v43, %v2427_v7 }
 0x816   : > { %v5590_v24 = vcombine.low %v2419_v43, %v2427_v7  ;;  %v2306_v7 = vld [vmem:[#allocation18 + $0x20] sm:$0xff] }
 0x817   : > { %3263 = vmatpush1.bf16.msra.mxu0 %v5568_v18  ;;  %3316 = vmatpush1.bf16.msra.mxu1 %v5570_v20  ;;  %v2410_v18 = vld [vmem:[#allocation18 + $0x360] sm:$0xff]  ;;  %v2403_v20 = vld [vmem:[#allocation18 + $0x328] sm:$0xff] }
 0x818   : > { %3264 = vmatprep.subr.bf16.mxu0 %v5553_v21  ;;  %3317 = vmatprep.subr.bf16.mxu1 %v5555_v14  ;;  %v2411_v21 = vld [vmem:[#allocation18 + $0x368] sm:$0xff]  ;;  %v5588_v14 = vcombine.low %v2418_v54, %v2426_v13  ;;  %v5573_v22 = vcombine.high %v2402_v49, %v2410_v18 }
 0x819   : > { %v5575_v37 = vcombine.high %v2403_v20, %v2411_v21  ;;  %v5574_v52 = vcombine.low %v2403_v20, %v2411_v21  ;;  %v2420_v21 = vld [vmem:[#allocation18 + $0x3b0] sm:$0xff] }
 0x81a   : > { %3197 = vmatmul.mubr.bf16.gmra.mxu0 %v7680_v53  ;;  %3250 = vmatmul.mubr.bf16.gmra.mxu1 %v7680_v53 }
 0x81b   : > { %3265 = vmatpush1.bf16.msra.mxu0 %v5552_v47  ;;  %3318 = vmatpush1.bf16.msra.mxu1 %v5554_v9  ;;  %v2394_v47 = vld [vmem:[#allocation18 + $0x2e0] sm:$0xff]  ;;  %v2387_v9 = vld [vmem:[#allocation18 + $0x2a8] sm:$0xff] }
 0x81c   : > { %3266 = vmatprep.subr.bf16.mxu0 %v5537_v10  ;;  %3319 = vmatprep.subr.bf16.mxu1 %v5539_v55  ;;  %v2395_v10 = vld [vmem:[#allocation18 + $0x2e8] sm:$0xff]  ;;  %v5572_v55 = vcombine.low %v2402_v49, %v2410_v18  ;;  %v5557_v59 = vcombine.high %v2386_v11, %v2394_v47 }
 0x81d   : > { %3292 = vmatprep.mubr.bf16.mxu0 %v6934_v0  ;;  %3345 = vmatprep.mubr.bf16.mxu1 %v6934_v0  ;;  %v5559_v27 = vcombine.high %v2387_v9, %v2395_v10  ;;  %v5558_v31 = vcombine.low %v2387_v9, %v2395_v10  ;;  %v2404_v10 = vld [vmem:[#allocation18 + $0x330] sm:$0xff] }
 0x81f   : > { %3267 = vmatpush1.bf16.msra.mxu0 %v5536_v23  ;;  %3320 = vmatpush1.bf16.msra.mxu1 %v5538_v29  ;;  %v2378_v23 = vld [vmem:[#allocation18 + $0x260] sm:$0xff]  ;;  %v2371_v29 = vld [vmem:[#allocation18 + $0x228] sm:$0xff] }
 0x820   : > { %3268 = vmatprep.subr.bf16.mxu0 %v5521_v17  ;;  %3321 = vmatprep.subr.bf16.mxu1 %v5523_v1  ;;  %v2379_v17 = vld [vmem:[#allocation18 + $0x268] sm:$0xff]  ;;  %v5556_v1 = vcombine.low %v2386_v11, %v2394_v47  ;;  %v5541_v35 = vcombine.high %v2370_v28, %v2378_v23 }
 0x821   : > { %v5543_v36 = vcombine.high %v2371_v29, %v2379_v17  ;;  %v5542_v44 = vcombine.low %v2371_v29, %v2379_v17  ;;  %v2388_v17 = vld [vmem:[#allocation18 + $0x2b0] sm:$0xff] }
 0x823   : > { %3269 = vmatpush1.bf16.msra.mxu0 %v5520_v40  ;;  %3322 = vmatpush1.bf16.msra.mxu1 %v5522_v6  ;;  %v2362_v40 = vld [vmem:[#allocation18 + $0x1e0] sm:$0xff]  ;;  %v2355_v6 = vld [vmem:[#allocation18 + $0x1a8] sm:$0xff] }
 0x824   : > { %3270 = vmatprep.subr.bf16.mxu0 %v5505_v41  ;;  %3323 = vmatprep.subr.bf16.mxu1 %v5507_v42  ;;  %v2363_v41 = vld [vmem:[#allocation18 + $0x1e8] sm:$0xff]  ;;  %v5540_v42 = vcombine.low %v2370_v28, %v2378_v23  ;;  %v5525_v45 = vcombine.high %v2354_v39, %v2362_v40 }
 0x825   : > { %v5527_v50 = vcombine.high %v2355_v6, %v2363_v41  ;;  %v5526_v58 = vcombine.low %v2355_v6, %v2363_v41  ;;  %v2372_v41 = vld [vmem:[#allocation18 + $0x230] sm:$0xff] }
 0x827   : > { %3271 = vmatpush1.bf16.msra.mxu0 %v5504_v56  ;;  %3324 = vmatpush1.bf16.msra.mxu1 %v5506_v26  ;;  %v2346_v56 = vld [vmem:[#allocation18 + $0x160] sm:$0xff]  ;;  %v2339_v26 = vld [vmem:[#allocation18 + $0x128] sm:$0xff] }
 0x828   : > { %3272 = vmatprep.subr.bf16.mxu0 %v5489_v30  ;;  %3325 = vmatprep.subr.bf16.mxu1 %v5491_v57  ;;  %v2347_v30 = vld [vmem:[#allocation18 + $0x168] sm:$0xff]  ;;  %v5524_v57 = vcombine.low %v2354_v39, %v2362_v40  ;;  %v5509_v61 = vcombine.high %v2338_v48, %v2346_v56 }
 0x829   : > { %v5511_v62 = vcombine.high %v2339_v26, %v2347_v30  ;;  %v5510_v54 = vcombine.low %v2339_v26, %v2347_v30  ;;  %v2356_v30 = vld [vmem:[#allocation18 + $0x1b0] sm:$0xff] }
 0x82b   : > { %3273 = vmatpush1.bf16.msra.mxu0 %v5488_v46  ;;  %3326 = vmatpush1.bf16.msra.mxu1 %v5490_v3  ;;  %v2330_v46 = vld [vmem:[#allocation18 + $0xe0] sm:$0xff]  ;;  %v2323_v3 = vld [vmem:[#allocation18 + $0xa8] sm:$0xff] }
 0x82c   : > { %3274 = vmatprep.subr.bf16.mxu0 %v5473_v8  ;;  %3327 = vmatprep.subr.bf16.mxu1 %v5475_v5  ;;  %v2331_v8 = vld [vmem:[#allocation18 + $0xe8] sm:$0xff]  ;;  %v5508_v5 = vcombine.low %v2338_v48, %v2346_v56  ;;  %v5493_v13 = vcombine.high %v2322_v2, %v2330_v46 }
 0x82d   : > { %v5495_v43 = vcombine.high %v2323_v3, %v2331_v8  ;;  %v5494_v49 = vcombine.low %v2323_v3, %v2331_v8  ;;  %v2340_v8 = vld [vmem:[#allocation18 + $0x130] sm:$0xff] }
 0x82f   : > { %3275 = vmatpush1.bf16.msra.mxu0 %v5472_v15  ;;  %3328 = vmatpush1.bf16.msra.mxu1 %v5474_v16  ;;  %v2314_v15 = vld [vmem:[#allocation18 + $0x60] sm:$0xff]  ;;  %v2307_v16 = vld [vmem:[#allocation18 + $0x28] sm:$0xff] }
 0x830   : > { %3366 = vmatprep.subr.bf16.mxu0 %v5589_v32  ;;  %3419 = vmatprep.subr.bf16.mxu1 %v5591_v25  ;;  %v2315_v32 = vld [vmem:[#allocation18 + $0x68] sm:$0xff]  ;;  %v5492_v25 = vcombine.low %v2322_v2, %v2330_v46  ;;  %v5477_v18 = vcombine.high %v2306_v7, %v2314_v15 }
 0x831   : > { %v5479_v20 = vcombine.high %v2307_v16, %v2315_v32  ;;  %v5478_v11 = vcombine.low %v2307_v16, %v2315_v32  ;;  %v2324_v32 = vld [vmem:[#allocation18 + $0xb0] sm:$0xff] }
 0x832   : > { %3293 = vmatmul.mubr.bf16.vlgmr.msra.gmra.mxu0 %v7662_v19  ;;  %3346 = vmatmul.mubr.bf16.vlgmr.msra.gmra.mxu1 %v7662_v19 }
 0x833   : > { %3367 = vmatpush1.bf16.msra.mxu0 %v5588_v14  ;;  %3420 = vmatpush1.bf16.msra.mxu1 %v5590_v24  ;;  %v2428_v14 = vld [vmem:[#allocation18 + $0x3f0] sm:$0xff]  ;;  %v2421_v24 = vld [vmem:[#allocation18 + $0x3b8] sm:$0xff] }
 0x834   : > { %3368 = vmatprep.subr.bf16.mxu0 %v5573_v22  ;;  %3421 = vmatprep.subr.bf16.mxu1 %v5575_v37  ;;  %v2429_v22 = vld [vmem:[#allocation18 + $0x3f8] sm:$0xff]  ;;  %v5476_v37 = vcombine.low %v2306_v7, %v2314_v15  ;;  %v5593_v47 = vcombine.high %v2420_v21, %v2428_v14 }
 0x835   : > { %3302 = vmatprep.mubr.bf16.mxu0 %v6934_v0  ;;  %3355 = vmatprep.mubr.bf16.mxu1 %v6934_v0  ;;  %v5595_v9 = vcombine.high %v2421_v24, %v2429_v22  ;;  %v5594_v28 = vcombine.low %v2421_v24, %v2429_v22  ;;  %v2308_v22 = vld [vmem:[#allocation18 + $0x30] sm:$0xff] }
 0x837   : > { %3369 = vmatpush1.bf16.msra.mxu0 %v5572_v55  ;;  %3422 = vmatpush1.bf16.msra.mxu1 %v5574_v52  ;;  %v2412_v55 = vld [vmem:[#allocation18 + $0x370] sm:$0xff]  ;;  %v2405_v52 = vld [vmem:[#allocation18 + $0x338] sm:$0xff] }
 0x838   : > { %3370 = vmatprep.subr.bf16.mxu0 %v5557_v59  ;;  %3423 = vmatprep.subr.bf16.mxu1 %v5559_v27  ;;  %v2413_v59 = vld [vmem:[#allocation18 + $0x378] sm:$0xff]  ;;  %v5592_v27 = vcombine.low %v2420_v21, %v2428_v14  ;;  %v5577_v23 = vcombine.high %v2404_v10, %v2412_v55 }
 0x839   : > { %v5579_v29 = vcombine.high %v2405_v52, %v2413_v59  ;;  %v5578_v39 = vcombine.low %v2405_v52, %v2413_v59 }
 0x83a   : > { %3303 = vmatmul.mubr.bf16.gmra.mxu0 %v7680_v53  ;;  %3356 = vmatmul.mubr.bf16.gmra.mxu1 %v7680_v53 }
 0x83b   : > { %3371 = vmatpush1.bf16.msra.mxu0 %v5556_v1  ;;  %3424 = vmatpush1.bf16.msra.mxu1 %v5558_v31  ;;  %v2396_v1 = vld [vmem:[#allocation18 + $0x2f0] sm:$0xff]  ;;  %v2389_v31 = vld [vmem:[#allocation18 + $0x2b8] sm:$0xff] }
 0x83c   : > { %3372 = vmatprep.subr.bf16.mxu0 %v5541_v35  ;;  %3425 = vmatprep.subr.bf16.mxu1 %v5543_v36  ;;  %v2397_v35 = vld [vmem:[#allocation18 + $0x2f8] sm:$0xff]  ;;  %v5576_v36 = vcombine.low %v2404_v10, %v2412_v55  ;;  %v5561_v40 = vcombine.high %v2388_v17, %v2396_v1 }
 0x83d   : > { %3398 = vmatprep.mubr.bf16.mxu0 %v6934_v0  ;;  %3451 = vmatprep.mubr.bf16.mxu1 %v6934_v0  ;;  %v5563_v6 = vcombine.high %v2389_v31, %v2397_v35  ;;  %v5562_v48 = vcombine.low %v2389_v31, %v2397_v35  ;;  %v6340_v31 = vld [vmem:[#allocation19 + $0xf0] sm:$0xff]  }
 0x83e   : > { %v6341_v35 = vld [vmem:[#allocation19 + $0x30] sm:$0xff]  }
 0x83f   : > { %3373 = vmatpush1.bf16.msra.mxu0 %v5540_v42  ;;  %3426 = vmatpush1.bf16.msra.mxu1 %v5542_v44  ;;  %v2380_v42 = vld [vmem:[#allocation18 + $0x270] sm:$0xff]  ;;  %v2373_v44 = vld [vmem:[#allocation18 + $0x238] sm:$0xff] }
 0x840   : > { %3374 = vmatprep.subr.bf16.mxu0 %v5525_v45  ;;  %3427 = vmatprep.subr.bf16.mxu1 %v5527_v50  ;;  %v2381_v45 = vld [vmem:[#allocation18 + $0x278] sm:$0xff]  ;;  %v5560_v50 = vcombine.low %v2388_v17, %v2396_v1  ;;  %v5545_v56 = vcombine.high %v2372_v41, %v2380_v42  ;;  %v6339_v1 = vld [vmem:[#allocation19 + $0x70] sm:$0xff]  }
 0x841   : > { %v5547_v26 = vcombine.high %v2373_v44, %v2381_v45  ;;  %v5546_v2 = vcombine.low %v2373_v44, %v2381_v45  ;;  %v6338_v17 = vld [vmem:[#allocation19 + $0xb8] sm:$0xff]   ;;  %v6350_v44 = vld [vmem:[#allocation19 + $0xa0] sm:$0xff]  }
 0x842   : > { %v6351_v45 = vld [vmem:[#allocation19 + $0x58] sm:$0xff]  }
 0x843   : > { %3375 = vmatpush1.bf16.msra.mxu0 %v5524_v57  ;;  %3428 = vmatpush1.bf16.msra.mxu1 %v5526_v58  ;;  %v2364_v57 = vld [vmem:[#allocation18 + $0x1f0] sm:$0xff]  ;;  %v2357_v58 = vld [vmem:[#allocation18 + $0x1b8] sm:$0xff] }
 0x844   : > { %3376 = vmatprep.subr.bf16.mxu0 %v5509_v61  ;;  %3429 = vmatprep.subr.bf16.mxu1 %v5511_v62  ;;  %v2365_v61 = vld [vmem:[#allocation18 + $0x1f8] sm:$0xff]  ;;  %v5544_v62 = vcombine.low %v2372_v41, %v2380_v42  ;;  %v5529_v46 = vcombine.high %v2356_v30, %v2364_v57  ;;  %v6346_v41 = vld [vmem:[#allocation19 + $0xa8] sm:$0xff]   ;;  %v6347_v42 = vld [vmem:[#allocation19 + $0x60] sm:$0xff]  }
 0x845   : > { %v5531_v3 = vcombine.high %v2357_v58, %v2365_v61  ;;  %v5530_v7 = vcombine.low %v2357_v58, %v2365_v61  ;;  %v6359_v58 = vld [vmem:[#allocation19 + $0x48] sm:$0xff]  }
 0x846   : > { %v6360_v61 = vld [vmem:[#allocation19 + $0xc8] sm:$0xff]  }
 0x847   : > { %3377 = vmatpush1.bf16.msra.mxu0 %v5508_v5  ;;  %3430 = vmatpush1.bf16.msra.mxu1 %v5510_v54  ;;  %v2348_v5 = vld [vmem:[#allocation18 + $0x170] sm:$0xff]  ;;  %v2341_v54 = vld [vmem:[#allocation18 + $0x138] sm:$0xff] }
 0x848   : > { %3378 = vmatprep.subr.bf16.mxu0 %v5493_v13  ;;  %3431 = vmatprep.subr.bf16.mxu1 %v5495_v43  ;;  %v2349_v13 = vld [vmem:[#allocation18 + $0x178] sm:$0xff]  ;;  %v5528_v43 = vcombine.low %v2356_v30, %v2364_v57  ;;  %v5513_v15 = vcombine.high %v2340_v8, %v2348_v5  ;;  %v6356_v30 = vld [vmem:[#allocation19 + $0xd0] sm:$0xff]  }
 0x849   : > { %v5515_v16 = vcombine.high %v2341_v54, %v2349_v13  ;;  %v5514_v21 = vcombine.low %v2341_v54, %v2349_v13  ;;  %v6357_v57 = vld [vmem:[#allocation19 + $0x10] sm:$0xff]   ;;  %v6367_v54 = vld [vmem:[#allocation19 + $0x178] sm:$0xff]  }
 0x84a   : > { %v6368_v13 = vld [vmem:[#allocation19 + $0x1f8] sm:$0xff]  }
 0x84b   : > { %3379 = vmatpush1.bf16.msra.mxu0 %v5492_v25  ;;  %3432 = vmatpush1.bf16.msra.mxu1 %v5494_v49  ;;  %v2332_v25 = vld [vmem:[#allocation18 + $0xf0] sm:$0xff]  ;;  %v2325_v49 = vld [vmem:[#allocation18 + $0xb8] sm:$0xff] }
 0x84c   : > { %3380 = vmatprep.subr.bf16.mxu0 %v5477_v18  ;;  %3433 = vmatprep.subr.bf16.mxu1 %v5479_v20  ;;  %v2333_v18 = vld [vmem:[#allocation18 + $0xf8] sm:$0xff]  ;;  %v5512_v20 = vcombine.low %v2340_v8, %v2348_v5  ;;  %v5497_v14 = vcombine.high %v2324_v32, %v2332_v25  ;;  %v6365_v8 = vld [vmem:[#allocation19] sm:$0xff]  }
 0x84d   : > { %v5499_v24 = vcombine.high %v2325_v49, %v2333_v18  ;;  %v5498_v10 = vcombine.low %v2325_v49, %v2333_v18  ;;  %v6366_v5 = vld [vmem:[#allocation19 + $0x80] sm:$0xff]  }
 0x84f   : > { %3381 = vmatpush1.bf16.msra.mxu0 %v5476_v37  ;;  %3434 = vmatpush1.bf16.msra.mxu1 %v5478_v11  ;;  %v2316_v37 = vld [vmem:[#allocation18 + $0x70] sm:$0xff]  ;;  %v2309_v11 = vld [vmem:[#allocation18 + $0x38] sm:$0xff] }
 0x850   : > { %3472 = vmatprep.subr.bf16.mxu0 %v5593_v47  ;;  %3525 = vmatprep.subr.bf16.mxu1 %v5595_v9  ;;  %v2317_v47 = vld [vmem:[#allocation18 + $0x78] sm:$0xff]  ;;  %v5496_v9 = vcombine.low %v2324_v32, %v2332_v25  ;;  %v5481_v55 = vcombine.high %v2308_v22, %v2316_v37  ;;  %v5480_v59 = vcombine.low %v2308_v22, %v2316_v37 }
 0x851   : > { %v5483_v52 = vcombine.high %v2309_v11, %v2317_v47 }
 0x852   : > { %3399 = vmatmul.mubr.bf16.vlgmr.msra.gmra.mxu0 %v7662_v19  ;;  %3452 = vmatmul.mubr.bf16.vlgmr.msra.gmra.mxu1 %v7662_v19 }
 0x853   : > { %3473 = vmatpush1.bf16.msra.mxu0 %v5592_v27  ;;  %3526 = vmatpush1.bf16.msra.mxu1 %v5594_v28  ;;  %v5482_v27 = vcombine.low %v2309_v11, %v2317_v47  ;;  %v6335_v28 = vld [vmem:[#allocation19 + $0x78] sm:$0xff]  }
 0x854   : > { %3474 = vmatprep.subr.bf16.mxu0 %v5577_v23  ;;  %3527 = vmatprep.subr.bf16.mxu1 %v5579_v29  ;;  %v6336_v23 = vld [vmem:[#allocation19 + $0xf8] sm:$0xff]  }
 0x855   : > { %3408 = vmatprep.mubr.bf16.mxu0 %v6934_v0  ;;  %3461 = vmatprep.mubr.bf16.mxu1 %v6934_v0  ;;  %v6337_v29 = vld [vmem:[#allocation19 + $0x38] sm:$0xff]  }
 0x857   : > { %3475 = vmatpush1.bf16.msra.mxu0 %v5576_v36  ;;  %3528 = vmatpush1.bf16.msra.mxu1 %v5578_v39  ;;  %v6342_v36 = vld [vmem:[#allocation19 + $0xb0] sm:$0xff]   ;;  %v6343_v39 = vld [vmem:[#allocation19 + $0x68] sm:$0xff]  }
 0x858   : > { %3476 = vmatprep.subr.bf16.mxu0 %v5561_v40  ;;  %3529 = vmatprep.subr.bf16.mxu1 %v5563_v6  ;;  %v6344_v40 = vld [vmem:[#allocation19 + $0xe8] sm:$0xff]  }
 0x859   : > { %v6345_v6 = vld [vmem:[#allocation19 + $0x28] sm:$0xff]  }
 0x85a   : > { %3409 = vmatmul.mubr.bf16.gmra.mxu0 %v7680_v53  ;;  %3462 = vmatmul.mubr.bf16.gmra.mxu1 %v7680_v53 }
 0x85b   : > { %3477 = vmatpush1.bf16.msra.mxu0 %v5560_v50  ;;  %3530 = vmatpush1.bf16.msra.mxu1 %v5562_v48  ;;  %v6352_v50 = vld [vmem:[#allocation19 + $0xd8] sm:$0xff]  }
 0x85c   : > { %3478 = vmatprep.subr.bf16.mxu0 %v5545_v56  ;;  %3531 = vmatprep.subr.bf16.mxu1 %v5547_v26  ;;  %v6353_v48 = vld [vmem:[#allocation19 + $0x18] sm:$0xff]   ;;  %v6355_v26 = vld [vmem:[#allocation19 + $0x50] sm:$0xff]  }
 0x85d   : > { %3504 = vmatprep.mubr.bf16.mxu0 %v6934_v0  ;;  %3557 = vmatprep.mubr.bf16.mxu1 %v6934_v0  ;;  %v6354_v56 = vld [vmem:[#allocation19 + $0x98] sm:$0xff]  }
 0x85f   : > { %3479 = vmatpush1.bf16.msra.mxu0 %v5544_v62  ;;  %3532 = vmatpush1.bf16.msra.mxu1 %v5546_v2  ;;  %v6361_v62 = vld [vmem:[#allocation19 + $0x8] sm:$0xff]  }
 0x860   : > { %3480 = vmatprep.subr.bf16.mxu0 %v5529_v46  ;;  %3533 = vmatprep.subr.bf16.mxu1 %v5531_v3  ;;  %v6362_v2 = vld [vmem:[#allocation19 + $0x88] sm:$0xff]   ;;  %v6363_v46 = vld [vmem:[#allocation19 + $0x40] sm:$0xff]  }
 0x861   : > { %v6364_v3 = vld [vmem:[#allocation19 + $0xc0] sm:$0xff]  }
 0x863   : > { %3481 = vmatpush1.bf16.msra.mxu0 %v5528_v43  ;;  %3534 = vmatpush1.bf16.msra.mxu1 %v5530_v7  ;;  %v2448_v43 = vsub.s32 3, %v7305_v33  ;;  %v7712_v7 = vld [vmem:[%s7923_s9] sm:$0xff] }
 0x864   : > { %3482 = vmatprep.subr.bf16.mxu0 %v5513_v15  ;;  %3535 = vmatprep.subr.bf16.mxu1 %v5515_v16  ;;  %v2441_v32 = vrot.slane %v7712_v7, %v7308_v34  ;;  %v2437_v49 = vrot.slane %v7712_v7, %v7311_v38  ;;  %v2445_v18 = vrot.slane %v7712_v7, %v7333_v60 }
 0x865   : > { %v2449_v25 = vrot.slane %v7712_v7, %v2448_v43 }
 0x867   : > { %3483 = vmatpush1.bf16.msra.mxu0 %v5512_v20  ;;  %3536 = vmatpush1.bf16.msra.mxu1 %v5514_v21 }
 0x868   : > { %3484 = vmatprep.subr.bf16.mxu0 %v5497_v14  ;;  %3537 = vmatprep.subr.bf16.mxu1 %v5499_v24 }
 0x86b   : > { %3485 = vmatpush1.bf16.msra.mxu0 %v5496_v9  ;;  %3538 = vmatpush1.bf16.msra.mxu1 %v5498_v10 }
 0x86c   : > { %3486 = vmatprep.subr.bf16.mxu0 %v5481_v55  ;;  %3539 = vmatprep.subr.bf16.mxu1 %v5483_v52 }
 0x86f   : > { %3487 = vmatpush1.bf16.msra.mxu0 %v5480_v59  ;;  %3540 = vmatpush1.bf16.msra.mxu1 %v5482_v27 }
 0x870   : > { %5788 = vmatprep.subr.bf16.mxu0 %v6335_v28  ;;  %5816 = vmatprep.subr.bf16.mxu1 %v6336_v23 }
 0x872   : > { %3505 = vmatmul.mubr.bf16.vlgmr.msra.gmra.mxu0 %v7662_v19  ;;  %3558 = vmatmul.mubr.bf16.vlgmr.msra.gmra.mxu1 %v7662_v19  ;;  %v6348_v19 = vld [vmem:[#allocation19 + $0xe0] sm:$0xff]  }
 0x873   : > { %3514 = vmatprep.mubr.bf16.mxu0 %v6934_v0  ;;  %3567 = vmatprep.mubr.bf16.mxu1 %v6934_v0  ;;  %v6349_v0 = vld [vmem:[#allocation19 + $0x20] sm:$0xff]  }
 0x874   : > { %5789 = vmatpush3.bf16.msra.mxu0 %v6337_v29  ;;  %5817 = vmatpush3.bf16.msra.mxu1 %v6338_v17 }
 0x875   : > { %5790 = vmatprep.subr.bf16.mxu0 %v6339_v1  ;;  %5818 = vmatprep.subr.bf16.mxu1 %v6340_v31 }
 0x878   : > { %5791 = vmatpush3.bf16.msra.mxu0 %v6341_v35  ;;  %5819 = vmatpush3.bf16.msra.mxu1 %v6342_v36 }
 0x879   : > { %5792 = vmatprep.subr.bf16.mxu0 %v6343_v39  ;;  %5820 = vmatprep.subr.bf16.mxu1 %v6344_v40 }
 0x87a   : > { %3515 = vmatmul.mubr.bf16.gmra.mxu0 %v7680_v53  ;;  %3568 = vmatmul.mubr.bf16.gmra.mxu1 %v7680_v53  ;;  %v6358_v53 = vld [vmem:[#allocation19 + $0x90] sm:$0xff]  }
 0x87c   : > { %5793 = vmatpush3.bf16.msra.mxu0 %v6345_v6  ;;  %5821 = vmatpush3.bf16.msra.mxu1 %v6346_v41 }
 0x87d   : > { %5794 = vmatprep.subr.bf16.mxu0 %v6347_v42  ;;  %5822 = vmatprep.subr.bf16.mxu1 %v6348_v19 }
 0x880   : > { %5795 = vmatpush3.bf16.msra.mxu0 %v6349_v0  ;;  %5823 = vmatpush3.bf16.msra.mxu1 %v6350_v44  ;;  %v6369_v0 = vld [vmem:[#allocation19 + $0x138] sm:$0xff]  }
 0x881   : > { %5796 = vmatprep.subr.bf16.mxu0 %v6351_v45  ;;  %5824 = vmatprep.subr.bf16.mxu1 %v6352_v50  ;;  %v6370_v44 = vld [vmem:[#allocation19 + $0x1b8] sm:$0xff]  }
 0x884   : > { %5797 = vmatpush3.bf16.msra.mxu0 %v6353_v48  ;;  %5825 = vmatpush3.bf16.msra.mxu1 %v6354_v56 }
 0x885   : > { %5798 = vmatprep.subr.bf16.mxu0 %v6355_v26  ;;  %5826 = vmatprep.subr.bf16.mxu1 %v6356_v30  ;;  %v6371_v30 = vld [vmem:[#allocation19 + $0x170] sm:$0xff]  }
 0x888   : > { %5799 = vmatpush3.bf16.msra.mxu0 %v6357_v57  ;;  %5827 = vmatpush3.bf16.msra.mxu1 %v6358_v53  ;;  %v6372_v57 = vld [vmem:[#allocation19 + $0x1f0] sm:$0xff]  }
 0x889   : > { %5800 = vmatprep.subr.bf16.mxu0 %v6359_v58  ;;  %5828 = vmatprep.subr.bf16.mxu1 %v6360_v61 }
 0x88c   : > { %5801 = vmatpush3.bf16.msra.mxu0 %v6361_v62  ;;  %5829 = vmatpush3.bf16.msra.mxu1 %v6362_v2 }
 0x88d   : > { %5802 = vmatprep.subr.bf16.mxu0 %v6363_v46  ;;  %5830 = vmatprep.subr.bf16.mxu1 %v6364_v3 }
 0x890   : > { %5803 = vmatpush3.bf16.msra.mxu0 %v6365_v8  ;;  %5831 = vmatpush3.bf16.msra.mxu1 %v6366_v5 }
 0x891   : > { %5844 = vmatprep.subr.bf16.mxu0 %v6367_v54  ;;  %5872 = vmatprep.subr.bf16.mxu1 %v6368_v13  ;;  %v6373_v54 = vld [vmem:[#allocation19 + $0x130] sm:$0xff]  }
 0x892   : > { %v6374_v13 = vld [vmem:[#allocation19 + $0x1b0] sm:$0xff]  }
 0x8d2   : > { %v3188_v15 = vpop.f32.mrf.mxu0  ;;  %v3241_v16 = vpop.f32.mrf.mxu1 }
 0x8d3   : > { %v3189_v9 = vadd.f32 %v3188_v15, %v2437_v49  ;;  %v3242_v10 = vadd.f32 %v3241_v16, %v2445_v18 }
 0x8d4   : > { %v3190_v20 = vpop.f32.mrf.mxu0  ;;  %v3243_v21 = vpop.f32.mrf.mxu1 }
 0x8d5   : > { %v3191_v22 = vadd.f32 %v3190_v20, %v2441_v32  ;;  %v3244_v37 = vadd.f32 %v3243_v21, %v2449_v25  ;;  %v3578_v39 = vmax.f32 %v3189_v9, 0.0  ;;  %v3580_v40 = vmax.f32 %v3242_v10, 0.0  ;;  %v6375_v20 = vld [vmem:[#allocation19 + $0x168] sm:$0xff]  }
 0x8d6   : > { %v3192_v14 = vpop.f32.mrf.mxu0  ;;  %v3245_v24 = vpop.f32.mrf.mxu1  ;;  %v6376_v21 = vld [vmem:[#allocation19 + $0x1e8] sm:$0xff]  }
 0x8d7   : > { %v3193_v11 = vadd.f32 %v3192_v14, %v2437_v49  ;;  %v3246_v47 = vadd.f32 %v3245_v24, %v2445_v18  ;;  %v3579_v1 = vmax.f32 %v3191_v22, 0.0  ;;  %v3581_v31 = vmax.f32 %v3244_v37, 0.0 }
 0x8d8   : > { %v3194_v55 = vpop.f32.mrf.mxu0  ;;  %v3247_v52 = vpop.f32.mrf.mxu1 }
 0x8d9   : > { %v3195_v59 = vadd.f32 %v3194_v55, %v2441_v32  ;;  %v3248_v27 = vadd.f32 %v3247_v52, %v2449_v25  ;;  %v3594_v28 = vmax.f32 %v3193_v11, 0.0  ;;  %v3596_v23 = vmax.f32 %v3246_v47, 0.0  ;;  %v6379_v55 = vld [vmem:[#allocation19 + $0x160] sm:$0xff]  }
 0x8da   : > { %v3198_v29 = vpop.f32.mrf.mxu0  ;;  %v3251_v17 = vpop.f32.mrf.mxu1  ;;  %v6380_v52 = vld [vmem:[#allocation19 + $0x1e0] sm:$0xff]  }
 0x8db   : > { %v3595_v35 = vmax.f32 %v3195_v59, 0.0  ;;  %v3597_v36 = vmax.f32 %v3248_v27, 0.0  ;;  %v3642_v45 = vpack.c.bf16 %v3594_v28, %v3578_v39  ;;  %v3644_v50 = vpack.c.bf16 %v3596_v23, %v3580_v40  ;;  %v6381_v59 = vld [vmem:[#allocation19 + $0x120] sm:$0xff]   ;;  %v6383_v28 = vld [vmem:[#allocation19 + $0x158] sm:$0xff]  }
 0x8dc   : > { %v3200_v6 = vpop.f32.mrf.mxu0  ;;  %v3253_v41 = vpop.f32.mrf.mxu1  ;;  %v3199_v62 = vadd.f32 %v3198_v29, %v2437_v49  ;;  %v3252_v2 = vadd.f32 %v3251_v17, %v2445_v18  ;;  %v6382_v27 = vld [vmem:[#allocation19 + $0x1a0] sm:$0xff]   ;;  %v6384_v23 = vld [vmem:[#allocation19 + $0x1d8] sm:$0xff]   ;;  %v2452_v39 = vsub.s32 4, %v7305_v33  ;;  %v2460_v40 = vsub.s32 6, %v7305_v33 }
 0x8dd   : > { %v3643_v42 = vpack.c.bf16 %v3595_v35, %v3579_v1  ;;  %v3645_v19 = vpack.c.bf16 %v3597_v36, %v3581_v31  ;;  %v3201_v48 = vadd.f32 %v3200_v6, %v2441_v32  ;;  %v3254_v53 = vadd.f32 %v3253_v41, %v2449_v25  ;;  %v6385_v29 = vld [vmem:[#allocation19 + $0x118] sm:$0xff]   ;;  %v6387_v1 = vld [vmem:[#allocation19 + $0x150] sm:$0xff]  }
 0x8de   : > { %v3202_v56 = vpop.f32.mrf.mxu0  ;;  %v3255_v26 = vpop.f32.mrf.mxu1  ;;  %v3610_v22 = vmax.f32 %v3199_v62, 0.0  ;;  %v3612_v37 = vmax.f32 %v3252_v2, 0.0  ;;  %v6386_v17 = vld [vmem:[#allocation19 + $0x198] sm:$0xff]   ;;  %v6388_v31 = vld [vmem:[#allocation19 + $0x1d0] sm:$0xff]   ;;  %v2456_v35 = vsub.s32 5, %v7305_v33  ;;  %v2464_v36 = vsub.s32 7, %v7305_v33 }
 0x8df   : > { %v3203_v58 = vadd.f32 %v3202_v56, %v2437_v49  ;;  %v3256_v61 = vadd.f32 %v3255_v26, %v2445_v18  ;;  %4737 = vmatprep.mubr.bf16.mxu0 %v3643_v42  ;;  %4786 = vmatprep.mubr.bf16.mxu1 %v3645_v19  ;;  %v3611_v14 = vmax.f32 %v3201_v48, 0.0  ;;  %v3613_v24 = vmax.f32 %v3254_v53, 0.0  ;;  %v6389_v6 = vld [vmem:[#allocation19 + $0x110] sm:$0xff]   ;;  %v6394_v53 = vld [vmem:[#allocation19 + $0x188] sm:$0xff]   ;;  %v6395_v62 = vld [vmem:[#allocation19 + $0x140] sm:$0xff]  }
 0x8e0   : > { %v3204_v46 = vpop.f32.mrf.mxu0  ;;  %v3257_v3 = vpop.f32.mrf.mxu1  ;;  %4738 = vmatmul.mubr.bf16.vlgmr.msra.gmra.mxu0 %v3642_v45  ;;  %4787 = vmatmul.mubr.bf16.vlgmr.msra.gmra.mxu1 %v3644_v50  ;;  %v6390_v41 = vld [vmem:[#allocation19 + $0x190] sm:$0xff]   ;;  %v7730_v45 = vrot.slane %v7712_v7, %v2456_v35  ;;  %v7735_v50 = vrot.slane %v7712_v7, %v2464_v36  ;;  %v7740_v48 = vrot.slane %v7712_v7, %v2452_v39  ;;  %v6396_v2 = vld [vmem:[#allocation19 + $0x1c0] sm:$0xff]  }
 0x8e1   : > { %v3205_v8 = vadd.f32 %v3204_v46, %v2441_v32  ;;  %v3258_v5 = vadd.f32 %v3257_v3, %v2449_v25  ;;  %5845 = vmatpush3.bf16.msra.mxu0 %v6369_v0  ;;  %5873 = vmatpush3.bf16.msra.mxu1 %v6370_v44  ;;  %v3626_v15 = vmax.f32 %v3203_v58, 0.0  ;;  %v3628_v16 = vmax.f32 %v3256_v61, 0.0  ;;  %v6377_v32 = vld [vmem:[#allocation19 + $0x128] sm:$0xff]   ;;  %v6460_v33 = vld [vmem:[#allocation19 + $0x3c0] sm:$0xff]  }
 0x8e2   : > { %5846 = vmatprep.subr.bf16.mxu0 %v6371_v30  ;;  %5874 = vmatprep.subr.bf16.mxu1 %v6372_v57  ;;  %v6378_v25 = vld [vmem:[#allocation19 + $0x1a8] sm:$0xff]   ;;  %v7745_v56 = vrot.slane %v7712_v7, %v2460_v40 }
 0x8e3   : > { %v3627_v49 = vmax.f32 %v3205_v8, 0.0  ;;  %v3629_v18 = vmax.f32 %v3258_v5, 0.0  ;;  %v3658_v9 = vpack.c.bf16 %v3626_v15, %v3610_v22  ;;  %v3660_v10 = vpack.c.bf16 %v3628_v16, %v3612_v37  ;;  %v6391_v0 = vld [vmem:[#allocation19 + $0x148] sm:$0xff]   ;;  %v6398_v22 = vld [vmem:[#allocation19 + $0x180] sm:$0xff]   ;;  %v6399_v37 = vld [vmem:[#allocation19 + $0x278] sm:$0xff]  }
 0x8e4   : > { %v6392_v44 = vld [vmem:[#allocation19 + $0x1c8] sm:$0xff]  }
 0x8e5   : > { %v3659_v11 = vpack.c.bf16 %v3627_v49, %v3611_v14  ;;  %v3661_v47 = vpack.c.bf16 %v3629_v18, %v3613_v24  ;;  %5847 = vmatpush3.bf16.msra.mxu0 %v6373_v54  ;;  %5875 = vmatpush3.bf16.msra.mxu1 %v6374_v13  ;;  %v6393_v57 = vld [vmem:[#allocation19 + $0x108] sm:$0xff]  }
 0x8e6   : > { %5848 = vmatprep.subr.bf16.mxu0 %v6375_v20  ;;  %5876 = vmatprep.subr.bf16.mxu1 %v6376_v21  ;;  %v6397_v21 = vld [vmem:[#allocation19 + $0x100] sm:$0xff]  }
 0x8e7   : > { %4745 = vmatprep.mubr.bf16.mxu0 %v3659_v11  ;;  %4794 = vmatprep.mubr.bf16.mxu1 %v3661_v47 }
 0x8e8   : > { %4746 = vmatmul.mubr.bf16.gmra.mxu0 %v3658_v9  ;;  %4795 = vmatmul.mubr.bf16.gmra.mxu1 %v3660_v10 }
 0x8e9   : > { %5849 = vmatpush3.bf16.msra.mxu0 %v6377_v32  ;;  %5877 = vmatpush3.bf16.msra.mxu1 %v6378_v25 }
 0x8ea   : > { %5850 = vmatprep.subr.bf16.mxu0 %v6379_v55  ;;  %5878 = vmatprep.subr.bf16.mxu1 %v6380_v52 }
 0x8ed   : > { %5851 = vmatpush3.bf16.msra.mxu0 %v6381_v59  ;;  %5879 = vmatpush3.bf16.msra.mxu1 %v6382_v27  ;;  %v6400_v59 = vld [vmem:[#allocation19 + $0x2f8] sm:$0xff]  }
 0x8ee   : > { %5852 = vmatprep.subr.bf16.mxu0 %v6383_v28  ;;  %5880 = vmatprep.subr.bf16.mxu1 %v6384_v23  ;;  %v6401_v23 = vld [vmem:[#allocation19 + $0x238] sm:$0xff]  }
 0x8f1   : > { %5853 = vmatpush3.bf16.msra.mxu0 %v6385_v29  ;;  %5881 = vmatpush3.bf16.msra.mxu1 %v6386_v17 }
 0x8f2   : > { %v3294_v42 = vpop.f32.mrf.mxu0  ;;  %v3347_v19 = vpop.f32.mrf.mxu1  ;;  %5854 = vmatprep.subr.bf16.mxu0 %v6387_v1  ;;  %5882 = vmatprep.subr.bf16.mxu1 %v6388_v31 }
 0x8f3   : > { %v3295_v5 = vadd.f32 %v3294_v42, %v7740_v48  ;;  %v3348_v54 = vadd.f32 %v3347_v19, %v7745_v56  ;;  %v6403_v42 = vld [vmem:[#allocation19 + $0x270] sm:$0xff]  }
 0x8f4   : > { %v3296_v26 = vpop.f32.mrf.mxu0  ;;  %v3349_v30 = vpop.f32.mrf.mxu1 }
 0x8f5   : > { %5855 = vmatpush3.bf16.msra.mxu0 %v6389_v6  ;;  %5883 = vmatpush3.bf16.msra.mxu1 %v6390_v41  ;;  %v3297_v46 = vadd.f32 %v3296_v26, %v7730_v45  ;;  %v3350_v3 = vadd.f32 %v3349_v30, %v7735_v50  ;;  %v3582_v9 = vmax.f32 %v3295_v5, 0.0  ;;  %v3584_v10 = vmax.f32 %v3348_v54, 0.0  ;;  %v6402_v41 = vld [vmem:[#allocation19 + $0x2b8] sm:$0xff]   ;;  %v6404_v26 = vld [vmem:[#allocation19 + $0x2f0] sm:$0xff]  }
 0x8f6   : > { %v3298_v58 = vpop.f32.mrf.mxu0  ;;  %v3351_v61 = vpop.f32.mrf.mxu1  ;;  %5856 = vmatprep.subr.bf16.mxu0 %v6391_v0  ;;  %5884 = vmatprep.subr.bf16.mxu1 %v6392_v44 }
 0x8f7   : > { %v3299_v8 = vadd.f32 %v3298_v58, %v7740_v48  ;;  %v3352_v7 = vadd.f32 %v3351_v61, %v7745_v56  ;;  %v3583_v11 = vmax.f32 %v3297_v46, 0.0  ;;  %v3585_v47 = vmax.f32 %v3350_v3, 0.0 }
 0x8f8   : > { %v3300_v13 = vpop.f32.mrf.mxu0  ;;  %v3353_v15 = vpop.f32.mrf.mxu1 }
 0x8f9   : > { %v3301_v16 = vadd.f32 %v3300_v13, %v7730_v45  ;;  %v3354_v20 = vadd.f32 %v3353_v15, %v7735_v50  ;;  %5857 = vmatpush3.bf16.msra.mxu0 %v6393_v57  ;;  %5885 = vmatpush3.bf16.msra.mxu1 %v6394_v53  ;;  %v3598_v14 = vmax.f32 %v3299_v8, 0.0  ;;  %v3600_v24 = vmax.f32 %v3352_v7, 0.0  ;;  %v6406_v8 = vld [vmem:[#allocation19 + $0x2b0] sm:$0xff]   ;;  %v6407_v7 = vld [vmem:[#allocation19 + $0x268] sm:$0xff]  }
 0x8fa   : > { %v3304_v49 = vpop.f32.mrf.mxu0  ;;  %v3357_v18 = vpop.f32.mrf.mxu1  ;;  %5858 = vmatprep.subr.bf16.mxu0 %v6395_v62  ;;  %5886 = vmatprep.subr.bf16.mxu1 %v6396_v2  ;;  %v6405_v2 = vld [vmem:[#allocation19 + $0x230] sm:$0xff]  }
 0x8fb   : > { %v3599_v32 = vmax.f32 %v3301_v16, 0.0  ;;  %v3601_v25 = vmax.f32 %v3354_v20, 0.0  ;;  %v3646_v29 = vpack.c.bf16 %v3598_v14, %v3582_v9  ;;  %v3648_v17 = vpack.c.bf16 %v3600_v24, %v3584_v10  ;;  %v6410_v14 = vld [vmem:[#allocation19 + $0x2a8] sm:$0xff]   ;;  %v6411_v24 = vld [vmem:[#allocation19 + $0x260] sm:$0xff]   ;;  %v6419_v9 = vld [vmem:[#allocation19 + $0x250] sm:$0xff]  }
 0x8fc   : > { %v3306_v55 = vpop.f32.mrf.mxu0  ;;  %v3359_v52 = vpop.f32.mrf.mxu1  ;;  %v3305_v30 = vadd.f32 %v3304_v49, %v7740_v48  ;;  %v3358_v58 = vadd.f32 %v3357_v18, %v7745_v56  ;;  %v6412_v18 = vld [vmem:[#allocation19 + $0x2e0] sm:$0xff]   ;;  %v6420_v10 = vld [vmem:[#allocation19 + $0x2d0] sm:$0xff]  }
 0x8fd   : > { %v3647_v27 = vpack.c.bf16 %v3599_v32, %v3583_v11  ;;  %v3649_v28 = vpack.c.bf16 %v3601_v25, %v3585_v47  ;;  %5859 = vmatpush3.bf16.msra.mxu0 %v6397_v21  ;;  %v3307_v1 = vadd.f32 %v3306_v55, %v7730_v45  ;;  %5887 = vmatpush3.bf16.msra.mxu1 %v6398_v22  ;;  %v6413_v22 = vld [vmem:[#allocation19 + $0x220] sm:$0xff]   ;;  %v6415_v11 = vld [vmem:[#allocation19 + $0x258] sm:$0xff]  }
 0x8fe   : > { %v3308_v31 = vpop.f32.mrf.mxu0  ;;  %v3361_v6 = vpop.f32.mrf.mxu1  ;;  %5900 = vmatprep.subr.bf16.mxu0 %v6399_v37  ;;  %v3360_v19 = vadd.f32 %v3359_v52, %v7735_v50  ;;  %5928 = vmatprep.subr.bf16.mxu1 %v6400_v59  ;;  %v3614_v15 = vmax.f32 %v3305_v30, 0.0  ;;  %v3616_v16 = vmax.f32 %v3358_v58, 0.0  ;;  %v6414_v37 = vld [vmem:[#allocation19 + $0x2a0] sm:$0xff]   ;;  %v6416_v47 = vld [vmem:[#allocation19 + $0x2d8] sm:$0xff]   ;;  %v6421_v52 = vld [vmem:[#allocation19 + $0x210] sm:$0xff]  }
 0x8ff   : > { %v3309_v0 = vadd.f32 %v3308_v31, %v7740_v48  ;;  %v3362_v44 = vadd.f32 %v3361_v6, %v7745_v56  ;;  %4835 = vmatprep.mubr.bf16.mxu0 %v3647_v27  ;;  %4884 = vmatprep.mubr.bf16.mxu1 %v3649_v28  ;;  %v3615_v46 = vmax.f32 %v3307_v1, 0.0  ;;  %v6408_v56 = vld [vmem:[#allocation19 + $0x2e8] sm:$0xff]   ;;  %v6417_v32 = vld [vmem:[#allocation19 + $0x218] sm:$0xff]   ;;  %v6422_v28 = vld [vmem:[#allocation19 + $0x290] sm:$0xff]  }
 0x900   : > { %v3310_v57 = vpop.f32.mrf.mxu0  ;;  %v3363_v53 = vpop.f32.mrf.mxu1  ;;  %4836 = vmatmul.mubr.bf16.vlgmr.msra.gmra.mxu0 %v3646_v29  ;;  %4885 = vmatmul.mubr.bf16.vlgmr.msra.gmra.mxu1 %v3648_v17  ;;  %v3617_v48 = vmax.f32 %v3360_v19, 0.0  ;;  %v6418_v25 = vld [vmem:[#allocation19 + $0x298] sm:$0xff]   ;;  %v6424_v1 = vld [vmem:[#allocation19 + $0x2c8] sm:$0xff]  }
 0x901   : > { %v3311_v61 = vadd.f32 %v3310_v57, %v7730_v45  ;;  %v3364_v62 = vadd.f32 %v3363_v53, %v7735_v50  ;;  %5901 = vmatpush3.bf16.msra.mxu0 %v6401_v23  ;;  %v3630_v3 = vmax.f32 %v3309_v0, 0.0  ;;  %5929 = vmatpush3.bf16.msra.mxu1 %v6402_v41  ;;  %v3632_v5 = vmax.f32 %v3362_v44, 0.0  ;;  %v6409_v50 = vld [vmem:[#allocation19 + $0x228] sm:$0xff]   ;;  %v7766_v55 = vld [vmem:[%s7923_s9 + $0x8] sm:$0xff] }
 0x902   : > { %5902 = vmatprep.subr.bf16.mxu0 %v6403_v42  ;;  %5930 = vmatprep.subr.bf16.mxu1 %v6404_v26  ;;  %v6423_v23 = vld [vmem:[#allocation19 + $0x248] sm:$0xff]   ;;  %v7770_v29 = vrot.slane %v7766_v55, %v7308_v34  ;;  %v7775_v17 = vrot.slane %v7766_v55, %v2448_v43  ;;  %v7779_v31 = vrot.slane %v7766_v55, %v7311_v38  ;;  %v6427_v44 = vld [vmem:[#allocation19 + $0x240] sm:$0xff]  }
 0x903   : > { %v3631_v54 = vmax.f32 %v3311_v61, 0.0  ;;  %v3633_v13 = vmax.f32 %v3364_v62, 0.0  ;;  %v3662_v21 = vpack.c.bf16 %v3630_v3, %v3614_v15  ;;  %v3664_v49 = vpack.c.bf16 %v3632_v5, %v3616_v16  ;;  %v6425_v34 = vld [vmem:[#allocation19 + $0x208] sm:$0xff]   ;;  %v6429_v3 = vld [vmem:[#allocation19 + $0x200] sm:$0xff]  }
 0x904   : > { %v7783_v6 = vrot.slane %v7766_v55, %v7333_v60  ;;  %v6426_v43 = vld [vmem:[#allocation19 + $0x288] sm:$0xff]   ;;  %v6428_v60 = vld [vmem:[#allocation19 + $0x2c0] sm:$0xff]  }
 0x905   : > { %v3663_v45 = vpack.c.bf16 %v3631_v54, %v3615_v46  ;;  %v3665_v20 = vpack.c.bf16 %v3633_v13, %v3617_v48  ;;  %5903 = vmatpush3.bf16.msra.mxu0 %v6405_v2  ;;  %5931 = vmatpush3.bf16.msra.mxu1 %v6406_v8  ;;  %v6430_v54 = vld [vmem:[#allocation19 + $0x280] sm:$0xff]   ;;  %v6431_v13 = vld [vmem:[#allocation19 + $0x378] sm:$0xff]  }
 0x906   : > { %5904 = vmatprep.subr.bf16.mxu0 %v6407_v7  ;;  %5932 = vmatprep.subr.bf16.mxu1 %v6408_v56 }
 0x907   : > { %4843 = vmatprep.mubr.bf16.mxu0 %v3663_v45  ;;  %4892 = vmatprep.mubr.bf16.mxu1 %v3665_v20 }
 0x908   : > { %4844 = vmatmul.mubr.bf16.gmra.mxu0 %v3662_v21  ;;  %4893 = vmatmul.mubr.bf16.gmra.mxu1 %v3664_v49 }
 0x909   : > { %5905 = vmatpush3.bf16.msra.mxu0 %v6409_v50  ;;  %5933 = vmatpush3.bf16.msra.mxu1 %v6410_v14 }
 0x90a   : > { %5906 = vmatprep.subr.bf16.mxu0 %v6411_v24  ;;  %5934 = vmatprep.subr.bf16.mxu1 %v6412_v18  ;;  %v6432_v24 = vld [vmem:[#allocation19 + $0x3f8] sm:$0xff]  }
 0x90d   : > { %5907 = vmatpush3.bf16.msra.mxu0 %v6413_v22  ;;  %5935 = vmatpush3.bf16.msra.mxu1 %v6414_v37  ;;  %v6433_v22 = vld [vmem:[#allocation19 + $0x338] sm:$0xff]  }
 0x90e   : > { %5908 = vmatprep.subr.bf16.mxu0 %v6415_v11  ;;  %5936 = vmatprep.subr.bf16.mxu1 %v6416_v47 }
 0x911   : > { %5909 = vmatpush3.bf16.msra.mxu0 %v6417_v32  ;;  %5937 = vmatpush3.bf16.msra.mxu1 %v6418_v25 }
 0x912   : > { %v3400_v59 = vpop.f32.mrf.mxu0  ;;  %v3453_v27 = vpop.f32.mrf.mxu1  ;;  %5910 = vmatprep.subr.bf16.mxu0 %v6419_v9  ;;  %5938 = vmatprep.subr.bf16.mxu1 %v6420_v10  ;;  %v6434_v9 = vld [vmem:[#allocation19 + $0x3b8] sm:$0xff]   ;;  %v6435_v10 = vld [vmem:[#allocation19 + $0x370] sm:$0xff]  }
 0x913   : > { %v3401_v53 = vadd.f32 %v3400_v59, %v7779_v31  ;;  %v3454_v58 = vadd.f32 %v3453_v27, %v7783_v6 }
 0x914   : > { %v3402_v41 = vpop.f32.mrf.mxu0  ;;  %v3455_v42 = vpop.f32.mrf.mxu1 }
 0x915   : > { %5911 = vmatpush3.bf16.msra.mxu0 %v6421_v52  ;;  %5939 = vmatpush3.bf16.msra.mxu1 %v6422_v28  ;;  %v3403_v26 = vadd.f32 %v3402_v41, %v7770_v29  ;;  %v3456_v30 = vadd.f32 %v3455_v42, %v7775_v17  ;;  %v3586_v20 = vmax.f32 %v3401_v53, 0.0  ;;  %v3588_v50 = vmax.f32 %v3454_v58, 0.0  ;;  %v6436_v28 = vld [vmem:[#allocation19 + $0x3f0] sm:$0xff]  }
 0x916   : > { %v3404_v19 = vpop.f32.mrf.mxu0  ;;  %v3457_v0 = vpop.f32.mrf.mxu1  ;;  %5912 = vmatprep.subr.bf16.mxu0 %v6423_v23  ;;  %5940 = vmatprep.subr.bf16.mxu1 %v6424_v1 }
 0x917   : > { %v3405_v38 = vadd.f32 %v3404_v19, %v7779_v31  ;;  %v3458_v57 = vadd.f32 %v3457_v0, %v7783_v6  ;;  %v3587_v15 = vmax.f32 %v3403_v26, 0.0  ;;  %v3589_v56 = vmax.f32 %v3456_v30, 0.0  ;;  %v6437_v0 = vld [vmem:[#allocation19 + $0x330] sm:$0xff]   ;;  %v6439_v30 = vld [vmem:[#allocation19 + $0x368] sm:$0xff]  }
 0x918   : > { %v3406_v61 = vpop.f32.mrf.mxu0  ;;  %v3459_v62 = vpop.f32.mrf.mxu1  ;;  %v6438_v26 = vld [vmem:[#allocation19 + $0x3b0] sm:$0xff]  }
 0x919   : > { %v3407_v2 = vadd.f32 %v3406_v61, %v7770_v29  ;;  %v3460_v46 = vadd.f32 %v3459_v62, %v7775_v17  ;;  %5913 = vmatpush3.bf16.msra.mxu0 %v6425_v34  ;;  %v3602_v8 = vmax.f32 %v3405_v38, 0.0  ;;  %v3604_v7 = vmax.f32 %v3458_v57, 0.0  ;;  %5941 = vmatpush3.bf16.msra.mxu1 %v6426_v43 }
 0x91a   : > { %v3410_v48 = vpop.f32.mrf.mxu0  ;;  %v3463_v5 = vpop.f32.mrf.mxu1  ;;  %5914 = vmatprep.subr.bf16.mxu0 %v6427_v44  ;;  %5942 = vmatprep.subr.bf16.mxu1 %v6428_v60 }
 0x91b   : > { %v3603_v16 = vmax.f32 %v3407_v2, 0.0  ;;  %v3605_v45 = vmax.f32 %v3460_v46, 0.0  ;;  %v3650_v37 = vpack.c.bf16 %v3602_v8, %v3586_v20  ;;  %v3652_v11 = vpack.c.bf16 %v3604_v7, %v3588_v50  ;;  %v6442_v2 = vld [vmem:[#allocation19 + $0x3a8] sm:$0xff]   ;;  %v6443_v46 = vld [vmem:[#allocation19 + $0x360] sm:$0xff]  }
 0x91c   : > { %v3412_v21 = vpop.f32.mrf.mxu0  ;;  %v3465_v14 = vpop.f32.mrf.mxu1  ;;  %v3411_v23 = vadd.f32 %v3410_v48, %v7779_v31  ;;  %v3464_v42 = vadd.f32 %v3463_v5, %v7783_v6  ;;  %v6444_v8 = vld [vmem:[#allocation19 + $0x3e0] sm:$0xff]   ;;  %v6447_v5 = vld [vmem:[#allocation19 + $0x358] sm:$0xff]  }
 0x91d   : > { %v3651_v49 = vpack.c.bf16 %v3603_v16, %v3587_v15  ;;  %v3653_v18 = vpack.c.bf16 %v3605_v45, %v3589_v56  ;;  %5915 = vmatpush3.bf16.msra.mxu0 %v6429_v3  ;;  %v3413_v47 = vadd.f32 %v3412_v21, %v7770_v29  ;;  %5943 = vmatpush3.bf16.msra.mxu1 %v6430_v54  ;;  %v6445_v7 = vld [vmem:[#allocation19 + $0x320] sm:$0xff]   ;;  %v6448_v54 = vld [vmem:[#allocation19 + $0x3d8] sm:$0xff]   ;;  %v6451_v56 = vld [vmem:[#allocation19 + $0x350] sm:$0xff]  }
 0x91e   : > { %v3414_v32 = vpop.f32.mrf.mxu0  ;;  %v3467_v25 = vpop.f32.mrf.mxu1  ;;  %5956 = vmatprep.subr.bf16.mxu0 %v6431_v13  ;;  %v3466_v52 = vadd.f32 %v3465_v14, %v7775_v17  ;;  %5984 = vmatprep.subr.bf16.mxu1 %v6432_v24  ;;  %v3618_v53 = vmax.f32 %v3411_v23, 0.0  ;;  %v3620_v58 = vmax.f32 %v3464_v42, 0.0  ;;  %v6446_v48 = vld [vmem:[#allocation19 + $0x3a0] sm:$0xff]   ;;  %v6449_v13 = vld [vmem:[#allocation19 + $0x318] sm:$0xff]   ;;  %v6452_v16 = vld [vmem:[#allocation19 + $0x3d0] sm:$0xff]   ;;  %v7804_v24 = vrot.slane %v7766_v55, %v2456_v35 }
 0x91f   : > { %v3415_v59 = vadd.f32 %v3414_v32, %v7779_v31  ;;  %v3468_v27 = vadd.f32 %v3467_v25, %v7783_v6  ;;  %4933 = vmatprep.mubr.bf16.mxu0 %v3651_v49  ;;  %4982 = vmatprep.mubr.bf16.mxu1 %v3653_v18  ;;  %v3619_v43 = vmax.f32 %v3413_v47, 0.0  ;;  %v6440_v6 = vld [vmem:[#allocation19 + $0x3e8] sm:$0xff]   ;;  %v6450_v15 = vld [vmem:[#allocation19 + $0x398] sm:$0xff]   ;;  %v6453_v45 = vld [vmem:[#allocation19 + $0x310] sm:$0xff]   ;;  %v7809_v49 = vrot.slane %v7766_v55, %v2464_v36 }
 0x920   : > { %v3416_v1 = vpop.f32.mrf.mxu0  ;;  %v3469_v41 = vpop.f32.mrf.mxu1  ;;  %4934 = vmatmul.mubr.bf16.vlgmr.msra.gmra.mxu0 %v3650_v37  ;;  %4983 = vmatmul.mubr.bf16.vlgmr.msra.gmra.mxu1 %v3652_v11  ;;  %v3621_v31 = vmax.f32 %v3466_v52, 0.0  ;;  %v6454_v21 = vld [vmem:[#allocation19 + $0x390] sm:$0xff]   ;;  %v6455_v14 = vld [vmem:[#allocation19 + $0x348] sm:$0xff]   ;;  %v2493_v37 = vrot.slane %v7766_v55, %v2460_v40 }
 0x921   : > { %v3417_v34 = vadd.f32 %v3416_v1, %v7770_v29  ;;  %v3470_v19 = vadd.f32 %v3469_v41, %v7775_v17  ;;  %5957 = vmatpush3.bf16.msra.mxu0 %v6433_v22  ;;  %v3634_v44 = vmax.f32 %v3415_v59, 0.0  ;;  %5985 = vmatpush3.bf16.msra.mxu1 %v6434_v9  ;;  %v3636_v38 = vmax.f32 %v3468_v27, 0.0  ;;  %v6441_v17 = vld [vmem:[#allocation19 + $0x328] sm:$0xff]   ;;  %v6459_v9 = vld [vmem:[#allocation19 + $0x340] sm:$0xff]  }
 0x922   : > { %5958 = vmatprep.subr.bf16.mxu0 %v6435_v10  ;;  %5986 = vmatprep.subr.bf16.mxu1 %v6436_v28  ;;  %v6456_v18 = vld [vmem:[#allocation19 + $0x3c8] sm:$0xff]   ;;  %v2485_v22 = vrot.slane %v7766_v55, %v2452_v39  ;;  %v6461_v41 = vld [vmem:[#allocation19 + $0x300] sm:$0xff]  }
 0x923   : > { %v3635_v57 = vmax.f32 %v3417_v34, 0.0  ;;  %v3637_v60 = vmax.f32 %v3470_v19, 0.0  ;;  %v3666_v62 = vpack.c.bf16 %v3634_v44, %v3618_v53  ;;  %v3668_v3 = vpack.c.bf16 %v3636_v38, %v3620_v58  ;;  %v6457_v35 = vld [vmem:[#allocation19 + $0x308] sm:$0xff]  }
 0x924   : > { %v6458_v36 = vld [vmem:[#allocation19 + $0x388] sm:$0xff]  }
 0x925   : > { %v3667_v29 = vpack.c.bf16 %v3635_v57, %v3619_v43  ;;  %v3669_v61 = vpack.c.bf16 %v3637_v60, %v3621_v31  ;;  %5959 = vmatpush3.bf16.msra.mxu0 %v6437_v0  ;;  %5987 = vmatpush3.bf16.msra.mxu1 %v6438_v26  ;;  %v6462_v43 = vld [vmem:[#allocation19 + $0x380] sm:$0xff]  }
 0x926   : > { %5960 = vmatprep.subr.bf16.mxu0 %v6439_v30  ;;  %5988 = vmatprep.subr.bf16.mxu1 %v6440_v6 }
 0x927   : > { %4941 = vmatprep.mubr.bf16.mxu0 %v3667_v29  ;;  %4990 = vmatprep.mubr.bf16.mxu1 %v3669_v61 }
 0x928   : > { %4942 = vmatmul.mubr.bf16.gmra.mxu0 %v3666_v62  ;;  %4991 = vmatmul.mubr.bf16.gmra.mxu1 %v3668_v3 }
 0x929   : > { %5961 = vmatpush3.bf16.msra.mxu0 %v6441_v17  ;;  %5989 = vmatpush3.bf16.msra.mxu1 %v6442_v2 }
 0x92a   : > { %5962 = vmatprep.subr.bf16.mxu0 %v6443_v46  ;;  %5990 = vmatprep.subr.bf16.mxu1 %v6444_v8 }
 0x92d   : > { %5963 = vmatpush3.bf16.msra.mxu0 %v6445_v7  ;;  %5991 = vmatpush3.bf16.msra.mxu1 %v6446_v48 }
 0x92e   : > { %5964 = vmatprep.subr.bf16.mxu0 %v6447_v5  ;;  %5992 = vmatprep.subr.bf16.mxu1 %v6448_v54 }
 0x931   : > { %5965 = vmatpush3.bf16.msra.mxu0 %v6449_v13  ;;  %5993 = vmatpush3.bf16.msra.mxu1 %v6450_v15 }
 0x932   : > { %v3506_v20 = vpop.f32.mrf.mxu0  ;;  %v3559_v50 = vpop.f32.mrf.mxu1  ;;  %5966 = vmatprep.subr.bf16.mxu0 %v6451_v56  ;;  %5994 = vmatprep.subr.bf16.mxu1 %v6452_v16 }
 0x933   : > { %v3507_v27 = vadd.f32 %v3506_v20, %v2485_v22  ;;  %v3560_v40 = vadd.f32 %v3559_v50, %v2493_v37 }
 0x934   : > { %v3508_v11 = vpop.f32.mrf.mxu0  ;;  %v3561_v47 = vpop.f32.mrf.mxu1 }
 0x935   : > { %5967 = vmatpush3.bf16.msra.mxu0 %v6453_v45  ;;  %5995 = vmatpush3.bf16.msra.mxu1 %v6454_v21  ;;  %v3509_v10 = vadd.f32 %v3508_v11, %v7804_v24  ;;  %v3562_v52 = vadd.f32 %v3561_v47, %v7809_v49  ;;  %v3590_v38 = vmax.f32 %v3507_v27, 0.0  ;;  %v3592_v57 = vmax.f32 %v3560_v40, 0.0 }
 0x936   : > { %v3510_v32 = vpop.f32.mrf.mxu0  ;;  %v3563_v25 = vpop.f32.mrf.mxu1  ;;  %5968 = vmatprep.subr.bf16.mxu0 %v6455_v14  ;;  %5996 = vmatprep.subr.bf16.mxu1 %v6456_v18 }
 0x937   : > { %v3511_v59 = vadd.f32 %v3510_v32, %v2485_v22  ;;  %v3564_v39 = vadd.f32 %v3563_v25, %v2493_v37  ;;  %v3591_v44 = vmax.f32 %v3509_v10, 0.0  ;;  %v3593_v26 = vmax.f32 %v3562_v52, 0.0 }
 0x938   : > { %v3512_v55 = vpop.f32.mrf.mxu0  ;;  %v3565_v28 = vpop.f32.mrf.mxu1 }
 0x939   : > { %v3513_v23 = vadd.f32 %v3512_v55, %v7804_v24  ;;  %v3566_v1 = vadd.f32 %v3565_v28, %v7809_v49  ;;  %5969 = vmatpush3.bf16.msra.mxu0 %v6457_v35  ;;  %v3606_v42 = vmax.f32 %v3511_v59, 0.0  ;;  %v3608_v34 = vmax.f32 %v3564_v39, 0.0  ;;  %5997 = vmatpush3.bf16.msra.mxu1 %v6458_v36 }
 0x93a   : > { %v3516_v19 = vpop.f32.mrf.mxu0  ;;  %v3569_v0 = vpop.f32.mrf.mxu1  ;;  %5970 = vmatprep.subr.bf16.mxu0 %v6459_v9  ;;  %5998 = vmatprep.subr.bf16.mxu1 %v6460_v33 }
 0x93b   : > { %v3607_v30 = vmax.f32 %v3513_v23, 0.0  ;;  %v3609_v31 = vmax.f32 %v3566_v1, 0.0  ;;  %v3654_v29 = vpack.c.bf16 %v3606_v42, %v3590_v38  ;;  %v3656_v61 = vpack.c.bf16 %v3608_v34, %v3592_v57 }
 0x93c   : > { %v3518_v60 = vpop.f32.mrf.mxu0  ;;  %v3571_v53 = vpop.f32.mrf.mxu1  ;;  %v3517_v7 = vadd.f32 %v3516_v19, %v2485_v22  ;;  %v3570_v54 = vadd.f32 %v3569_v0, %v2493_v37 }
 0x93d   : > { %v3655_v6 = vpack.c.bf16 %v3607_v30, %v3591_v44  ;;  %v3657_v58 = vpack.c.bf16 %v3609_v31, %v3593_v26  ;;  %5971 = vmatpush3.bf16.msra.mxu0 %v6461_v41  ;;  %v3519_v17 = vadd.f32 %v3518_v60, %v7804_v24  ;;  %5999 = vmatpush3.bf16.msra.mxu1 %v6462_v43 }
 0x93e   : > { %v3520_v62 = vpop.f32.mrf.mxu0  ;;  %v3573_v2 = vpop.f32.mrf.mxu1  ;;  %v3572_v46 = vadd.f32 %v3571_v53, %v7809_v49  ;;  %v3622_v14 = vmax.f32 %v3517_v7, 0.0  ;;  %v3624_v18 = vmax.f32 %v3570_v54, 0.0 }
 0x93f   : > { %v3521_v3 = vadd.f32 %v3520_v62, %v2485_v22  ;;  %v3574_v8 = vadd.f32 %v3573_v2, %v2493_v37  ;;  %5031 = vmatprep.mubr.bf16.mxu0 %v3655_v6  ;;  %5080 = vmatprep.mubr.bf16.mxu1 %v3657_v58  ;;  %v3623_v56 = vmax.f32 %v3519_v17, 0.0 }
 0x940   : > { %v3522_v48 = vpop.f32.mrf.mxu0  ;;  %v3575_v5 = vpop.f32.mrf.mxu1  ;;  %5032 = vmatmul.mubr.bf16.vlgmr.msra.gmra.mxu0 %v3654_v29  ;;  %5081 = vmatmul.mubr.bf16.vlgmr.msra.gmra.mxu1 %v3656_v61  ;;  %v3625_v45 = vmax.f32 %v3572_v46, 0.0 }
 0x941   : > { %v3523_v13 = vadd.f32 %v3522_v48, %v7804_v24  ;;  %v3576_v15 = vadd.f32 %v3575_v5, %v7809_v49  ;;  %v3638_v16 = vmax.f32 %v3521_v3, 0.0  ;;  %v3640_v20 = vmax.f32 %v3574_v8, 0.0  ;;  %v5596_v8 = vld [vmem:[%s7925_s11] ss:$0 sm:$0xff] }
 0x943   : > { %v3639_v50 = vmax.f32 %v3523_v13, 0.0  ;;  %v3641_v21 = vmax.f32 %v3576_v15, 0.0  ;;  %v3670_v22 = vpack.c.bf16 %v3638_v16, %v3622_v14  ;;  %v3672_v35 = vpack.c.bf16 %v3640_v20, %v3624_v18 }
 0x945   : > { %v3671_v11 = vpack.c.bf16 %v3639_v50, %v3623_v56  ;;  %v3673_v47 = vpack.c.bf16 %v3641_v21, %v3625_v45 }
 0x947   : > { %5039 = vmatprep.mubr.bf16.mxu0 %v3671_v11  ;;  %5088 = vmatprep.mubr.bf16.mxu1 %v3673_v47 }
 0x948   : > { %5040 = vmatmul.mubr.bf16.gmra.mxu0 %v3670_v22  ;;  %5089 = vmatmul.mubr.bf16.gmra.mxu1 %v3672_v35 }
 0x9a0   : > { %v5804_v24 = vpop.f32.mrf.mxu0  ;;  %v5832_v37 = vpop.f32.mrf.mxu1 }
 0x9a2   : > { %v5805_v49 = vpop.f32.mrf.mxu0  ;;  %v5833_v32 = vpop.f32.mrf.mxu1 }
 0x9a3   : > { %v5806_v46 = vadd.f32 %v5805_v49, %v5804_v24  ;;  %v5834_v13 = vadd.f32 %v5833_v32, %v5832_v37 }
 0x9a4   : > { %v5807_v25 = vpop.f32.mrf.mxu0  ;;  %v5835_v36 = vpop.f32.mrf.mxu1 }
 0x9a5   : > { %v4740_v5 = vadd.f32 %v5806_v46, %v5596_v8 }
 0x9a6   : > { %v5808_v9 = vpop.f32.mrf.mxu0  ;;  %v5836_v10 = vpop.f32.mrf.mxu1 }
 0x9a7   : > { %v5809_v7 = vadd.f32 %v5808_v9, %v5807_v25  ;;  %v4789_v45 = vadd.f32 %v5834_v13, %v4740_v5  ;;  %v5837_v21 = vadd.f32 %v5836_v10, %v5835_v36 }
 0x9a8   : > { %v5810_v52 = vpop.f32.mrf.mxu0  ;;  %v5838_v59 = vpop.f32.mrf.mxu1 }
 0x9a9   : > { %v4743_v56 = vadd.f32 %v5809_v7, %v5596_v8 }
 0x9aa   : > { %v5811_v39 = vpop.f32.mrf.mxu0  ;;  %v5839_v33 = vpop.f32.mrf.mxu1 }
 0x9ab   : > { %v5812_v20 = vadd.f32 %v5811_v39, %v5810_v52  ;;  %v4792_v11 = vadd.f32 %v5837_v21, %v4743_v56  ;;  %v5840_v46 = vadd.f32 %v5839_v33, %v5838_v59 }
 0x9ac   : > { %v5813_v27 = vpop.f32.mrf.mxu0  ;;  %v5841_v40 = vpop.f32.mrf.mxu1 }
 0x9ad   : > { %v4748_v35 = vadd.f32 %v5812_v20, %v5596_v8 }
 0x9ae   : > { %v5814_v55 = vpop.f32.mrf.mxu0  ;;  %v5842_v28 = vpop.f32.mrf.mxu1 }
 0x9af   : > { %v5815_v47 = vadd.f32 %v5814_v55, %v5813_v27  ;;  %v4797_v52 = vadd.f32 %v5840_v46, %v4748_v35  ;;  %v5843_v10 = vadd.f32 %v5842_v28, %v5841_v40 }
 0x9b1   : > { %v4751_v32 = vadd.f32 %v5815_v47, %v5596_v8 }
 0x9c0   : > { %v5860_v23 = vpop.f32.mrf.mxu0  ;;  %v5888_v1 = vpop.f32.mrf.mxu1 }
 0x9c2   : > { %v5861_v41 = vpop.f32.mrf.mxu0  ;;  %v5889_v42 = vpop.f32.mrf.mxu1 }
 0x9c3   : > { %v5862_v15 = vadd.f32 %v5861_v41, %v5860_v23  ;;  %v5890_v24 = vadd.f32 %v5889_v42, %v5888_v1  ;;  %v4800_v42 = vadd.f32 %v5843_v10, %v4751_v32 }
 0x9c4   : > { %v5863_v34 = vpop.f32.mrf.mxu0  ;;  %v5891_v19 = vpop.f32.mrf.mxu1 }
 0x9c5   : > { %v4838_v18 = vadd.f32 %v5862_v15, %v4789_v45 }
 0x9c6   : > { %v5864_v0 = vpop.f32.mrf.mxu0  ;;  %v5892_v43 = vpop.f32.mrf.mxu1 }
 0x9c7   : > { %v5865_v14 = vadd.f32 %v5864_v0, %v5863_v34  ;;  %v4887_v51 = vadd.f32 %v5890_v24, %v4838_v18  ;;  %v5893_v23 = vadd.f32 %v5892_v43, %v5891_v19 }
 0x9c8   : > { %v5866_v44 = vpop.f32.mrf.mxu0  ;;  %v5894_v26 = vpop.f32.mrf.mxu1 }
 0x9c9   : > { %v4841_v9 = vadd.f32 %v5865_v14, %v4792_v11 }
 0x9ca   : > { %v5867_v30 = vpop.f32.mrf.mxu0  ;;  %v5895_v31 = vpop.f32.mrf.mxu1 }
 0x9cb   : > { %v5868_v37 = vadd.f32 %v5867_v30, %v5866_v44  ;;  %v4890_v34 = vadd.f32 %v5893_v23, %v4841_v9  ;;  %v5896_v59 = vadd.f32 %v5895_v31, %v5894_v26 }
 0x9cc   : > { %v5869_v38 = vpop.f32.mrf.mxu0  ;;  %v7825_v57 = vpop.f32.mrf.mxu1 }
 0x9cd   : > { %v4846_v55 = vadd.f32 %v5868_v37, %v4797_v52  ;;  %v7975_v52 = vld [vmem:[#allocation30_spill] sm:$0xff] }
 0x9ce   : > { %v5870_v60 = vpop.f32.mrf.mxu0  ;;  %v7827_v53 = vpop.f32.mrf.mxu1 }
 0x9cf   : > { %v5871_v0 = vadd.f32 %v5870_v60, %v5869_v38  ;;  %v5899_v38 = vadd.f32 %v7827_v53, %v7825_v57 }
 0x9d1   : > { %v4849_v43 = vadd.f32 %v5871_v0, %v4800_v42 }
 0x9e0   : > { %v5916_v6 = vpop.f32.mrf.mxu0  ;;  %v5944_v58 = vpop.f32.mrf.mxu1 }
 0x9e2   : > { %v5917_v29 = vpop.f32.mrf.mxu0  ;;  %v5945_v61 = vpop.f32.mrf.mxu1 }
 0x9e3   : > { %v5918_v49 = vadd.f32 %v5917_v29, %v5916_v6  ;;  %v5946_v5 = vadd.f32 %v5945_v61, %v5944_v58 }
 0x9e4   : > { %v5919_v17 = vpop.f32.mrf.mxu0  ;;  %v5947_v62 = vpop.f32.mrf.mxu1 }
 0x9e5   : > { %v4936_v39 = vadd.f32 %v5918_v49, %v4887_v51  ;;  %v4895_v51 = vadd.f32 %v5896_v59, %v4846_v55 }
 0x9e6   : > { %v5920_v2 = vpop.f32.mrf.mxu0  ;;  %v5948_v3 = vpop.f32.mrf.mxu1 }
 0x9e7   : > { %v5921_v41 = vadd.f32 %v5920_v2, %v5919_v17  ;;  %v4985_v33 = vadd.f32 %v5946_v5, %v4936_v39  ;;  %v5949_v17 = vadd.f32 %v5948_v3, %v5947_v62 }
 0x9e8   : > { %v5922_v48 = vpop.f32.mrf.mxu0  ;;  %v5950_v54 = vpop.f32.mrf.mxu1 }
 0x9e9   : > { %v4939_v6 = vadd.f32 %v5921_v41, %v4890_v34 }
 0x9ea   : > { %v5923_v16 = vpop.f32.mrf.mxu0  ;;  %v5951_v50 = vpop.f32.mrf.mxu1 }
 0x9eb   : > { %v5924_v44 = vadd.f32 %v5923_v16, %v5922_v48  ;;  %v4988_v60 = vadd.f32 %v5949_v17, %v4939_v6  ;;  %v4898_v48 = vadd.f32 %v5899_v38, %v4849_v43  ;;  %v5952_v16 = vadd.f32 %v5951_v50, %v5950_v54 }
 0x9ec   : > { %v5925_v22 = vpop.f32.mrf.mxu0  ;;  %v5953_v25 = vpop.f32.mrf.mxu1 }
 0x9ed   : > { %v4944_v61 = vadd.f32 %v5924_v44, %v4895_v51 }
 0x9ee   : > { %v5926_v7 = vpop.f32.mrf.mxu0  ;;  %v5954_v36 = vpop.f32.mrf.mxu1 }
 0x9ef   : > { %v5927_v13 = vadd.f32 %v5926_v7, %v5925_v22  ;;  %v4993_v14 = vadd.f32 %v5952_v16, %v4944_v61  ;;  %v5955_v22 = vadd.f32 %v5954_v36, %v5953_v25 }
 0x9f1   : > { %v4947_v18 = vadd.f32 %v5927_v13, %v4898_v48 }
 0x9f3   : > { %v4996_v50 = vadd.f32 %v5955_v22, %v4947_v18 }
 0xa00   : > { %v5972_v27 = vpop.f32.mrf.mxu0  ;;  %v6000_v1 = vpop.f32.mrf.mxu1 }
 0xa02   : > { %v5973_v29 = vpop.f32.mrf.mxu0  ;;  %v6001_v19 = vpop.f32.mrf.mxu1 }
 0xa03   : > { %v5974_v30 = vadd.f32 %v5973_v29, %v5972_v27  ;;  %v6002_v40 = vadd.f32 %v6001_v19, %v6000_v1 }
 0xa04   : > { %v5975_v2 = vpop.f32.mrf.mxu0  ;;  %v6003_v28 = vpop.f32.mrf.mxu1 }
 0xa05   : > { %v5034_v8 = vadd.f32 %v5974_v30, %v4985_v33 }
 0xa06   : > { %v5976_v58 = vpop.f32.mrf.mxu0  ;;  %v6004_v31 = vpop.f32.mrf.mxu1 }
 0xa07   : > { %v5083_v15 = vadd.f32 %v6002_v40, %v5034_v8  ;;  %v5977_v26 = vadd.f32 %v5976_v58, %v5975_v2  ;;  %v6005_v62 = vadd.f32 %v6004_v31, %v6003_v28 }
 0xa08   : > { %v5978_v56 = vpop.f32.mrf.mxu0  ;;  %v6006_v3 = vpop.f32.mrf.mxu1 }
 0xa09   : > { %v5037_v45 = vadd.f32 %v5977_v26, %v4988_v60  ;;  %v5099_v20 = vadd.f32 %v5083_v15, %v7656_v12 }
 0xa0a   : > { %v5979_v21 = vpop.f32.mrf.mxu0  ;;  %v6007_v53 = vpop.f32.mrf.mxu1 }
 0xa0b   : > { %v5086_v11 = vadd.f32 %v6005_v62, %v5037_v45  ;;  %v5980_v57 = vadd.f32 %v5979_v21, %v5978_v56  ;;  %5103 = vadd.xlane.f32.xlu1 %v5099_v20  ;;  %v6008_v24 = vadd.f32 %v6007_v53, %v6006_v3 }
 0xa0c   : > { %v5981_v47 = vpop.f32.mrf.mxu0  ;;  %v6009_v49 = vpop.f32.mrf.mxu1 }
 0xa0d   : > { %v5042_v35 = vadd.f32 %v5980_v57, %v4993_v14  ;;  %v5100_v9 = vadd.f32 %v5086_v11, %v7658_v4 }
 0xa0e   : > { %v5982_v54 = vpop.f32.mrf.mxu0  ;;  %v6010_v32 = vpop.f32.mrf.mxu1 }
 0xa0f   : > { %v5091_v46 = vadd.f32 %v6008_v24, %v5042_v35  ;;  %v5983_v37 = vadd.f32 %v5982_v54, %v5981_v47  ;;  %5105 = vadd.xlane.f32.xlu0 %v5100_v9  ;;  %v6011_v23 = vadd.f32 %v6010_v32, %v6009_v49  ;;  %v5725_v35 = vld [vmem:[%s7976_s28] ss:$0 sm:$0xff] }
 0xa10   : > { %v5726_v49 = vld [vmem:[%s7977_s20] ss:$0 sm:$0xff] }
 0xa11   : > { %v5045_v12 = vadd.f32 %v5983_v37, %v4996_v50  ;;  %v5101_v41 = vadd.f32 %v5091_v46, %v7676_v63 }
 0xa13   : > { %v5094_v7 = vadd.f32 %v6011_v23, %v5045_v12  ;;  %5107 = vadd.xlane.f32.xlu1 %v5101_v41 }
 0xa15   : > { %v5102_v39 = vadd.f32 %v5094_v7, %v7975_v52 }
 0xa17   : > { %5109 = vadd.xlane.f32.xlu0 %v5102_v39 }
 0xa94   : > { %v5104_v25 = vpop.xlane.xlu1 %5103 }
 0xa95   : > { %v5111_v36 = vmul.f32 0.0078125, %v5104_v25 }
 0xa97   : > { %v7838_v10 = vsub.f32 %v5099_v20, %v5111_v36 }
 0xa98   : > { %v5106_v4 = vpop.xlane.xlu0 %5105 }
 0xa99   : > { %v5112_v34 = vmul.f32 0.0078125, %v5106_v4  ;;  %v5119_v0 = vmul.f32 %v7838_v10, %v7838_v10 }
 0xa9b   : > { %v7842_v27 = vsub.f32 %v5100_v9, %v5112_v34  ;;  %5123 = vadd.xlane.f32.xlu1 %v5119_v0 }
 0xa9c   : > { %v5108_v55 = vpop.xlane.xlu1 %5107 }
 0xa9d   : > { %v5113_v5 = vmul.f32 0.0078125, %v5108_v55  ;;  %v5120_v63 = vmul.f32 %v7842_v27, %v7842_v27 }
 0xa9f   : > { %v7846_v1 = vsub.f32 %v5101_v41, %v5113_v5  ;;  %5125 = vadd.xlane.f32.xlu0 %v5120_v63 }
 0xaa0   : > { %v5110_v42 = vpop.xlane.xlu0 %5109 }
 0xaa1   : > { %v5114_v6 = vmul.f32 0.0078125, %v5110_v42  ;;  %v5121_v29 = vmul.f32 %v7846_v1, %v7846_v1 }
 0xaa3   : > { %v7850_v59 = vsub.f32 %v5102_v39, %v5114_v6  ;;  %5127 = vadd.xlane.f32.xlu1 %v5121_v29 }
 0xaa5   : > { %v5122_v33 = vmul.f32 %v7850_v59, %v7850_v59 }
 0xaa7   : > { %5129 = vadd.xlane.f32.xlu0 %v5122_v33 }
 0xb24   : > { %v5124_v44 = vpop.xlane.xlu1 %5123 }
 0xb25   : > { %v5131_v30 = vmul.f32 0.007874016, %v5124_v44 }
 0xb27   : > { %6543 = vrsqrt.f32 %v5131_v30  ;;  %vm5137_vm2 = vcmp.eq.f32.partialorder %v5131_v30, inf  ;;  %v5140_v38 = vand.u32 2147483648, %v5131_v30  ;;  %vm5139_vm3 = vcmp.eq.f32.partialorder %v5131_v30, 0.0 }
 0xb28   : > { %v5126_v19 = vpop.xlane.xlu0 %5125 }
 0xb29   : > { %v5132_v43 = vmul.f32 0.007874016, %v5126_v19 }
 0xb2b   : > { %6545 = vrsqrt.f32 %v5132_v43  ;;  %vm5144_vm4 = vcmp.eq.f32.partialorder %v5132_v43, inf  ;;  %v5147_v26 = vand.u32 2147483648, %v5132_v43  ;;  %vm5146_vm5 = vcmp.eq.f32.partialorder %v5132_v43, 0.0 }
 0xb2c   : > { %v5128_v17 = vpop.xlane.xlu1 %5127 }
 0xb2d   : > { %v5133_v2 = vmul.f32 0.007874016, %v5128_v17 }
 0xb2f   : > { %6547 = vrsqrt.f32 %v5133_v2  ;;  %vm5151_vm6 = vcmp.eq.f32.partialorder %v5133_v2, inf  ;;  %v5154_v62 = vand.u32 2147483648, %v5133_v2  ;;  %vm5153_vm7 = vcmp.eq.f32.partialorder %v5133_v2, 0.0 }
 0xb30   : > { %v5130_v51 = vpop.xlane.xlu0 %5129 }
 0xb31   : > { %v5134_v8 = vmul.f32 0.007874016, %v5130_v51 }
 0xb33   : > { %6549 = vrsqrt.f32 %v5134_v8  ;;  %vm5158_vm8 = vcmp.eq.f32.partialorder %v5134_v8, inf  ;;  %v5161_v11 = vand.u32 2147483648, %v5134_v8  ;;  %vm5160_vm9 = vcmp.eq.f32.partialorder %v5134_v8, 0.0 }
 0xb34   : > { %v6544_v40 = vpop.eup %6543 }
 0xb35   : > { %v5136_v28 = vmul.f32 %v6544_v40, %v5131_v30 }
 0xb37   : > { %v5138_v60 = vsel %vm5137_vm2, %v5131_v30, %v5136_v28 }
 0xb38   : > { %v6546_v58 = vpop.eup %6545  ;;  %v5141_v61 = vsel %vm5139_vm3, %v5140_v38, %v5138_v60 }
 0xb39   : > { %v5163_v13 = vadd.f32 1e-06, %v5141_v61  ;;  %v5143_v15 = vmul.f32 %v6546_v58, %v5132_v43 }
 0xb3b   : > { %6551 = vrcp.f32 %v5163_v13  ;;  %v5145_v31 = vsel %vm5144_vm4, %v5132_v43, %v5143_v15 }
 0xb3c   : > { %v6548_v48 = vpop.eup %6547  ;;  %v5148_v56 = vsel %vm5146_vm5, %v5147_v26, %v5145_v31 }
 0xb3d   : > { %v5164_v16 = vadd.f32 1e-06, %v5148_v56  ;;  %v5150_v45 = vmul.f32 %v6548_v48, %v5133_v2 }
 0xb3f   : > { %6553 = vrcp.f32 %v5164_v16  ;;  %v5152_v3 = vsel %vm5151_vm6, %v5133_v2, %v5150_v45 }
 0xb40   : > { %v6550_v20 = vpop.eup %6549  ;;  %v5155_v21 = vsel %vm5153_vm7, %v5154_v62, %v5152_v3 }
 0xb41   : > { %v5165_v14 = vadd.f32 1e-06, %v5155_v21  ;;  %v5157_v18 = vmul.f32 %v6550_v20, %v5134_v8 }
 0xb43   : > { %6555 = vrcp.f32 %v5165_v14  ;;  %v5159_v57 = vsel %vm5158_vm8, %v5134_v8, %v5157_v18 }
 0xb44   : > { %v5162_v53 = vsel %vm5160_vm9, %v5161_v11, %v5159_v57 }
 0xb45   : > { %v5166_v47 = vadd.f32 1e-06, %v5162_v53 }
 0xb47   : > { %6557 = vrcp.f32 %v5166_v47 }
 0xb48   : > { %v6552_v22 = vpop.eup %6551 }
 0xb49   : > { %v5171_v24 = vmul.f32 %v6552_v22, %v7838_v10 }
 0xb4b   : > { %v5181_v9 = vmul.f32 %v5725_v35, %v5171_v24 }
 0xb4c   : > { %v6554_v54 = vpop.eup %6553 }
 0xb4d   : > { %v5172_v50 = vmul.f32 %v6554_v54, %v7842_v27  ;;  %v5191_v46 = vadd.f32 %v5726_v49, %v5181_v9 }
 0xb4f   : > { %v5182_v37 = vmul.f32 %v5725_v35, %v5172_v50  ;;  %5195 = vst [vmem:[%s634_s4] sm:$0xff] %v5191_v46 }
 0xb50   : > { %v6556_v32 = vpop.eup %6555 }
 0xb51   : > { %v5173_v12 = vmul.f32 %v6556_v32, %v7846_v1  ;;  %v5192_v23 = vadd.f32 %v5726_v49, %v5182_v37 }
 0xb53   : > { %v5183_v41 = vmul.f32 %v5725_v35, %v5173_v12  ;;  %5196 = vst [vmem:[%s634_s4 + $0x8] sm:$0xff] %v5192_v23 }
 0xb54   : > { %v6558_v7 = vpop.eup %6557 }
 0xb55   : > { %v5174_v52 = vmul.f32 %v6558_v7, %v7850_v59  ;;  %v5193_v39 = vadd.f32 %v5726_v49, %v5183_v41 }
 0xb57   : > { %v5184_v25 = vmul.f32 %v5725_v35, %v5174_v52  ;;  %5197 = vst [vmem:[%s634_s4 + $0x10] sm:$0xff] %v5193_v39 }
 0xb59   : > { %v5194_v36 = vadd.f32 %v5726_v49, %v5184_v25 }
 0xb5b   : > { %5198 = vst [vmem:[%s634_s4 + $0x18] sm:$0xff] %v5194_v36 }
 0xb5c   : > { %6840 = shalt.err (!%p6837_p10)
}
 0xb5d   : > { %s6841_s23 = scalar_lea.hbm %s7869_s17, 512  ;;  %s6845_s2 = scalar_lea.hbm %s7978_s3, 1024 }
 0xb5e   : > { %p6842_p13 = scmp.ne.s32.totalorder %s7869_s17, %s6841_s23  ;;  %p6846_p5 = scmp.lt.s32.totalorder %s7869_s17, %s7978_s3 }
 0xb5f   : > { %p6847_p8 = scmp.lt.s32.totalorder %s6845_s2, %s6841_s23 }
 0xb60   : > { %p6843_p0 = pnand %p6842_p13, %p7979_p4 }
 0xb61   : > { %p6848_p11 = por %p6847_p8, %p6846_p5 }
 0xb62   : > { %p6844_p12 = pneg %p6843_p0 }
 0xb64   : > { %p6849_p6 = pnand %p6848_p11, %p6844_p12 }
 0xb66   : > { %6852 = shalt.err (!%p6849_p6)
}
 0xb67   : > { %s6941_s4 = smov 128   ;;  %s6942_s12 = smov 8  }
 0xb68   : > { %6184 = dma.vmem_to_hbm [thread:$0]  (%p7979_p4), %s7871_s5, 512, %s7869_s17, %s5200_s22, %s6941_s4, %s6941_s4, %s6942_s12  }
 0xb69 PF: > { %s5228_s25 = sand.u32 1, %s6903_s29   ;;  %p7980_p1 = scmp.ne.s32.totalorder %s7959_s24, 0 }
 0xb6a   : > { %p7981_p7 = scmp.ge.s32.totalorder %s6915_s16, 2  ;;  %s5229_s18 = scalar_lea.sflag [#allocation6], %s5228_s25 }
 0xb6c   : > { %p6219_p2 = pnand %p7981_p7, %p7980_p1 }
 0xb6e   : > { %p6220_p9 = pneg %p6219_p2 }
 0xb70   : > { %6898 = dma.done.wait (%p6220_p9), %s5229_s18, 512  }
 0xb71   : > { %6900 = vsyncadd (%p6220_p9), %s5229_s18, 4294966784  ;;  %p34_p3 = scmp.ge.s32.totalorder %s7136_s26, 4   ;;  %s7982_s29 = smov %s6907_s30 }
 0xb72   : > { %s7983_s30 = smov %s6911_s15  ;;  %s7984_s15 = smov %s7148_s27 }
 0xb73   : > { %s7985_s16 = smov %s7136_s26  ;;  %36 = sbr.rel (!%p34_p3) target bundleno = 23 (0x17), region = 167 }
 0xb78   :  { %5234 = vsyncpa [#allocation5], 1 }
 0xb79   :  { %5236 = vsyncpa [#allocation5 + $0x1], 1 }
 0xb7a   :  { %5237 = vsyncpa [#allocation8], 1 }
 0xb7b   :  { %5239 = vsyncpa [#allocation8 + $0x1], 1 }
 0xb7c   :  { %5240 = vsyncpa [#allocation11], 1 }
 0xb7d   :  { %5241 = vsyncpa [#allocation14], 1 }
 0xb7e   :  { %5242 = vsyncpa [#allocation17], 1 }
 0xb7f   :  { %5243 = vsyncpa [#allocation20], 1 }
 0xb80   :  { %5244 = vsyncpa [#allocation6], 1 }
 0xb81   :  { %5246 = vsyncpa [#allocation6 + $0x1], 1 }

</bundles_post_ra>
